<compile_context>
chip_gen: v6e
topology: v6e:2x2x1
jax: 0.10.0
libtpu: 0.0.40
codegen_flags: <defaults>
</compile_context>

<pallas_src>
import math
import jax
import jax.numpy as jnp
from jax.experimental import pallas as pl
from jax.experimental.pallas import tpu as pltpu

NUM_GROUP = 8
GN_EPS = 1e-5
VMEM_LIMIT_BYTES = 48 * 1024 * 1024  # below v7x's 64 MiB physical, above default scoped limits


# ---------------------------------------------------------------------------
# stage 1: GroupNorm + fused QKV projection (one grid step per batch element)
# TODO(synk): for extremely large H*W this stage still holds a full (HW, C) slab per
# batch; a 2-pass (stats / apply) HW-tiled variant would be needed there.
# ---------------------------------------------------------------------------
def gn_qkv_kernel(x_ref, onehot_ref, gamma_ref, beta_ref, wqkv_ref, bqkv_ref,
                  q_ref, k_ref, v_ref):
    x = x_ref[...].astype(jnp.float32)                 # (HW, C)
    onehot = onehot_ref[...]                           # (C, G)
    HW, C = x.shape
    G = onehot.shape[1]
    n_per_group = (C // G) * HW

    # GroupNorm stats: per-channel sums first (sublane reduce), then tiny (1,C)@(C,G) dots
    s1 = jnp.sum(x, axis=0, keepdims=True)             # (1, C)
    s2 = jnp.sum(x * x, axis=0, keepdims=True)         # (1, C)
    gs1 = jnp.dot(s1, onehot, preferred_element_type=jnp.float32)   # (1, G)
    gs2 = jnp.dot(s2, onehot, preferred_element_type=jnp.float32)   # (1, G)
    mean_g = gs1 / n_per_group
    var_g = gs2 / n_per_group - mean_g * mean_g        # biased variance (PyTorch GN)
    rstd_g = jax.lax.rsqrt(var_g + GN_EPS)

    # broadcast group stats back to channels (contract over G; no transpose of onehot)
    def bcast(g):                                      # (1, G) -> (1, C)
        return jax.lax.dot_general(g, onehot, (((1,), (1,)), ((), ())),
                                   preferred_element_type=jnp.float32)

    # fold GN affine into per-channel scale/bias: h = x * scale_c + bias_c
    scale_c = gamma_ref[...] * bcast(rstd_g)                       # (1, C)
    bias_c = beta_ref[...] - gamma_ref[...] * bcast(mean_g * rstd_g)
    h = (x * scale_c + bias_c).astype(jnp.bfloat16)

    # fused 1x1-conv QKV projection (attention scale already folded into the Q columns)
    qkv = jnp.dot(h, wqkv_ref[...], preferred_element_type=jnp.float32) + bqkv_ref[...]
    qkv = qkv.astype(jnp.bfloat16)                     # (HW, 3C)
    q_ref[...] = qkv[:, :C]
    k_ref[...] = qkv[:, C:2 * C]
    v_ref[...] = qkv[:, 2 * C:]


# ---------------------------------------------------------------------------
# stage 2: flash-style attention + output projection + residual
# grid = (B, HW // TQ, HW // TKV); KV axis is the innermost ("arbitrary") axis.
# ---------------------------------------------------------------------------
def flash_attn_kernel(q_ref, k_ref, v_ref, x_ref, wp_ref, bp_ref, o_ref,
                      m_sc, l_sc, acc_sc):
    ki = pl.program_id(2)

    @pl.when(ki == 0)
    def _():
        m_sc[...] = jnp.full_like(m_sc, -jnp.inf)
        l_sc[...] = jnp.zeros_like(l_sc)
        acc_sc[...] = jnp.zeros_like(acc_sc)

    # scores: (TQ, C) x (TKV, C) contracted over C -> (TQ, TKV); no explicit k.T
    s = jax.lax.dot_general(q_ref[...], k_ref[...], (((1,), (1,)), ((), ())),
                            preferred_element_type=jnp.float32)

    m_prev = m_sc[...]
    m_new = jnp.maximum(m_prev, jnp.max(s, axis=-1, keepdims=True))   # (TQ, 1)
    alpha = jnp.exp(m_prev - m_new)
    p = jnp.exp(s - m_new)                                            # (TQ, TKV) f32
    l_sc[...] = alpha * l_sc[...] + jnp.sum(p, axis=-1, keepdims=True)
    acc_sc[...] = alpha * acc_sc[...] + jnp.dot(
        p.astype(jnp.bfloat16), v_ref[...], preferred_element_type=jnp.float32)
    m_sc[...] = m_new

    @pl.when(ki == pl.num_programs(2) - 1)
    def _():
        # deferred softmax normalization: scale (TQ, C) once instead of (TQ, HW)
        attn = acc_sc[...] * pl.reciprocal(l_sc[...], approx=True)
        out = jnp.dot(attn.astype(jnp.bfloat16), wp_ref[...],
                      preferred_element_type=jnp.float32) + bp_ref[...]
        o_ref[...] = (x_ref[...].astype(jnp.float32) + out).astype(o_ref.dtype)


def _pick_tile(n, cap=128):
    """Largest power-of-two tile <= cap that divides n (fallback: n itself)."""
    t = min(cap, n)
    while t > 8 and n % t != 0:
        t //= 2
    return t if n % t == 0 else n


def attn_block_pallas(x_nchw, params, *, tq=None, tkv=None):
    """x_nchw: (B, C, H, W) float32. params: dict of weights (see init_params)."""
    B, C, H, W = x_nchw.shape
    HW = H * W
    G = NUM_GROUP
    assert C % G == 0

    # NCHW -> (B, HW, C): tokens on sublanes, channels on the 128-lane axis
    x_tok = jnp.transpose(x_nchw, (0, 2, 3, 1)).reshape(B, HW, C)

    # ---- parameter prep (parameter transforms are free: done once, not per activation) ----
    scale = float(C) ** (-0.5)
    wq_t = params["wq"].reshape(C, C).T * scale        # fold 1/sqrt(C) into Wq (and bq)
    wk_t = params["wk"].reshape(C, C).T
    wv_t = params["wv"].reshape(C, C).T
    wqkv = jnp.concatenate([wq_t, wk_t, wv_t], axis=1).astype(jnp.bfloat16)   # (C, 3C)
    bqkv = jnp.concatenate([params["bq"] * scale, params["bk"], params["bv"]]
                           ).reshape(1, 3 * C).astype(jnp.float32)
    wp = params["wp"].reshape(C, C).T.astype(jnp.bfloat16)                    # (C, C)
    bp = params["bp"].reshape(1, C).astype(jnp.float32)
    gamma = params["gn_gamma"].reshape(1, C).astype(jnp.float32)
    beta = params["gn_beta"].reshape(1, C).astype(jnp.float32)

    # channel -> group one-hot (C, G) for GN group reductions via tiny matmuls
    ch = jnp.arange(C)
    onehot = (ch[:, None] // (C // G) == jnp.arange(G)[None, :]).astype(jnp.float32)

    const1 = lambda shape: pl.BlockSpec(shape, lambda b: (0, 0))

    # ---- stage 1: GroupNorm + fused QKV projection ----
    q_tok, k_tok, v_tok = pl.pallas_call(
        gn_qkv_kernel,
        out_shape=tuple(jax.ShapeDtypeStruct((B, HW, C), jnp.bfloat16) for _ in range(3)),
        grid_spec=pltpu.PrefetchScalarGridSpec(
            num_scalar_prefetch=0,
            grid=(B,),
            in_specs=[
                pl.BlockSpec((None, HW, C), lambda b: (b, 0, 0)),   # x
                const1((C, G)),                                     # onehot
                const1((1, C)), const1((1, C)),                     # gamma, beta
                const1((C, 3 * C)), const1((1, 3 * C)),             # wqkv, bqkv
            ],
            out_specs=tuple(pl.BlockSpec((None, HW, C), lambda b: (b, 0, 0))
                            for _ in range(3)),
        ),
        compiler_params=pltpu.CompilerParams(
            dimension_semantics=("parallel",),
            vmem_limit_bytes=VMEM_LIMIT_BYTES),
    )(x_tok, onehot, gamma, beta, wqkv, bqkv)

    # ---- stage 2: flash attention + projection + residual ----
    if tq is None:
        tq = _pick_tile(HW)
    if tkv is None:
        tkv = _pick_tile(HW)
    assert HW % tq == 0 and HW % tkv == 0

    const3 = lambda shape: pl.BlockSpec(shape, lambda b, qi, ki: (0, 0))
    out_tok = pl.pallas_call(
        flash_attn_kernel,
        out_shape=jax.ShapeDtypeStruct((B, HW, C), x_nchw.dtype),
        grid_spec=pltpu.PrefetchScalarGridSpec(
            num_scalar_prefetch=0,
            grid=(B, HW // tq, HW // tkv),
            in_specs=[
                pl.BlockSpec((None, tq, C), lambda b, qi, ki: (b, qi, 0)),    # q
                pl.BlockSpec((None, tkv, C), lambda b, qi, ki: (b, ki, 0)),   # k
                pl.BlockSpec((None, tkv, C), lambda b, qi, ki: (b, ki, 0)),   # v
                pl.BlockSpec((None, tq, C), lambda b, qi, ki: (b, qi, 0)),    # x (residual)
                const3((C, C)),                                               # wp
                const3((1, C)),                                               # bp
            ],
            out_specs=pl.BlockSpec((None, tq, C), lambda b, qi, ki: (b, qi, 0)),
            scratch_shapes=[
                pltpu.VMEM((tq, 1), jnp.float32),    # running row max
                pltpu.VMEM((tq, 1), jnp.float32),    # running softmax denominator
                pltpu.VMEM((tq, C), jnp.float32),    # unnormalized output accumulator
            ],
        ),
        compiler_params=pltpu.CompilerParams(
            dimension_semantics=("parallel", "parallel", "arbitrary"),
            vmem_limit_bytes=VMEM_LIMIT_BYTES),
    )(q_tok, k_tok, v_tok, x_tok, wp, bp)

    # (B, HW, C) -> NCHW
    return jnp.transpose(out_tok.reshape(B, H, W, C), (0, 3, 1, 2))


# ---------------------------------------------------------------------------
# parameters + pure-JAX reference (validation)
# ---------------------------------------------------------------------------
def init_params(key, C):
    """Deterministic synthetic init mirroring AttnBlock.initialize()."""
    def xavier_uniform(k, shape, gain=1.0):
        fan_in, fan_out = shape[1], shape[0]           # conv1x1: (C_out, C_in, 1, 1)
        bound = gain * math.sqrt(6.0 / (fan_in + fan_out))
        return jax.random.uniform(k, shape, jnp.float32, -bound, bound)

    kq, kk, kv, kp = jax.random.split(key, 4)
    return {
        "gn_gamma": jnp.ones((C,), jnp.float32),
        "gn_beta": jnp.zeros((C,), jnp.float32),
        "wq": xavier_uniform(kq, (C, C, 1, 1)),
        "wk": xavier_uniform(kk, (C, C, 1, 1)),
        "wv": xavier_uniform(kv, (C, C, 1, 1)),
        "wp": xavier_uniform(kp, (C, C, 1, 1), gain=1e-5),  # final proj uses gain=1e-5
        "bq": jnp.zeros((C,), jnp.float32),
        "bk": jnp.zeros((C,), jnp.float32),
        "bv": jnp.zeros((C,), jnp.float32),
        "bp": jnp.zeros((C,), jnp.float32),
    }


def attn_block_ref(x_nchw, params):
    """Pure-JAX f32 reference."""
    B, C, H, W = x_nchw.shape
    G = NUM_GROUP
    x = x_nchw
    xg = x.reshape(B, G, C // G, H, W)
    mean = jnp.mean(xg, axis=(2, 3, 4), keepdims=True)
    var = jnp.mean((xg - mean) ** 2, axis=(2, 3, 4), keepdims=True)
    h = ((xg - mean) / jnp.sqrt(var + GN_EPS)).reshape(B, C, H, W)
    h = h * params["gn_gamma"][None, :, None, None] + params["gn_beta"][None, :, None, None]

    def conv1x1(t, w, b):
        return jnp.einsum("bchw,oc->bohw", t, w.reshape(C, C)) + b[None, :, None, None]

    q = conv1x1(h, params["wq"], params["bq"])
    k = conv1x1(h, params["wk"], params["bk"])
    v = conv1x1(h, params["wv"], params["bv"])
    q = jnp.transpose(q, (0, 2, 3, 1)).reshape(B, H * W, C)
    k = k.reshape(B, C, H * W)
    w = jnp.einsum("bic,bcj->bij", q, k) * (float(C) ** -0.5)
    w = jax.nn.softmax(w, axis=-1)
    v = jnp.transpose(v, (0, 2, 3, 1)).reshape(B, H * W, C)
    ho = jnp.einsum("bij,bjc->bic", w, v)
    ho = jnp.transpose(ho.reshape(B, H, W, C), (0, 3, 1, 2))
    ho = conv1x1(ho, params["wp"], params["bp"])
    return x + ho


if __name__ == "__main__":
    B, C, H, W = 2, 64, 16, 16     # C divisible by num_group=8; HW=256 -> 2x2 Q/KV tiles
    key = jax.random.PRNGKey(0)
    kx, kp = jax.random.split(key)
    x = jax.random.normal(kx, (B, C, H, W), jnp.float32)
    params = init_params(kp, C)

    fn = jax.jit(attn_block_pallas)

    # check 1: exact module init (proj gain 1e-5) against f32 reference
    out = jax.block_until_ready(fn(x, params))
    ref = attn_block_ref(x, params)
    assert out.shape == (B, C, H, W)
    err = float(jnp.max(jnp.abs(out - ref)))
    assert err < 1e-3, err

    # check 2: non-degenerate output projection (gain 1) to exercise the attention
    # path at visible magnitude; looser tolerance due to bf16 MXU operands.
    params2 = dict(params)
    params2["wp"] = params["wp"] * 1e5
    out2 = jax.block_until_ready(fn(x, params2))
    ref2 = attn_block_ref(x, params2)
    err2 = float(jnp.max(jnp.abs(out2 - ref2)))
    assert err2 < 2e-1, err2

    print("KERNEL_OK")
</pallas_src>

<mosaic_0001>
module attributes {stable_mosaic.version = 11 : i64} {
  func.func @flash_attn_kernel(%arg0: i32, %arg1: i32, %arg2: i32, %arg3: memref<1x128x64xbf16, #tpu.memory_space<vmem>>, %arg4: memref<1x128x64xbf16, #tpu.memory_space<vmem>>, %arg5: memref<1x128x64xbf16, #tpu.memory_space<vmem>>, %arg6: memref<1x128x64xf32, #tpu.memory_space<vmem>>, %arg7: memref<64x64xbf16, #tpu.memory_space<vmem>>, %arg8: memref<1x64xf32, #tpu.memory_space<vmem>>, %arg9: memref<1x128x64xf32, #tpu.memory_space<vmem>>, %arg10: memref<128x1xf32, #tpu.memory_space<vmem>>, %arg11: memref<128x1xf32, #tpu.memory_space<vmem>>, %arg12: memref<128x64xf32, #tpu.memory_space<vmem>>) attributes {dimension_semantics = [#tpu.dimension_semantics<parallel>, #tpu.dimension_semantics<parallel>, #tpu.dimension_semantics<arbitrary>], iteration_bounds = array<i64: 2, 2, 2>, scalar_prefetch = 0 : i64, scratch_operands = 3 : i64, tpu.core_type = #tpu.core_type<tc>, window_params = [{transform_indices = @transform_0, window_bounds = array<i64: 1, 128, 64>}, {transform_indices = @transform_1, window_bounds = array<i64: 1, 128, 64>}, {transform_indices = @transform_2, window_bounds = array<i64: 1, 128, 64>}, {transform_indices = @transform_3, window_bounds = array<i64: 1, 128, 64>}, {pipeline_mode = #tpu.pipeline_mode<synchronous>, transform_indices = @transform_4, window_bounds = array<i64: 64, 64>}, {pipeline_mode = #tpu.pipeline_mode<synchronous>, transform_indices = @transform_5, window_bounds = array<i64: 1, 64>}, {transform_indices = @transform_6, window_bounds = array<i64: 1, 128, 64>}]} {
    %c0_i32 = arith.constant 0 : i32
    %0 = arith.cmpi eq, %arg2, %c0_i32 : i32
    %1 = arith.extui %0 : i1 to i32
    %c0_i32_0 = arith.constant 0 : i32
    %2 = arith.cmpi ne, %1, %c0_i32_0 : i32
    scf.if %2 {
      %cst_25 = arith.constant 0xFF800000 : f32
      %36 = vector.broadcast %cst_25 : f32 to vector<128x1xf32>
      %c0_26 = arith.constant 0 : index
      %c0_27 = arith.constant 0 : index
      %37 = vector.load %arg10[%c0_26, %c0_27] : memref<128x1xf32, #tpu.memory_space<vmem>>, vector<128x1xf32>
      tpu.vector_store %arg10[%c0_26, %c0_27], %36 {strides = array<i32>} : memref<128x1xf32, #tpu.memory_space<vmem>>, vector<128x1xf32>,
      %cst_28 = arith.constant 0.000000e+00 : f32
      %38 = vector.broadcast %cst_28 : f32 to vector<128x1xf32>
      %c0_29 = arith.constant 0 : index
      %c0_30 = arith.constant 0 : index
      %39 = vector.load %arg11[%c0_29, %c0_30] : memref<128x1xf32, #tpu.memory_space<vmem>>, vector<128x1xf32>
      tpu.vector_store %arg11[%c0_29, %c0_30], %38 {strides = array<i32>} : memref<128x1xf32, #tpu.memory_space<vmem>>, vector<128x1xf32>,
      %cst_31 = arith.constant 0.000000e+00 : f32
      %40 = vector.broadcast %cst_31 : f32 to vector<128x64xf32>
      %c0_32 = arith.constant 0 : index
      %c0_33 = arith.constant 0 : index
      %41 = vector.load %arg12[%c0_32, %c0_33] : memref<128x64xf32, #tpu.memory_space<vmem>>, vector<128x64xf32>
      tpu.vector_store %arg12[%c0_32, %c0_33], %40 {strides = array<i32>} : memref<128x64xf32, #tpu.memory_space<vmem>>, vector<128x64xf32>,
    } else {
    }
    %c0 = arith.constant 0 : index
    %c0_1 = arith.constant 0 : index
    %c0_2 = arith.constant 0 : index
    %3 = vector.load %arg3[%c0, %c0_1, %c0_2] : memref<1x128x64xbf16, #tpu.memory_space<vmem>>, vector<1x128x64xbf16>
    %4 = vector.shape_cast %3 : vector<1x128x64xbf16> to vector<128x64xbf16>
    %c0_3 = arith.constant 0 : index
    %c0_4 = arith.constant 0 : index
    %c0_5 = arith.constant 0 : index
    %5 = vector.load %arg4[%c0_3, %c0_4, %c0_5] : memref<1x128x64xbf16, #tpu.memory_space<vmem>>, vector<1x128x64xbf16>
    %6 = vector.shape_cast %5 : vector<1x128x64xbf16> to vector<128x64xbf16>
    %cst = arith.constant dense<0.000000e+00> : vector<128x128xf32>
    %7 = tpu.matmul %4, %6, %cst {dimension_numbers = #tpu.dot_dimension_numbers<[1], [1], [0], [0], [0, 0, 1, 0], [], []>} : vector<128x64xbf16>, vector<128x64xbf16>, vector<128x128xf32> -> vector<128x128xf32>
    %c0_6 = arith.constant 0 : index
    %c0_7 = arith.constant 0 : index
    %8 = vector.load %arg10[%c0_6, %c0_7] : memref<128x1xf32, #tpu.memory_space<vmem>>, vector<128x1xf32>
    %cst_8 = arith.constant dense<0xFF800000> : vector<128xf32>
    %9 = vector.multi_reduction <maximumf>, %7, %cst_8 [1] : vector<128x128xf32> to vector<128xf32>
    %10 = vector.shape_cast %9 : vector<128xf32> to vector<128x1xf32>
    %11 = arith.maximumf %8, %10 : vector<128x1xf32>
    %12 = arith.subf %8, %11 : vector<128x1xf32>
    %13 = math.exp %12 : vector<128x1xf32>
    %14 = vector.broadcast %11 : vector<128x1xf32> to vector<128x128xf32>
    %15 = arith.subf %7, %14 : vector<128x128xf32>
    %16 = math.exp %15 : vector<128x128xf32>
    %c0_9 = arith.constant 0 : index
    %c0_10 = arith.constant 0 : index
    %17 = vector.load %arg11[%c0_9, %c0_10] : memref<128x1xf32, #tpu.memory_space<vmem>>, vector<128x1xf32>
    %18 = arith.mulf %13, %17 : vector<128x1xf32>
    %cst_11 = arith.constant dense<0.000000e+00> : vector<128xf32>
    %19 = vector.multi_reduction <add>, %16, %cst_11 [1] : vector<128x128xf32> to vector<128xf32>
    %20 = vector.shape_cast %19 : vector<128xf32> to vector<128x1xf32>
    %21 = arith.addf %18, %20 : vector<128x1xf32>
    %c0_12 = arith.constant 0 : index
    %c0_13 = arith.constant 0 : index
    %22 = vector.load %arg11[%c0_12, %c0_13] : memref<128x1xf32, #tpu.memory_space<vmem>>, vector<128x1xf32>
    tpu.vector_store %arg11[%c0_12, %c0_13], %21 {strides = array<i32>} : memref<128x1xf32, #tpu.memory_space<vmem>>, vector<128x1xf32>,
    %c0_14 = arith.constant 0 : index
    %c0_15 = arith.constant 0 : index
    %23 = vector.load %arg12[%c0_14, %c0_15] : memref<128x64xf32, #tpu.memory_space<vmem>>, vector<128x64xf32>
    %24 = vector.broadcast %13 : vector<128x1xf32> to vector<128x64xf32>
    %25 = arith.mulf %24, %23 : vector<128x64xf32>
    %26 = arith.truncf %16 : vector<128x128xf32> to vector<128x128xbf16>
    %c0_16 = arith.constant 0 : index
    %c0_17 = arith.constant 0 : index
    %c0_18 = arith.constant 0 : index
    %27 = vector.load %arg5[%c0_16, %c0_17, %c0_18] : memref<1x128x64xbf16, #tpu.memory_space<vmem>>, vector<1x128x64xbf16>
    %28 = vector.shape_cast %27 : vector<1x128x64xbf16> to vector<128x64xbf16>
    %cst_19 = arith.constant dense<0.000000e+00> : vector<128x64xf32>
    %29 = tpu.matmul %26, %28, %cst_19 {dimension_numbers = #tpu.dot_dimension_numbers<[1], [0], [0], [1], [0, 0, 1, 1], [], []>} : vector<128x128xbf16>, vector<128x64xbf16>, vector<128x64xf32> -> vector<128x64xf32>
    %30 = arith.addf %25, %29 : vector<128x64xf32>
    %c0_20 = arith.constant 0 : index
    %c0_21 = arith.constant 0 : index
    %31 = vector.load %arg12[%c0_20, %c0_21] : memref<128x64xf32, #tpu.memory_space<vmem>>, vector<128x64xf32>
    tpu.vector_store %arg12[%c0_20, %c0_21], %30 {strides = array<i32>} : memref<128x64xf32, #tpu.memory_space<vmem>>, vector<128x64xf32>,
    %c0_22 = arith.constant 0 : index
    %c0_23 = arith.constant 0 : index
    %32 = vector.load %arg10[%c0_22, %c0_23] : memref<128x1xf32, #tpu.memory_space<vmem>>, vector<128x1xf32>
    tpu.vector_store %arg10[%c0_22, %c0_23], %11 {strides = array<i32>} : memref<128x1xf32, #tpu.memory_space<vmem>>, vector<128x1xf32>,
    %c1_i32 = arith.constant 1 : i32
    %33 = arith.cmpi eq, %arg2, %c1_i32 : i32
    %34 = arith.extui %33 : i1 to i32
    %c0_i32_24 = arith.constant 0 : i32
    %35 = arith.cmpi ne, %34, %c0_i32_24 : i32
    scf.if %35 {
      %c0_25 = arith.constant 0 : index
      %c0_26 = arith.constant 0 : index
      %36 = vector.load %arg12[%c0_25, %c0_26] : memref<128x64xf32, #tpu.memory_space<vmem>>, vector<128x64xf32>
      %c0_27 = arith.constant 0 : index
      %c0_28 = arith.constant 0 : index
      %37 = vector.load %arg11[%c0_27, %c0_28] : memref<128x1xf32, #tpu.memory_space<vmem>>, vector<128x1xf32>
      %38 = tpu.reciprocal %37 {approx = true} : vector<128x1xf32> -> vector<128x1xf32>
      %39 = vector.broadcast %38 : vector<128x1xf32> to vector<128x64xf32>
      %40 = arith.mulf %36, %39 : vector<128x64xf32>
      %41 = arith.truncf %40 : vector<128x64xf32> to vector<128x64xbf16>
      %c0_29 = arith.constant 0 : index
      %c0_30 = arith.constant 0 : index
      %42 = vector.load %arg7[%c0_29, %c0_30] : memref<64x64xbf16, #tpu.memory_space<vmem>>, vector<64x64xbf16>
      %cst_31 = arith.constant dense<0.000000e+00> : vector<128x64xf32>
      %43 = tpu.matmul %41, %42, %cst_31 {dimension_numbers = #tpu.dot_dimension_numbers<[1], [0], [0], [1], [0, 0, 1, 1], [], []>} : vector<128x64xbf16>, vector<64x64xbf16>, vector<128x64xf32> -> vector<128x64xf32>
      %c0_32 = arith.constant 0 : index
      %c0_33 = arith.constant 0 : index
      %44 = vector.load %arg8[%c0_32, %c0_33] : memref<1x64xf32, #tpu.memory_space<vmem>>, vector<1x64xf32>
      %45 = vector.broadcast %44 : vector<1x64xf32> to vector<128x64xf32>
      %46 = arith.addf %43, %45 : vector<128x64xf32>
      %c0_34 = arith.constant 0 : index
      %c0_35 = arith.constant 0 : index
      %c0_36 = arith.constant 0 : index
      %47 = vector.load %arg6[%c0_34, %c0_35, %c0_36] : memref<1x128x64xf32, #tpu.memory_space<vmem>>, vector<1x128x64xf32>
      %48 = vector.shape_cast %47 : vector<1x128x64xf32> to vector<128x64xf32>
      %49 = arith.addf %48, %46 : vector<128x64xf32>
      %c0_37 = arith.constant 0 : index
      %c0_38 = arith.constant 0 : index
      %c0_39 = arith.constant 0 : index
      %50 = vector.load %arg9[%c0_37, %c0_38, %c0_39] : memref<1x128x64xf32, #tpu.memory_space<vmem>>, vector<1x128x64xf32>
      %51 = vector.shape_cast %50 : vector<1x128x64xf32> to vector<128x64xf32>
      %52 = vector.shape_cast %49 : vector<128x64xf32> to vector<1x128x64xf32>
      tpu.vector_store %arg9[%c0_37, %c0_38, %c0_39], %52 {strides = array<i32>} : memref<1x128x64xf32, #tpu.memory_space<vmem>>, vector<1x128x64xf32>,
    } else {
    }
    return
  }
  func.func @transform_0(%arg0: i32, %arg1: i32, %arg2: i32) -> (i32, i32, i32) {
    %c0_i32 = arith.constant 0 : i32
    %c0_i32_0 = arith.constant 0 : i32
    return %arg0, %arg1, %c0_i32 : i32, i32, i32
  }
  func.func @transform_1(%arg0: i32, %arg1: i32, %arg2: i32) -> (i32, i32, i32) {
    %c0_i32 = arith.constant 0 : i32
    %c0_i32_0 = arith.constant 0 : i32
    return %arg0, %arg2, %c0_i32 : i32, i32, i32
  }
  func.func @transform_2(%arg0: i32, %arg1: i32, %arg2: i32) -> (i32, i32, i32) {
    %c0_i32 = arith.constant 0 : i32
    %c0_i32_0 = arith.constant 0 : i32
    return %arg0, %arg2, %c0_i32 : i32, i32, i32
  }
  func.func @transform_3(%arg0: i32, %arg1: i32, %arg2: i32) -> (i32, i32, i32) {
    %c0_i32 = arith.constant 0 : i32
    %c0_i32_0 = arith.constant 0 : i32
    return %arg0, %arg1, %c0_i32 : i32, i32, i32
  }
  func.func @transform_4(%arg0: i32, %arg1: i32, %arg2: i32) -> (i32, i32) {
    %c0_i32 = arith.constant 0 : i32
    %c0_i32_0 = arith.constant 0 : i32
    %c0_i32_1 = arith.constant 0 : i32
    return %c0_i32, %c0_i32_0 : i32, i32
  }
  func.func @transform_5(%arg0: i32, %arg1: i32, %arg2: i32) -> (i32, i32) {
    %c0_i32 = arith.constant 0 : i32
    %c0_i32_0 = arith.constant 0 : i32
    %c0_i32_1 = arith.constant 0 : i32
    return %c0_i32, %c0_i32_0 : i32, i32
  }
  func.func @transform_6(%arg0: i32, %arg1: i32, %arg2: i32) -> (i32, i32, i32) {
    %c0_i32 = arith.constant 0 : i32
    %c0_i32_0 = arith.constant 0 : i32
    return %arg0, %arg1, %c0_i32 : i32, i32, i32
  }
}

module attributes {stable_mosaic.version = 11 : i64} {
  func.func @gn_qkv_kernel(%arg0: i32, %arg1: memref<1x256x64xf32, #tpu.memory_space<vmem>>, %arg2: memref<64x8xf32, #tpu.memory_space<vmem>>, %arg3: memref<1x64xf32, #tpu.memory_space<vmem>>, %arg4: memref<1x64xf32, #tpu.memory_space<vmem>>, %arg5: memref<64x192xbf16, #tpu.memory_space<vmem>>, %arg6: memref<1x192xf32, #tpu.memory_space<vmem>>, %arg7: memref<1x256x64xbf16, #tpu.memory_space<vmem>>, %arg8: memref<1x256x64xbf16, #tpu.memory_space<vmem>>, %arg9: memref<1x256x64xbf16, #tpu.memory_space<vmem>>) attributes {dimension_semantics = [#tpu.dimension_semantics<parallel>], iteration_bounds = array<i64: 2>, scalar_prefetch = 0 : i64, scratch_operands = 0 : i64, tpu.core_type = #tpu.core_type<tc>, window_params = [{transform_indices = @transform_0, window_bounds = array<i64: 1, 256, 64>}, {pipeline_mode = #tpu.pipeline_mode<synchronous>, transform_indices = @transform_1, window_bounds = array<i64: 64, 8>}, {pipeline_mode = #tpu.pipeline_mode<synchronous>, transform_indices = @transform_2, window_bounds = array<i64: 1, 64>}, {pipeline_mode = #tpu.pipeline_mode<synchronous>, transform_indices = @transform_3, window_bounds = array<i64: 1, 64>}, {pipeline_mode = #tpu.pipeline_mode<synchronous>, transform_indices = @transform_4, window_bounds = array<i64: 64, 192>}, {pipeline_mode = #tpu.pipeline_mode<synchronous>, transform_indices = @transform_5, window_bounds = array<i64: 1, 192>}, {transform_indices = @transform_6, window_bounds = array<i64: 1, 256, 64>}, {transform_indices = @transform_7, window_bounds = array<i64: 1, 256, 64>}, {transform_indices = @transform_8, window_bounds = array<i64: 1, 256, 64>}]} {
    %c0 = arith.constant 0 : index
    %c0_0 = arith.constant 0 : index
    %c0_1 = arith.constant 0 : index
    %0 = vector.load %arg1[%c0, %c0_0, %c0_1] : memref<1x256x64xf32, #tpu.memory_space<vmem>>, vector<1x256x64xf32>
    %1 = vector.shape_cast %0 : vector<1x256x64xf32> to vector<256x64xf32>
    %c0_2 = arith.constant 0 : index
    %c0_3 = arith.constant 0 : index
    %2 = vector.load %arg2[%c0_2, %c0_3] : memref<64x8xf32, #tpu.memory_space<vmem>>, vector<64x8xf32>
    %cst = arith.constant dense<0.000000e+00> : vector<64xf32>
    %3 = vector.multi_reduction <add>, %1, %cst [0] : vector<256x64xf32> to vector<64xf32>
    %4 = vector.shape_cast %3 : vector<64xf32> to vector<1x64xf32>
    %5 = arith.mulf %1, %1 : vector<256x64xf32>
    %cst_4 = arith.constant dense<0.000000e+00> : vector<64xf32>
    %6 = vector.multi_reduction <add>, %5, %cst_4 [0] : vector<256x64xf32> to vector<64xf32>
    %7 = vector.shape_cast %6 : vector<64xf32> to vector<1x64xf32>
    %cst_5 = arith.constant dense<0.000000e+00> : vector<1x8xf32>
    %8 = tpu.matmul %4, %2, %cst_5 {dimension_numbers = #tpu.dot_dimension_numbers<[1], [0], [0], [1], [0, 0, 1, 1], [], []>} : vector<1x64xf32>, vector<64x8xf32>, vector<1x8xf32> -> vector<1x8xf32>
    %cst_6 = arith.constant dense<0.000000e+00> : vector<1x8xf32>
    %9 = tpu.matmul %7, %2, %cst_6 {dimension_numbers = #tpu.dot_dimension_numbers<[1], [0], [0], [1], [0, 0, 1, 1], [], []>} : vector<1x64xf32>, vector<64x8xf32>, vector<1x8xf32> -> vector<1x8xf32>
    %cst_7 = arith.constant 2.048000e+03 : f32
    %10 = vector.broadcast %cst_7 : f32 to vector<1x8xf32>
    %11 = arith.divf %8, %10 : vector<1x8xf32>
    %cst_8 = arith.constant 2.048000e+03 : f32
    %12 = vector.broadcast %cst_8 : f32 to vector<1x8xf32>
    %13 = arith.divf %9, %12 : vector<1x8xf32>
    %14 = arith.mulf %11, %11 : vector<1x8xf32>
    %15 = arith.subf %13, %14 : vector<1x8xf32>
    %cst_9 = arith.constant 9.99999974E-6 : f32
    %16 = vector.broadcast %cst_9 : f32 to vector<1x8xf32>
    %17 = arith.addf %15, %16 : vector<1x8xf32>
    %18 = math.rsqrt %17 : vector<1x8xf32>
    %c0_10 = arith.constant 0 : index
    %c0_11 = arith.constant 0 : index
    %19 = vector.load %arg3[%c0_10, %c0_11] : memref<1x64xf32, #tpu.memory_space<vmem>>, vector<1x64xf32>
    %cst_12 = arith.constant dense<0.000000e+00> : vector<1x64xf32>
    %20 = tpu.matmul %18, %2, %cst_12 {dimension_numbers = #tpu.dot_dimension_numbers<[1], [1], [0], [0], [0, 0, 1, 0], [], []>} : vector<1x8xf32>, vector<64x8xf32>, vector<1x64xf32> -> vector<1x64xf32>
    %21 = arith.mulf %19, %20 : vector<1x64xf32>
    %c0_13 = arith.constant 0 : index
    %c0_14 = arith.constant 0 : index
    %22 = vector.load %arg4[%c0_13, %c0_14] : memref<1x64xf32, #tpu.memory_space<vmem>>, vector<1x64xf32>
    %c0_15 = arith.constant 0 : index
    %c0_16 = arith.constant 0 : index
    %23 = vector.load %arg3[%c0_15, %c0_16] : memref<1x64xf32, #tpu.memory_space<vmem>>, vector<1x64xf32>
    %24 = arith.mulf %11, %18 : vector<1x8xf32>
    %cst_17 = arith.constant dense<0.000000e+00> : vector<1x64xf32>
    %25 = tpu.matmul %24, %2, %cst_17 {dimension_numbers = #tpu.dot_dimension_numbers<[1], [1], [0], [0], [0, 0, 1, 0], [], []>} : vector<1x8xf32>, vector<64x8xf32>, vector<1x64xf32> -> vector<1x64xf32>
    %26 = arith.mulf %23, %25 : vector<1x64xf32>
    %27 = arith.subf %22, %26 : vector<1x64xf32>
    %28 = vector.broadcast %21 : vector<1x64xf32> to vector<256x64xf32>
    %29 = arith.mulf %1, %28 : vector<256x64xf32>
    %30 = vector.broadcast %27 : vector<1x64xf32> to vector<256x64xf32>
    %31 = arith.addf %29, %30 : vector<256x64xf32>
    %32 = arith.truncf %31 : vector<256x64xf32> to vector<256x64xbf16>
    %c0_18 = arith.constant 0 : index
    %c0_19 = arith.constant 0 : index
    %33 = vector.load %arg5[%c0_18, %c0_19] : memref<64x192xbf16, #tpu.memory_space<vmem>>, vector<64x192xbf16>
    %cst_20 = arith.constant dense<0.000000e+00> : vector<256x192xf32>
    %34 = tpu.matmul %32, %33, %cst_20 {dimension_numbers = #tpu.dot_dimension_numbers<[1], [0], [0], [1], [0, 0, 1, 1], [], []>} : vector<256x64xbf16>, vector<64x192xbf16>, vector<256x192xf32> -> vector<256x192xf32>
    %c0_21 = arith.constant 0 : index
    %c0_22 = arith.constant 0 : index
    %35 = vector.load %arg6[%c0_21, %c0_22] : memref<1x192xf32, #tpu.memory_space<vmem>>, vector<1x192xf32>
    %36 = vector.broadcast %35 : vector<1x192xf32> to vector<256x192xf32>
    %37 = arith.addf %34, %36 : vector<256x192xf32>
    %38 = arith.truncf %37 : vector<256x192xf32> to vector<256x192xbf16>
    %39 = vector.extract_strided_slice %38 {offsets = [0, 0], sizes = [256, 64], strides = [1, 1]} : vector<256x192xbf16> to vector<256x64xbf16>
    %c0_23 = arith.constant 0 : index
    %c0_24 = arith.constant 0 : index
    %c0_25 = arith.constant 0 : index
    %40 = vector.load %arg7[%c0_23, %c0_24, %c0_25] : memref<1x256x64xbf16, #tpu.memory_space<vmem>>, vector<1x256x64xbf16>
    %41 = vector.shape_cast %40 : vector<1x256x64xbf16> to vector<256x64xbf16>
    %42 = vector.shape_cast %39 : vector<256x64xbf16> to vector<1x256x64xbf16>
    tpu.vector_store %arg7[%c0_23, %c0_24, %c0_25], %42 {strides = array<i32>} : memref<1x256x64xbf16, #tpu.memory_space<vmem>>, vector<1x256x64xbf16>,
    %43 = vector.extract_strided_slice %38 {offsets = [0, 64], sizes = [256, 64], strides = [1, 1]} : vector<256x192xbf16> to vector<256x64xbf16>
    %c0_26 = arith.constant 0 : index
    %c0_27 = arith.constant 0 : index
    %c0_28 = arith.constant 0 : index
    %44 = vector.load %arg8[%c0_26, %c0_27, %c0_28] : memref<1x256x64xbf16, #tpu.memory_space<vmem>>, vector<1x256x64xbf16>
    %45 = vector.shape_cast %44 : vector<1x256x64xbf16> to vector<256x64xbf16>
    %46 = vector.shape_cast %43 : vector<256x64xbf16> to vector<1x256x64xbf16>
    tpu.vector_store %arg8[%c0_26, %c0_27, %c0_28], %46 {strides = array<i32>} : memref<1x256x64xbf16, #tpu.memory_space<vmem>>, vector<1x256x64xbf16>,
    %47 = vector.extract_strided_slice %38 {offsets = [0, 128], sizes = [256, 64], strides = [1, 1]} : vector<256x192xbf16> to vector<256x64xbf16>
    %c0_29 = arith.constant 0 : index
    %c0_30 = arith.constant 0 : index
    %c0_31 = arith.constant 0 : index
    %48 = vector.load %arg9[%c0_29, %c0_30, %c0_31] : memref<1x256x64xbf16, #tpu.memory_space<vmem>>, vector<1x256x64xbf16>
    %49 = vector.shape_cast %48 : vector<1x256x64xbf16> to vector<256x64xbf16>
    %50 = vector.shape_cast %47 : vector<256x64xbf16> to vector<1x256x64xbf16>
    tpu.vector_store %arg9[%c0_29, %c0_30, %c0_31], %50 {strides = array<i32>} : memref<1x256x64xbf16, #tpu.memory_space<vmem>>, vector<1x256x64xbf16>,
    return
  }
  func.func @transform_0(%arg0: i32) -> (i32, i32, i32) {
    %c0_i32 = arith.constant 0 : i32
    %c0_i32_0 = arith.constant 0 : i32
    %c0_i32_1 = arith.constant 0 : i32
    return %arg0, %c0_i32, %c0_i32_0 : i32, i32, i32
  }
  func.func @transform_1(%arg0: i32) -> (i32, i32) {
    %c0_i32 = arith.constant 0 : i32
    %c0_i32_0 = arith.constant 0 : i32
    %c0_i32_1 = arith.constant 0 : i32
    return %c0_i32, %c0_i32_0 : i32, i32
  }
  func.func @transform_2(%arg0: i32) -> (i32, i32) {
    %c0_i32 = arith.constant 0 : i32
    %c0_i32_0 = arith.constant 0 : i32
    %c0_i32_1 = arith.constant 0 : i32
    return %c0_i32, %c0_i32_0 : i32, i32
  }
  func.func @transform_3(%arg0: i32) -> (i32, i32) {
    %c0_i32 = arith.constant 0 : i32
    %c0_i32_0 = arith.constant 0 : i32
    %c0_i32_1 = arith.constant 0 : i32
    return %c0_i32, %c0_i32_0 : i32, i32
  }
  func.func @transform_4(%arg0: i32) -> (i32, i32) {
    %c0_i32 = arith.constant 0 : i32
    %c0_i32_0 = arith.constant 0 : i32
    %c0_i32_1 = arith.constant 0 : i32
    return %c0_i32, %c0_i32_0 : i32, i32
  }
  func.func @transform_5(%arg0: i32) -> (i32, i32) {
    %c0_i32 = arith.constant 0 : i32
    %c0_i32_0 = arith.constant 0 : i32
    %c0_i32_1 = arith.constant 0 : i32
    return %c0_i32, %c0_i32_0 : i32, i32
  }
  func.func @transform_6(%arg0: i32) -> (i32, i32, i32) {
    %c0_i32 = arith.constant 0 : i32
    %c0_i32_0 = arith.constant 0 : i32
    %c0_i32_1 = arith.constant 0 : i32
    return %arg0, %c0_i32, %c0_i32_0 : i32, i32, i32
  }
  func.func @transform_7(%arg0: i32) -> (i32, i32, i32) {
    %c0_i32 = arith.constant 0 : i32
    %c0_i32_0 = arith.constant 0 : i32
    %c0_i32_1 = arith.constant 0 : i32
    return %arg0, %c0_i32, %c0_i32_0 : i32, i32, i32
  }
  func.func @transform_8(%arg0: i32) -> (i32, i32, i32) {
    %c0_i32 = arith.constant 0 : i32
    %c0_i32_0 = arith.constant 0 : i32
    %c0_i32_1 = arith.constant 0 : i32
    return %arg0, %c0_i32, %c0_i32_0 : i32, i32, i32
  }
}

</mosaic_0001>

<bundles_post_ra>
// kernel: attn_block_pallas.3
= control target key start
LH: loop header
LB: loop body
LE: loop exit
PB: predicated region body
PF: predicated region fallthrough
CT: control target
= control target key end

     0   :  { %11 = vsyncpa [#allocation6], 0  ;;  %s3212_s0 = inlined_call_operand.vmem [shape: bf16[2,256,64], index: 0, kind: input, shape index: {}]   ;;  %s3213_s1 = inlined_call_operand.vmem [shape: bf16[2,256,64], index: 1, kind: input, shape index: {}]   ;;  %s3214_s2 = inlined_call_operand.vmem [shape: bf16[2,256,64], index: 2, kind: input, shape index: {}]   ;;  %s3215_s3 = inlined_call_operand.vmem [shape: f32[2,256,64], index: 3, kind: input, shape index: {}]   ;;  %s3216_s4 = inlined_call_operand.vmem [shape: bf16[64,64], index: 4, kind: input, shape index: {}]   ;;  %s3217_s5 = inlined_call_operand.vmem [shape: f32[1,64], index: 5, kind: input, shape index: {}]   ;;  %s3218_s6 = inlined_call_operand.hbm [shape: f32[2,256,64], index: 6, kind: output, shape index: {}]  }
   0x1   :  { %13 = vsyncpa [#allocation6 + $0x1], 0  ;;  %s2489_s21 = smov 0   ;;  %s2491_s22 = smov 0  }
   0x2   :  { %s2493_s23 = smov 0   ;;  %s2495_s24 = smov 0  }
   0x3   :  { %s2497_s25 = smov 0   ;;  %s2499_s26 = smov 0  }
   0x4   :  { %s2501_s27 = smov 0   ;;  %s2503_s28 = smov 0  }
   0x5   :  { %s2505_s29 = smov 0   ;;  %s2507_s30 = smov 0  }
   0x6 LB: > { %3230 = sst [smem:[#allocation8_spill]] %s2409_s21  ;;  %s1897_s7 = sadd.s32 4294967295, %s2445_s30   ;;  %s2445_s30 = sphi %s2507_s30, %s19_s30   ;;  %s2441_s29 = sphi %s2505_s29, %s3254_s29   ;;  %s2437_s28 = sphi %s2503_s28, %s3253_s28   ;;  %s2433_s27 = sphi %s2501_s27, %s3252_s27   ;;  %s2429_s26 = sphi %s2499_s26, %s3251_s26   ;;  %s2425_s25 = sphi %s2497_s25, %s3257_s25   ;;  %s2421_s24 = sphi %s2495_s24, %s3249_s24   ;;  %s2417_s23 = sphi %s2493_s23, %s3248_s23   ;;  %s2413_s22 = sphi %s2491_s22, %s3256_s22   ;;  %s2409_s21 = sphi %s2489_s21, %s3255_s21  }
   0x7   : > { %3231 = sst [smem:[#allocation9_spill]] %s2417_s23  ;;  %s1898_s8 = sadd.s32 4294967294, %s2445_s30  }
   0x8   : > { %3232 = sst [smem:[#allocation10_spill]] %s2433_s27  ;;  %s31_s9 = sadd.s32 1, %s2433_s27 }
   0x9   : > { %3233 = sst [smem:[#allocation11_spill]] %s2437_s28  ;;  %p32_p0 = scmp.ge.s32.totalorder %s31_s9, 2 }
   0xa   : > { %3234 = sst [smem:[#allocation12_spill]] %s2441_s29  ;;  %s34_s10 = sadd.s32 1, %s2437_s28 }
   0xb   : > { %3235 = sst [smem:[#allocation13_spill]] %s2445_s30  ;;  %s38_s11 = sadd.s32 1, %s2441_s29 }
   0xc   : > { %p211_p1 = scmp.ne.s32.totalorder %s2417_s23, %s2413_s22  ;;  %s3259_s9 = smov (%p32_p0, %s31_s9), 0 }
   0xd   : > { %3236 = sst [smem:[#allocation14_spill]] %s3259_s9  ;;  %s3261_s10 = smov (!%p32_p0, %s34_s10), %s2437_s28 }
   0xe   : > { %p212_p2 = scmp.eq.s32.totalorder %s1897_s7, 7  ;;  %p217_p3 = scmp.ne.s32.totalorder %s2413_s22, %s2409_s21 }
   0xf   : > { %p36_p4 = scmp.ge.s32.totalorder %s3261_s10, 2  ;;  %p218_p5 = scmp.eq.s32.totalorder %s1898_s8, 7 }
  0x10   : > { %p2551_p6 = por %p212_p2, %p211_p1  ;;  %p1901_p8 = scmp.ge.s32.totalorder %s2445_s30, 1 }
  0x11   : > { %s3263_s10 = smov (%p36_p4, %s3261_s10), 0  ;;  %s3265_s11 = smov (!%p36_p4, %s38_s11), %s2441_s29 }
  0x12   : > { %3238 = sst [smem:[#allocation15_spill]] %s3263_s10  ;;  %p2558_p7 = por %p218_p5, %p217_p3 }
  0x13   : > { %p40_p9 = scmp.ge.s32.totalorder %s3265_s11, 2  ;;  %p294_p10 = scmp.lt.s32.totalorder %s2445_s30, 9 }
  0x14   : > { %s3239_s13 = scalar_select %p2558_p7, 1, 0 }
  0x15   : > { %s197_s14 = ssub.s32 %s2437_s28, %s3263_s10  ;;  %s3267_s11 = smov (%p40_p9, %s3265_s11), 0 }
  0x16   : > { %3240 = sst [smem:[#allocation16_spill]] %s3239_s13  ;;  %p295_p11 = pnand %p1901_p8, %p294_p10 }
  0x17   : > { %3241 = sst [smem:[#allocation17_spill]] %s3267_s11  ;;  %s196_s15 = ssub.s32 %s2441_s29, %s3267_s11 }
  0x18   : > { %s198_s16 = sor.u32 %s197_s14, %s196_s15  ;;  %s201_s17 = sadd.s32 1, %s2417_s23 }
  0x19   : > { %p199_p12 = scmp.eq.s32.totalorder %s198_s16, 0  ;;  %298 = sbr.rel (%p295_p11) target bundleno = 1258 (0x4ea), region = 44 }
  0x1a   : > { %s3224_s19 = sand.u32 (!%p295_p11), 1, %s2413_s22   ;;  %s2576_s20 = sshll.u32 (!%p295_p11), %s2425_s25, 4 }
  0x1b   : > { %s2572_s18 = scalar_select %p199_p12, %s2417_s23, %s201_s17  }
  0x1c   : > { %s1902_s7 = sshll.u32 (!%p295_p11), %s3224_s19, 7  ;;  %p356_p13 = scmp.lt.s32.totalorder (!%p295_p11), %s2429_s26, 1 }
  0x1d   : > { %3242 = sst [smem:[#allocation18_spill]] %s2572_s18  ;;  %p358_p0 = scmp.lt.s32.totalorder (!%p295_p11), %s2576_s20, 31 }
  0x1e   : > { %s357_s8 = scalar_select %p356_p13, %s2429_s26, 1 }
  0x1f   : > { %s359_s14 = scalar_select %p358_p0, %s2576_s20, 31 }
  0x20   : > { %s1904_s15 = sshll.u32 %s357_s8, 5  ;;  %s1906_s16 = sshll.u32 %s2421_s24, 4 }
  0x21   : > { %s361_s17 = sadd.s32 %s1904_s15, %s359_s14  ;;  %p368_p1 = scmp.lt.s32.totalorder %s1906_s16, 31 }
  0x22   : > { %s1905_s11 = sshll.u32 %s361_s17, 2  ;;  %s1914_s10 = sshll.u32 %s361_s17, 3 }
  0x23   : > { %s2588_s28 = scalar_lea.vmem %s3212_s0, %s1905_s11  ;;  %s2593_s18 = scalar_lea.vmem %s3215_s3, %s1914_s10 }
  0x24   : > { %s3269_s16 = smov (!%p368_p1, %s1906_s16), 31  ;;  %s2605_s29 = scalar_lea.vmem [#allocation5], %s1902_s7 }
  0x25   : > { %s371_s19 = sadd.s32 %s1904_s15, %s3269_s16  ;;  %p1915_p2 = scmp.ne.s32.totalorder %s2421_s24, 0 }
  0x26   : > { %s1908_s23 = sshll.u32 %s371_s19, 2 }
  0x27   : > { %s2598_s14 = scalar_lea.vmem %s3213_s1, %s1908_s23  ;;  %s2603_s30 = scalar_lea.vmem %s3214_s2, %s1908_s23 }
  0x28   : > { %400 = sbr.rel (%p1915_p2) target bundleno = 70 (0x46), region = 48 }
  0x2d   : > { %vm401_vm0 = vcmask 7168   ;;  %vm434_vm1 = vcmask 523264   ;;  %v2447_v0 = vmov -inf   ;;  %v2448_v1 = vmov 0.0  }
  0x2e   : > { %402 = vst.msk [vmem:[#allocation2] sm:$0xff] %vm401_vm0, %v2447_v0  ;;  %403 = vst.msk [vmem:[#allocation2 + $0x8] sm:$0xff] %vm401_vm0, %v2447_v0 }
  0x2f   : > { %404 = vst.msk [vmem:[#allocation2 + $0x10] sm:$0xff] %vm401_vm0, %v2447_v0  ;;  %405 = vst.msk [vmem:[#allocation2 + $0x18] sm:$0xff] %vm401_vm0, %v2447_v0 }
  0x30   : > { %406 = vst.msk [vmem:[#allocation2 + $0x20] sm:$0xff] %vm401_vm0, %v2447_v0  ;;  %407 = vst.msk [vmem:[#allocation2 + $0x28] sm:$0xff] %vm401_vm0, %v2447_v0 }
  0x31   : > { %408 = vst.msk [vmem:[#allocation2 + $0x30] sm:$0xff] %vm401_vm0, %v2447_v0  ;;  %409 = vst.msk [vmem:[#allocation2 + $0x38] sm:$0xff] %vm401_vm0, %v2447_v0 }
  0x32   : > { %410 = vst.msk [vmem:[#allocation2 + $0x40] sm:$0xff] %vm401_vm0, %v2447_v0  ;;  %411 = vst.msk [vmem:[#allocation2 + $0x48] sm:$0xff] %vm401_vm0, %v2447_v0 }
  0x33   : > { %412 = vst.msk [vmem:[#allocation2 + $0x50] sm:$0xff] %vm401_vm0, %v2447_v0  ;;  %413 = vst.msk [vmem:[#allocation2 + $0x58] sm:$0xff] %vm401_vm0, %v2447_v0 }
  0x34   : > { %414 = vst.msk [vmem:[#allocation2 + $0x60] sm:$0xff] %vm401_vm0, %v2447_v0  ;;  %415 = vst.msk [vmem:[#allocation2 + $0x68] sm:$0xff] %vm401_vm0, %v2447_v0 }
  0x35   : > { %416 = vst.msk [vmem:[#allocation2 + $0x70] sm:$0xff] %vm401_vm0, %v2447_v0  ;;  %417 = vst.msk [vmem:[#allocation2 + $0x78] sm:$0xff] %vm401_vm0, %v2447_v0 }
  0x36   : > { %418 = vst.msk [vmem:[#allocation3] sm:$0xff] %vm401_vm0, %v2448_v1  ;;  %419 = vst.msk [vmem:[#allocation3 + $0x8] sm:$0xff] %vm401_vm0, %v2448_v1 }
  0x37   : > { %420 = vst.msk [vmem:[#allocation3 + $0x10] sm:$0xff] %vm401_vm0, %v2448_v1  ;;  %421 = vst.msk [vmem:[#allocation3 + $0x18] sm:$0xff] %vm401_vm0, %v2448_v1 }
  0x38   : > { %422 = vst.msk [vmem:[#allocation3 + $0x20] sm:$0xff] %vm401_vm0, %v2448_v1  ;;  %423 = vst.msk [vmem:[#allocation3 + $0x28] sm:$0xff] %vm401_vm0, %v2448_v1 }
  0x39   : > { %424 = vst.msk [vmem:[#allocation3 + $0x30] sm:$0xff] %vm401_vm0, %v2448_v1  ;;  %425 = vst.msk [vmem:[#allocation3 + $0x38] sm:$0xff] %vm401_vm0, %v2448_v1 }
  0x3a   : > { %426 = vst.msk [vmem:[#allocation3 + $0x40] sm:$0xff] %vm401_vm0, %v2448_v1  ;;  %427 = vst.msk [vmem:[#allocation3 + $0x48] sm:$0xff] %vm401_vm0, %v2448_v1 }
  0x3b   : > { %428 = vst.msk [vmem:[#allocation3 + $0x50] sm:$0xff] %vm401_vm0, %v2448_v1  ;;  %429 = vst.msk [vmem:[#allocation3 + $0x58] sm:$0xff] %vm401_vm0, %v2448_v1 }
  0x3c   : > { %430 = vst.msk [vmem:[#allocation3 + $0x60] sm:$0xff] %vm401_vm0, %v2448_v1  ;;  %431 = vst.msk [vmem:[#allocation3 + $0x68] sm:$0xff] %vm401_vm0, %v2448_v1 }
  0x3d   : > { %432 = vst.msk [vmem:[#allocation3 + $0x70] sm:$0xff] %vm401_vm0, %v2448_v1  ;;  %433 = vst.msk [vmem:[#allocation3 + $0x78] sm:$0xff] %vm401_vm0, %v2448_v1 }
  0x3e   : > { %435 = vst.msk [vmem:[#allocation4] sm:$0xff] %vm434_vm1, %v2448_v1  ;;  %436 = vst.msk [vmem:[#allocation4 + $0x8] sm:$0xff] %vm434_vm1, %v2448_v1 }
  0x3f   : > { %437 = vst.msk [vmem:[#allocation4 + $0x10] sm:$0xff] %vm434_vm1, %v2448_v1  ;;  %438 = vst.msk [vmem:[#allocation4 + $0x18] sm:$0xff] %vm434_vm1, %v2448_v1 }
  0x40   : > { %439 = vst.msk [vmem:[#allocation4 + $0x20] sm:$0xff] %vm434_vm1, %v2448_v1  ;;  %440 = vst.msk [vmem:[#allocation4 + $0x28] sm:$0xff] %vm434_vm1, %v2448_v1 }
  0x41   : > { %441 = vst.msk [vmem:[#allocation4 + $0x30] sm:$0xff] %vm434_vm1, %v2448_v1  ;;  %442 = vst.msk [vmem:[#allocation4 + $0x38] sm:$0xff] %vm434_vm1, %v2448_v1 }
  0x42   : > { %443 = vst.msk [vmem:[#allocation4 + $0x40] sm:$0xff] %vm434_vm1, %v2448_v1  ;;  %444 = vst.msk [vmem:[#allocation4 + $0x48] sm:$0xff] %vm434_vm1, %v2448_v1 }
  0x43   : > { %445 = vst.msk [vmem:[#allocation4 + $0x50] sm:$0xff] %vm434_vm1, %v2448_v1  ;;  %446 = vst.msk [vmem:[#allocation4 + $0x58] sm:$0xff] %vm434_vm1, %v2448_v1 }
  0x44   : > { %447 = vst.msk [vmem:[#allocation4 + $0x60] sm:$0xff] %vm434_vm1, %v2448_v1  ;;  %448 = vst.msk [vmem:[#allocation4 + $0x68] sm:$0xff] %vm434_vm1, %v2448_v1 }
  0x45   : > { %449 = vst.msk [vmem:[#allocation4 + $0x70] sm:$0xff] %vm434_vm1, %v2448_v1  ;;  %450 = vst.msk [vmem:[#allocation4 + $0x78] sm:$0xff] %vm434_vm1, %v2448_v1 }
  0x46 PF: > { %v2211_v2 = vld [vmem:[%s2598_s14 + $0x38] sm:$0xff]   ;;  %vm563_vm2 = vcmask 523264   ;;  %v2212_v3 = vld [vmem:[%s2598_s14 + $0x30] sm:$0xff]   ;;  %v2213_v5 = vld [vmem:[%s2598_s14 + $0x28] sm:$0xff]   ;;  %v2449_v33 = vmov 0   ;;  %vm1029_vm3 = vcmask 7168  }
  0x47   : > { %2108 = vmatprep.subr.msk.bf16.mxu0 %vm563_vm2, %v2211_v2  ;;  %v610_v4 = vsel %vm563_vm2, %v2211_v2, 0  ;;  %v607_v6 = vsel %vm563_vm2, %v2212_v3, 0  ;;  %v2219_v7 = vld [vmem:[%s2588_s28] sm:$0xff]   ;;  %v604_v8 = vsel %vm563_vm2, %v2213_v5, 0  ;;  %v2215_v11 = vld [vmem:[%s2598_s14 + $0x18] sm:$0xff]   ;;  %v2216_v13 = vld [vmem:[%s2598_s14 + $0x10] sm:$0xff]   ;;  %2210 = vset.pattern.permute.xlu1 %v2449_v33 }
  0x48   : > { %2013 = vmatpush3.bf16.xpose.msra.mxu0 %v610_v4  ;;  %2028 = vmatprep.mubr.msk.bf16.mxu0 %vm563_vm2, %v2219_v7  ;;  %v2214_v9 = vld [vmem:[%s2598_s14 + $0x20] sm:$0xff]   ;;  %v598_v12 = vsel %vm563_vm2, %v2215_v11, 0  ;;  %v595_v14 = vsel %vm563_vm2, %v2216_v13, 0  ;;  %v2217_v15 = vld [vmem:[%s2598_s14 + $0x8] sm:$0xff]   ;;  %v2221_v20 = vld [vmem:[%s2588_s28 + $0x10] sm:$0xff]   ;;  %p1948_p3 = scmp.ne.s32.totalorder %s2421_s24, 1 }
  0x49   : > { %2109 = vmatprep.subr.msk.bf16.mxu0 %vm563_vm2, %v2212_v3  ;;  %v601_v10 = vsel %vm563_vm2, %v2214_v9, 0  ;;  %v592_v16 = vsel %vm563_vm2, %v2217_v15, 0  ;;  %v2218_v17 = vld [vmem:[%s2598_s14] sm:$0xff]   ;;  %v2220_v19 = vld [vmem:[%s2588_s28 + $0x8] sm:$0xff]   ;;  %v2222_v21 = vld [vmem:[%s2588_s28 + $0x18] sm:$0xff]   ;;  %2209 = vset.pattern.permute.xlu0 %v2449_v33 }
  0x4a   : > { %v589_v18 = vsel %vm563_vm2, %v2218_v17, 0  ;;  %v2223_v22 = vld [vmem:[%s2588_s28 + $0x20] sm:$0xff]   ;;  %v2224_v23 = vld [vmem:[%s2588_s28 + $0x28] sm:$0xff]   ;;  %v2225_v24 = vld [vmem:[%s2588_s28 + $0x30] sm:$0xff]  }
  0x4b   : > { %v2226_v25 = vld [vmem:[%s2588_s28 + $0x38] sm:$0xff]   ;;  %v2745_v44 = vld [vmem:[#allocation2 + $0x10] sm:$0xff]  ;;  %v2748_v47 = vld [vmem:[#allocation2] sm:$0xff] }
  0x4c   : > { %v2227_v43 = vld [vmem:[%s2603_s30 + $0x38] sm:$0xff]   ;;  %v2228_v45 = vld [vmem:[%s2603_s30 + $0x30] sm:$0xff]   ;;  %v2229_v51 = vld [vmem:[%s2603_s30 + $0x28] sm:$0xff]  }
  0x4d   : > { %2044 = vmatprep.subr.bf16.mxu1 %v2227_v43  ;;  %v2753_v50 = vld [vmem:[#allocation2 + $0x18] sm:$0xff]  ;;  %v2762_v54 = vld [vmem:[#allocation2 + $0x8] sm:$0xff]  ;;  %v2230_v57 = vld [vmem:[%s2603_s30 + $0x20] sm:$0xff]  }
  0x4e   : > { %2045 = vmatpush3.bf16.msra.mxu1 %v2227_v43  ;;  %v2777_v59 = vld [vmem:[#allocation2 + $0x20] sm:$0xff]  ;;  %v2781_v61 = vld [vmem:[#allocation2 + $0x38] sm:$0xff]  ;;  %v2788_v1 = vld [vmem:[#allocation2 + $0x30] sm:$0xff] }
  0x4f   : > { %2046 = vmatprep.subr.bf16.mxu1 %v2228_v45  ;;  %v2231_v62 = vld [vmem:[%s2603_s30 + $0x18] sm:$0xff]   ;;  %v2795_v4 = vld [vmem:[#allocation2 + $0x28] sm:$0xff] }
  0x50   : > { %2015 = vmatpush3.bf16.xpose.msra.mxu0 %v607_v6 }
  0x51   : > { %2110 = vmatprep.subr.msk.bf16.mxu0 %vm563_vm2, %v2213_v5  ;;  %v2232_v5 = vld [vmem:[%s2603_s30 + $0x10] sm:$0xff]  }
  0x52   : > { %2047 = vmatpush3.bf16.msra.mxu1 %v2228_v45  ;;  %v2842_v45 = vld [vmem:[#allocation2 + $0x78] sm:$0xff] }
  0x53   : > { %2048 = vmatprep.subr.bf16.mxu1 %v2229_v51 }
  0x56   : > { %2049 = vmatpush3.bf16.msra.mxu1 %v2229_v51  ;;  %v2850_v51 = vld [vmem:[#allocation2 + $0x70] sm:$0xff] }
  0x57   : > { %2050 = vmatprep.subr.bf16.mxu1 %v2230_v57 }
  0x58   : > { %2017 = vmatpush3.bf16.xpose.msra.mxu0 %v604_v8  ;;  %v2803_v8 = vld [vmem:[#allocation2 + $0x40] sm:$0xff] }
  0x59   : > { %2111 = vmatprep.subr.msk.bf16.mxu0 %vm563_vm2, %v2214_v9 }
  0x5a   : > { %2051 = vmatpush3.bf16.msra.mxu1 %v2230_v57 }
  0x5b   : > { %2052 = vmatprep.subr.bf16.mxu1 %v2231_v62 }
  0x5e   : > { %2053 = vmatpush3.bf16.msra.mxu1 %v2231_v62 }
  0x5f   : > { %2054 = vmatprep.subr.bf16.mxu1 %v2232_v5 }
  0x60   : > { %2019 = vmatpush3.bf16.xpose.msra.mxu0 %v601_v10 }
  0x61   : > { %2112 = vmatprep.subr.msk.bf16.mxu0 %vm563_vm2, %v2215_v11  ;;  %v2811_v11 = vld [vmem:[#allocation2 + $0x58] sm:$0xff] }
  0x62   : > { %2055 = vmatpush3.bf16.msra.mxu1 %v2232_v5 }
  0x68   : > { %2021 = vmatpush3.bf16.xpose.msra.mxu0 %v598_v12  ;;  %v2233_v12 = vld [vmem:[%s2603_s30 + $0x8] sm:$0xff]  }
  0x69   : > { %2113 = vmatprep.subr.msk.bf16.mxu0 %vm563_vm2, %v2216_v13  ;;  %2056 = vmatprep.subr.bf16.mxu1 %v2233_v12 }
  0x6a   : > { %2057 = vmatpush3.bf16.msra.mxu1 %v2233_v12 }
  0x70   : > { %2023 = vmatpush3.bf16.xpose.msra.mxu0 %v595_v14 }
  0x71   : > { %2114 = vmatprep.subr.msk.bf16.mxu0 %vm563_vm2, %v2217_v15  ;;  %v2819_v15 = vld [vmem:[#allocation2 + $0x50] sm:$0xff] }
  0x78   : > { %2025 = vmatpush3.bf16.xpose.msra.mxu0 %v592_v16 }
  0x79   : > { %2115 = vmatprep.subr.msk.bf16.mxu0 %vm563_vm2, %v2218_v17 }
  0x80   : > { %2027 = vmatpush3.bf16.xpose.msra.mxu0 %v589_v18 }
  0x87   : > { %2029 = vmatmul.mubr.msk.bf16.vlgmr.msra.gmra.mxu0 %vm563_vm2, %v2220_v19  ;;  %v2827_v19 = vld [vmem:[#allocation2 + $0x48] sm:$0xff] }
  0x88   : > { %2032 = vmatprep.mubr.msk.bf16.mxu0 %vm563_vm2, %v2221_v20  ;;  %v2234_v20 = vld [vmem:[%s2603_s30] sm:$0xff]  }
  0x89   : > { %2058 = vmatprep.subr.bf16.mxu1 %v2234_v20 }
  0x8a   : > { %2059 = vmatpush3.bf16.msra.mxu1 %v2234_v20 }
  0x8f   : > { %2033 = vmatmul.mubr.msk.bf16.gmra.mxu0 %vm563_vm2, %v2222_v21 }
  0x90   : > { %2036 = vmatprep.mubr.msk.bf16.mxu0 %vm563_vm2, %v2223_v22 }
  0x97   : > { %2037 = vmatmul.mubr.msk.bf16.gmra.mxu0 %vm563_vm2, %v2224_v23 }
  0x98   : > { %2040 = vmatprep.mubr.msk.bf16.mxu0 %vm563_vm2, %v2225_v24  ;;  %v2836_v24 = vld [vmem:[#allocation2 + $0x60] sm:$0xff] }
  0x9f   : > { %2041 = vmatmul.mubr.msk.bf16.gmra.mxu0 %vm563_vm2, %v2226_v25 }
 0x147   : > { %v2696_v26 = vpop.f32.mrf.mxu0 }
 0x148   : > { %729 = vmax.xlane.f32.xlu1 %v2696_v26 }
 0x149   : > { %v2699_v27 = vpop.f32.mrf.mxu0 }
 0x14a   : > { %725 = vmax.xlane.f32.xlu0 %v2699_v27 }
 0x14b   : > { %v2702_v28 = vpop.f32.mrf.mxu0 }
 0x14c   : > { %731 = vmax.xlane.f32.xlu1 %v2702_v28 }
 0x14d   : > { %v2705_v29 = vpop.f32.mrf.mxu0 }
 0x14e   : > { %727 = vmax.xlane.f32.xlu0 %v2705_v29 }
 0x14f   : > { %v2708_v30 = vpop.f32.mrf.mxu0 }
 0x151   : > { %v2710_v31 = vpop.f32.mrf.mxu0 }
 0x152   : > { %733 = vmax.xlane.f32.xlu0 %v2710_v31 }
 0x153   : > { %v2713_v32 = vpop.f32.mrf.mxu0 }
 0x154   : > { %739 = vmax.xlane.f32.xlu1 %v2713_v32 }
 0x155   : > { %v2716_v34 = vpop.f32.mrf.mxu0 }
 0x156   : > { %737 = vmax.xlane.f32.xlu0 %v2708_v30 }
 0x157   : > { %v2719_v35 = vpop.f32.mrf.mxu0 }
 0x158   : > { %735 = vmax.xlane.f32.xlu1 %v2716_v34 }
 0x159   : > { %v2722_v36 = vpop.f32.mrf.mxu0 }
 0x15a   : > { %741 = vmax.xlane.f32.xlu0 %v2722_v36 }
 0x15b   : > { %v2725_v37 = vpop.f32.mrf.mxu0 }
 0x15c   : > { %747 = vmax.xlane.f32.xlu1 %v2725_v37 }
 0x15d   : > { %v2728_v38 = vpop.f32.mrf.mxu0 }
 0x15e   : > { %745 = vmax.xlane.f32.xlu0 %v2719_v35 }
 0x15f   : > { %v2731_v39 = vpop.f32.mrf.mxu0 }
 0x160   : > { %743 = vmax.xlane.f32.xlu1 %v2728_v38 }
 0x161   : > { %v2734_v40 = vpop.f32.mrf.mxu0 }
 0x162   : > { %749 = vmax.xlane.f32.xlu0 %v2734_v40 }
 0x163   : > { %v2737_v41 = vpop.f32.mrf.mxu0 }
 0x164   : > { %755 = vmax.xlane.f32.xlu1 %v2737_v41 }
 0x165   : > { %v2741_v42 = vpop.f32.mrf.mxu0 }
 0x166   : > { %753 = vmax.xlane.f32.xlu0 %v2731_v39 }
 0x168   : > { %751 = vmax.xlane.f32.xlu1 %v2741_v42 }
 0x1d1   : > { %v730_v46 = vpop.xlane.xlu1 %729 }
 0x1d2   : > { %v2751_v48 = vmax.f32 %v2745_v44, %v730_v46 }
 0x1d3   : > { %v726_v49 = vpop.xlane.xlu0 %725 }
 0x1d4   : > { %1361 = vst.msk [vmem:[#allocation2 + $0x10] sm:$0xff] %vm1029_vm3, %v2751_v48  ;;  %v2759_v52 = vmax.f32 %v2748_v47, %v726_v49  ;;  %833 = vperm.xlu1 %2210, %v2751_v48  }
 0x1d5   : > { %v732_v53 = vpop.xlane.xlu1 %731 }
 0x1d6   : > { %1359 = vst.msk [vmem:[#allocation2] sm:$0xff] %vm1029_vm3, %v2759_v52  ;;  %v2767_v55 = vmax.f32 %v2753_v50, %v732_v53  ;;  %823 = vperm.xlu0 %2209, %v2759_v52   ;;  %v773_v16 = vsub.f32 %v2748_v47, %v2759_v52 }
 0x1d7   : > { %v728_v56 = vpop.xlane.xlu0 %727 }
 0x1d8   : > { %1362 = vst.msk [vmem:[#allocation2 + $0x18] sm:$0xff] %vm1029_vm3, %v2767_v55  ;;  %v2774_v58 = vmax.f32 %v2762_v54, %v728_v56  ;;  %838 = vperm.xlu1 %2210, %v2767_v55   ;;  %v776_v22 = vsub.f32 %v2753_v50, %v2767_v55  ;;  %v789_v25 = vmul.f32 1.442695, %v773_v16  ;;  %v722_v55 = vld [vmem:[#allocation2 + $0x68] sm:$0xff]  ;;  %v775_v56 = vsub.f32 %v2745_v44, %v2751_v48 }
 0x1da   : > { %1360 = vst.msk [vmem:[#allocation2 + $0x8] sm:$0xff] %vm1029_vm3, %v2774_v58  ;;  %v774_v46 = vsub.f32 %v2762_v54, %v2774_v58  ;;  %v795_v49 = vmul.f32 1.442695, %v776_v22  ;;  %2235 = vpow2.f32 %v789_v25 }
 0x1db   : > { %v734_v60 = vpop.xlane.xlu0 %733 }
 0x1dc   : > { %v2785_v63 = vmax.f32 %v2777_v59, %v734_v60  ;;  %828 = vperm.xlu1 %2210, %v2774_v58   ;;  %v791_v57 = vmul.f32 1.442695, %v774_v46  ;;  %2237 = vpow2.f32 %v795_v49 }
 0x1dd   : > { %v740_v0 = vpop.xlane.xlu1 %739 }
 0x1de   : > { %1363 = vst.msk [vmem:[#allocation2 + $0x20] sm:$0xff] %vm1029_vm3, %v2785_v63  ;;  %v2793_v2 = vmax.f32 %v2781_v61, %v740_v0  ;;  %2239 = vpow2.f32 %v791_v57 }
 0x1df   : > { %v738_v3 = vpop.xlane.xlu0 %737 }
 0x1e0   : > { %1366 = vst.msk [vmem:[#allocation2 + $0x38] sm:$0xff] %vm1029_vm3, %v2793_v2  ;;  %v2801_v6 = vmax.f32 %v2788_v1, %v738_v3  ;;  %v780_v52 = vsub.f32 %v2781_v61, %v2793_v2  ;;  %v777_v3 = vsub.f32 %v2777_v59, %v2785_v63 }
 0x1e1   : > { %v736_v7 = vpop.xlane.xlu1 %735 }
 0x1e2   : > { %1365 = vst.msk [vmem:[#allocation2 + $0x30] sm:$0xff] %vm1029_vm3, %v2801_v6  ;;  %v2808_v9 = vmax.f32 %v2795_v4, %v736_v7  ;;  %853 = vperm.xlu1 %2210, %v2801_v6   ;;  %v803_v62 = vmul.f32 1.442695, %v780_v52  ;;  %v797_v7 = vmul.f32 1.442695, %v777_v3 }
 0x1e3   : > { %v742_v10 = vpop.xlane.xlu0 %741 }
 0x1e4   : > { %1364 = vst.msk [vmem:[#allocation2 + $0x28] sm:$0xff] %vm1029_vm3, %v2808_v9  ;;  %v2817_v13 = vmax.f32 %v2803_v8, %v742_v10  ;;  %v778_v0 = vsub.f32 %v2795_v4, %v2808_v9  ;;  %2241 = vpow2.f32 %v803_v62 }
 0x1e5   : > { %v748_v14 = vpop.xlane.xlu1 %747 }
 0x1e6   : > { %1367 = vst.msk [vmem:[#allocation2 + $0x40] sm:$0xff] %vm1029_vm3, %v2817_v13  ;;  %v768_v17 = vmax.f32 %v2811_v11, %v748_v14  ;;  %843 = vperm.xlu1 %2210, %v2785_v63   ;;  %v799_v5 = vmul.f32 1.442695, %v778_v0  ;;  %v781_v16 = vsub.f32 %v2803_v8, %v2817_v13 }
 0x1e7   : > { %v746_v18 = vpop.xlane.xlu0 %745  ;;  %v2886_v63 = vpop.eup %2235 }
 0x1e8   : > { %1370 = vst.msk [vmem:[#allocation2 + $0x58] sm:$0xff] %vm1029_vm3, %v768_v17  ;;  %v2832_v21 = vmax.f32 %v2819_v15, %v746_v18  ;;  %v784_v4 = vsub.f32 %v2811_v11, %v768_v17  ;;  %v805_v20 = vmul.f32 1.442695, %v781_v16 }
 0x1e9   : > { %v744_v23 = vpop.xlane.xlu1 %743  ;;  %v2891_v14 = vpop.eup %2237 }
 0x1ea   : > { %1369 = vst.msk [vmem:[#allocation2 + $0x50] sm:$0xff] %vm1029_vm3, %v2832_v21  ;;  %v766_v33 = vmax.f32 %v2827_v19, %v744_v23  ;;  %848 = vperm.xlu1 %2210, %v2808_v9   ;;  %v779_v9 = vsub.f32 %v2788_v1, %v2801_v6  ;;  %v811_v10 = vmul.f32 1.442695, %v784_v4  ;;  %v783_v11 = vsub.f32 %v2819_v15, %v2832_v21 }
 0x1eb   : > { %v750_v43 = vpop.xlane.xlu0 %749  ;;  %v2897_v18 = vpop.eup %2239 }
 0x1ec   : > { %1368 = vst.msk [vmem:[#allocation2 + $0x48] sm:$0xff] %vm1029_vm3, %v766_v33  ;;  %v2848_v47 = vmax.f32 %v2836_v24, %v750_v43  ;;  %868 = vperm.xlu0 %2209, %v766_v33   ;;  %v782_v59 = vsub.f32 %v2827_v19, %v766_v33  ;;  %v801_v12 = vmul.f32 1.442695, %v779_v9 }
 0x1ed   : > { %v756_v50 = vpop.xlane.xlu1 %755 }
 0x1ee   : > { %1371 = vst.msk [vmem:[#allocation2 + $0x60] sm:$0xff] %vm1029_vm3, %v2848_v47  ;;  %v2857_v53 = vmax.f32 %v2842_v45, %v756_v50  ;;  %858 = vperm.xlu1 %2210, %v2793_v2   ;;  %v793_v2 = vmul.f32 1.442695, %v775_v56  ;;  %v807_v1 = vmul.f32 1.442695, %v782_v59 }
 0x1ef   : > { %v754_v54 = vpop.xlane.xlu0 %753 }
 0x1f0   : > { %v788_v58 = vsub.f32 %v2842_v45, %v2857_v53  ;;  %1374 = vst.msk [vmem:[#allocation2 + $0x78] sm:$0xff] %vm1029_vm3, %v2857_v53  ;;  %v2867_v60 = vmax.f32 %v2850_v51, %v754_v54  ;;  %878 = vperm.xlu0 %2209, %v768_v17   ;;  %2243 = vpow2.f32 %v793_v2  ;;  %v809_v17 = vmul.f32 1.442695, %v783_v11 }
 0x1f1   : > { %v752_v61 = vpop.xlane.xlu1 %751  ;;  %2245 = vpow2.f32 %v799_v5  ;;  %v2900_v19 = vpop.eup %2241 }
 0x1f2   : > { %v787_v44 = vsub.f32 %v2850_v51, %v2867_v60  ;;  %1373 = vst.msk [vmem:[#allocation2 + $0x70] sm:$0xff] %vm1029_vm3, %v2867_v60  ;;  %v770_v48 = vmax.f32 %v722_v55, %v752_v61  ;;  %863 = vperm.xlu1 %2210, %v2817_v13   ;;  %2247 = vpow2.f32 %v797_v7 }
 0x1f3   : > { %2249 = vpow2.f32 %v811_v10 }
 0x1f4   : > { %1372 = vst.msk [vmem:[#allocation2 + $0x68] sm:$0xff] %vm1029_vm3, %v770_v48  ;;  %888 = vperm.xlu0 %2209, %v770_v48   ;;  %v786_v6 = vsub.f32 %v722_v55, %v770_v48  ;;  %2251 = vpow2.f32 %v801_v12 }
 0x1f5   : > { %2253 = vpow2.f32 %v807_v1 }
 0x1f6   : > { %873 = vperm.xlu1 %2210, %v2832_v21   ;;  %v815_v15 = vmul.f32 1.442695, %v786_v6  ;;  %2255 = vpow2.f32 %v809_v17  ;;  %v785_v21 = vsub.f32 %v2836_v24, %v2848_v47 }
 0x1f8   : > { %898 = vperm.xlu0 %2209, %v2857_v53   ;;  %2257 = vpow2.f32 %v815_v15  ;;  %v813_v13 = vmul.f32 1.442695, %v785_v21 }
 0x1f9   : > { %2259 = vpow2.f32 %v805_v20 }
 0x1fa   : > { %883 = vperm.xlu1 %2210, %v2848_v47   ;;  %2261 = vpow2.f32 %v813_v13 }
 0x1fc   : > { %1064 = vperm.xlu0 %2209, %v2886_v63  }
 0x1fd   : > { %v2905_v22 = vpop.eup %2243 }
 0x1fe   : > { %893 = vperm.xlu1 %2210, %v2867_v60   ;;  %v2908_v8 = vpop.eup %2245 }
 0x1ff   : > { %v2911_v23 = vpop.eup %2247 }
 0x200   : > { %1079 = vperm.xlu0 %2209, %v2891_v14   ;;  %v2914_v25 = vpop.eup %2249 }
 0x201   : > { %v2917_v24 = vpop.eup %2251 }
 0x202   : > { %1069 = vperm.xlu1 %2210, %v2897_v18   ;;  %v2920_v33 = vpop.eup %2253 }
 0x203   : > { %v2923_v43 = vpop.eup %2255 }
 0x204   : > { %1099 = vperm.xlu0 %2209, %v2900_v19  }
 0x205   : > { %v2926_v46 = vpop.eup %2257 }
 0x206   : > { %1074 = vperm.xlu1 %2210, %v2905_v22   ;;  %v2929_v47 = vpop.eup %2259 }
 0x207   : > { %v2932_v49 = vpop.eup %2261 }
 0x208   : > { %1089 = vperm.xlu0 %2209, %v2908_v8  }
 0x20a   : > { %1084 = vperm.xlu1 %2210, %v2911_v23  }
 0x20c   : > { %1119 = vperm.xlu0 %2209, %v2914_v25  }
 0x20e   : > { %1094 = vperm.xlu1 %2210, %v2917_v24  }
 0x210   : > { %1109 = vperm.xlu0 %2209, %v2920_v33  }
 0x212   : > { %1114 = vperm.xlu1 %2210, %v2923_v43  }
 0x214   : > { %1129 = vperm.xlu0 %2209, %v2926_v46  }
 0x216   : > { %1104 = vperm.xlu1 %2210, %v2929_v47  }
 0x21a   : > { %1124 = vperm.xlu1 %2210, %v2932_v49  }
 0x24f   : > { %v834_v50 = vpop.permute.xlu1 %833 }
 0x250   : > { %v903_v52 = vsub.f32 %v2696_v26, %v834_v50 }
 0x251   : > { %v824_v54 = vpop.permute.xlu0 %823 }
 0x252   : > { %v921_v55 = vmul.f32 1.442695, %v903_v52  ;;  %v901_v56 = vsub.f32 %v2699_v27, %v824_v54 }
 0x253   : > { %v839_v57 = vpop.permute.xlu1 %838 }
 0x254   : > { %2263 = vpow2.f32 %v921_v55  ;;  %v917_v61 = vmul.f32 1.442695, %v901_v56  ;;  %v904_v62 = vsub.f32 %v2702_v28, %v839_v57 }
 0x256   : > { %2265 = vpow2.f32 %v917_v61  ;;  %v923_v0 = vmul.f32 1.442695, %v904_v62 }
 0x257   : > { %v829_v48 = vpop.permute.xlu1 %828 }
 0x258   : > { %v902_v2 = vsub.f32 %v2705_v29, %v829_v48  ;;  %2267 = vpow2.f32 %v923_v0 }
 0x25a   : > { %v919_v3 = vmul.f32 1.442695, %v902_v2 }
 0x25c   : > { %2269 = vpow2.f32 %v919_v3 }
 0x25d   : > { %v854_v5 = vpop.permute.xlu1 %853 }
 0x25e   : > { %v907_v26 = vsub.f32 %v2708_v30, %v854_v5 }
 0x260   : > { %v929_v4 = vmul.f32 1.442695, %v907_v26 }
 0x261   : > { %v2264_v7 = vpop.eup %2263  ;;  %v844_v9 = vpop.permute.xlu1 %843 }
 0x262   : > { %2271 = vpow2.f32 %v929_v4  ;;  %v905_v27 = vsub.f32 %v2710_v31, %v844_v9  ;;  %985 = vadd.xlane.f32.xlu0 %v2264_v7 }
 0x263   : > { %v2266_v10 = vpop.eup %2265 }
 0x264   : > { %v925_v28 = vmul.f32 1.442695, %v905_v27  ;;  %981 = vadd.xlane.f32.xlu1 %v2266_v10 }
 0x265   : > { %v849_v59 = vpop.permute.xlu1 %848  ;;  %v2268_v12 = vpop.eup %2267 }
 0x266   : > { %2273 = vpow2.f32 %v925_v28  ;;  %v906_v29 = vsub.f32 %v2716_v34, %v849_v59  ;;  %v1159_v20 = vpack.c.bf16 %v2268_v12, %v2264_v7 }
 0x267   : > { %v869_v11 = vpop.permute.xlu0 %868 }
 0x268   : > { %v927_v1 = vmul.f32 1.442695, %v906_v29  ;;  %987 = vadd.xlane.f32.xlu1 %v2268_v12  ;;  %v910_v30 = vsub.f32 %v2728_v38, %v869_v11 }
 0x269   : > { %v2270_v6 = vpop.eup %2269  ;;  %v859_v16 = vpop.permute.xlu1 %858 }
 0x26a   : > { %2275 = vpow2.f32 %v927_v1  ;;  %v908_v17 = vsub.f32 %v2713_v32, %v859_v16  ;;  %983 = vadd.xlane.f32.xlu0 %v2270_v6  ;;  %v1158_v31 = vpack.c.bf16 %v2270_v6, %v2266_v10  ;;  %v935_v13 = vmul.f32 1.442695, %v910_v30 }
 0x26b   : > { %v879_v15 = vpop.permute.xlu0 %878 }
 0x26c   : > { %v931_v21 = vmul.f32 1.442695, %v908_v17  ;;  %2060 = vmatprep.mubr.bf16.mxu1 %v1158_v31  ;;  %v912_v34 = vsub.f32 %v2725_v37, %v879_v15  ;;  %v817_v17 = vmul.f32 1.442695, %v787_v44  ;;  %v819_v31 = vmul.f32 1.442695, %v788_v58 }
 0x26d   : > { %2061 = vmatmul.mubr.bf16.vlgmr.msra.gmra.mxu1 %v1159_v20  ;;  %v864_v50 = vpop.permute.xlu1 %863 }
 0x26e   : > { %2277 = vpow2.f32 %v931_v21  ;;  %v909_v52 = vsub.f32 %v2722_v36, %v864_v50  ;;  %v939_v32 = vmul.f32 1.442695, %v912_v34 }
 0x26f   : > { %v2272_v54 = vpop.eup %2271  ;;  %v889_v38 = vpop.permute.xlu0 %888  ;;  %2279 = vpow2.f32 %v935_v13 }
 0x270   : > { %v933_v55 = vmul.f32 1.442695, %v909_v52  ;;  %993 = vadd.xlane.f32.xlu0 %v2272_v54  ;;  %v914_v56 = vsub.f32 %v2741_v42, %v889_v38 }
 0x271   : > { %v874_v57 = vpop.permute.xlu1 %873 }
 0x272   : > { %2281 = vpow2.f32 %v933_v55  ;;  %v911_v61 = vsub.f32 %v2719_v35, %v874_v57  ;;  %v943_v48 = vmul.f32 1.442695, %v914_v56  ;;  %v951_v55 = vld [vmem:[#allocation3 + $0x10] sm:$0xff]  ;;  %v949_v56 = vld [vmem:[#allocation3] sm:$0xff] }
 0x273   : > { %v2274_v62 = vpop.eup %2273  ;;  %v899_v0 = vpop.permute.xlu0 %898  ;;  %2283 = vpow2.f32 %v939_v32  ;;  %v967_v57 = vmul.f32 %v2905_v22, %v951_v55 }
 0x274   : > { %v937_v37 = vmul.f32 1.442695, %v911_v61  ;;  %989 = vadd.xlane.f32.xlu0 %v2274_v62  ;;  %v916_v36 = vsub.f32 %v2737_v41, %v899_v0  ;;  %v965_v0 = vmul.f32 %v2886_v63, %v949_v56 }
 0x275   : > { %v884_v2 = vpop.permute.xlu1 %883 }
 0x276   : > { %2285 = vpow2.f32 %v937_v37  ;;  %v913_v3 = vsub.f32 %v2734_v40, %v884_v2  ;;  %v947_v42 = vmul.f32 1.442695, %v916_v36  ;;  %v950_v2 = vld [vmem:[#allocation3 + $0x8] sm:$0xff] }
 0x277   : > { %v2276_v5 = vpop.eup %2275  ;;  %2287 = vpow2.f32 %v943_v48  ;;  %v2963_v21 = vpop.permute.xlu0 %1064  ;;  %v952_v48 = vld [vmem:[#allocation3 + $0x18] sm:$0xff] }
 0x278   : > { %v941_v26 = vmul.f32 1.442695, %v913_v3  ;;  %v1160_v4 = vpack.c.bf16 %v2276_v5, %v2274_v62  ;;  %v968_v3 = vmul.f32 %v2891_v14, %v952_v48 }
 0x279   : > { %v894_v7 = vpop.permute.xlu1 %893 }
 0x27a   : > { %2289 = vpow2.f32 %v941_v26  ;;  %v915_v35 = vsub.f32 %v2731_v39, %v894_v7  ;;  %2064 = vmatprep.mubr.bf16.mxu1 %v1160_v4  ;;  %v966_v4 = vmul.f32 %v2897_v18, %v950_v2  ;;  %v955_v7 = vld [vmem:[#allocation3 + $0x30] sm:$0xff]  ;;  %v956_v18 = vld [vmem:[#allocation3 + $0x38] sm:$0xff] }
 0x27b   : > { %v2278_v9 = vpop.eup %2277  ;;  %2291 = vpow2.f32 %v947_v42  ;;  %v2967_v60 = vpop.permute.xlu0 %1079  ;;  %v971_v63 = vmul.f32 %v2917_v24, %v955_v7 }
 0x27c   : > { %v945_v27 = vmul.f32 1.442695, %v915_v35  ;;  %995 = vadd.xlane.f32.xlu1 %v2278_v9  ;;  %v1161_v10 = vpack.c.bf16 %v2278_v9, %v2272_v54  ;;  %v2280_v41 = vpop.eup %2279  ;;  %v953_v9 = vld [vmem:[#allocation3 + $0x20] sm:$0xff] }
 0x27d   : > { %v2965_v51 = vpop.permute.xlu1 %1069  ;;  %v969_v14 = vmul.f32 %v2911_v23, %v953_v9  ;;  %v1049_v9 = vld [vmem:[#allocation4 + $0x18] sm:$0xff] }
 0x27e   : > { %2293 = vpow2.f32 %v945_v27  ;;  %2065 = vmatmul.mubr.bf16.gmra.mxu1 %v1161_v10 }
 0x27f   : > { %v2282_v28 = vpop.eup %2281  ;;  %2295 = vpow2.f32 %v817_v17  ;;  %v2971_v13 = vpop.permute.xlu0 %1099  ;;  %v958_v17 = vld [vmem:[#allocation3 + $0x48] sm:$0xff] }
 0x280   : > { %991 = vadd.xlane.f32.xlu1 %v2276_v5  ;;  %v1162_v40 = vpack.c.bf16 %v2280_v41, %v2282_v28  ;;  %v2284_v59 = vpop.eup %2283  ;;  %2297 = vpow2.f32 %v819_v31  ;;  %v974_v56 = vmul.f32 %v2920_v33, %v958_v17 }
 0x281   : > { %v2969_v44 = vpop.permute.xlu1 %1074 }
 0x282   : > { %2068 = vmatprep.mubr.bf16.mxu1 %v1162_v40 }
 0x283   : > { %v2286_v29 = vpop.eup %2285  ;;  %v2975_v53 = vpop.permute.xlu0 %1089 }
 0x284   : > { %1003 = vadd.xlane.f32.xlu1 %v2284_v59  ;;  %1001 = vadd.xlane.f32.xlu0 %v2286_v29  ;;  %v1163_v12 = vpack.c.bf16 %v2284_v59, %v2286_v29  ;;  %v2288_v11 = vpop.eup %2287  ;;  %v954_v59 = vld [vmem:[#allocation3 + $0x28] sm:$0xff] }
 0x285   : > { %v2973_v45 = vpop.permute.xlu1 %1084  ;;  %v970_v24 = vmul.f32 %v2908_v8, %v954_v59 }
 0x286   : > { %2069 = vmatmul.mubr.bf16.gmra.mxu1 %v1163_v12 }
 0x287   : > { %v2290_v39 = vpop.eup %2289  ;;  %v2979_v34 = vpop.permute.xlu0 %1119 }
 0x288   : > { %999 = vadd.xlane.f32.xlu1 %v2280_v41  ;;  %997 = vadd.xlane.f32.xlu0 %v2282_v28  ;;  %v1164_v1 = vpack.c.bf16 %v2288_v11, %v2290_v39  ;;  %v2292_v6 = vpop.eup %2291  ;;  %v972_v28 = vmul.f32 %v2900_v19, %v956_v18  ;;  %v957_v19 = vld [vmem:[#allocation3 + $0x40] sm:$0xff] }
 0x289   : > { %v2977_v58 = vpop.permute.xlu1 %1094  ;;  %v973_v8 = vmul.f32 %v2929_v47, %v957_v19  ;;  %v962_v47 = vld [vmem:[#allocation3 + $0x68] sm:$0xff] }
 0x28a   : > { %2072 = vmatprep.mubr.bf16.mxu1 %v1164_v1 }
 0x28b   : > { %v2294_v30 = vpop.eup %2293  ;;  %v2983_v52 = vpop.permute.xlu0 %1109 }
 0x28c   : > { %1011 = vadd.xlane.f32.xlu1 %v2292_v6  ;;  %1009 = vadd.xlane.f32.xlu0 %v2294_v30  ;;  %v1165_v16 = vpack.c.bf16 %v2292_v6, %v2294_v30  ;;  %v2957_v15 = vpop.eup %2295 }
 0x28d   : > { %v2960_v20 = vpop.eup %2297  ;;  %v2981_v50 = vpop.permute.xlu1 %1114 }
 0x28e   : > { %2073 = vmatmul.mubr.bf16.gmra.mxu1 %v1165_v16 }
 0x28f   : > { %v2987_v38 = vpop.permute.xlu0 %1129 }
 0x290   : > { %1007 = vadd.xlane.f32.xlu1 %v2288_v11  ;;  %1005 = vadd.xlane.f32.xlu0 %v2290_v39  ;;  %v959_v11 = vld [vmem:[#allocation3 + $0x50] sm:$0xff]  ;;  %v960_v39 = vld [vmem:[#allocation3 + $0x58] sm:$0xff] }
 0x291   : > { %v2985_v54 = vpop.permute.xlu1 %1104  ;;  %v975_v23 = vmul.f32 %v2923_v43, %v959_v11  ;;  %v976_v6 = vmul.f32 %v2914_v25, %v960_v39  ;;  %v964_v43 = vld [vmem:[#allocation3 + $0x78] sm:$0xff] }
 0x292   : > { %v980_v48 = vmul.f32 %v2960_v20, %v964_v43 }
 0x295   : > { %v2989_v32 = vpop.permute.xlu1 %1124 }
 0x2a1   : > { %1134 = vperm.xlu1 %2210, %v2957_v15  }
 0x2a6   : > { %1139 = vperm.xlu0 %2209, %v2960_v20   ;;  %v1048_v20 = vld [vmem:[#allocation4 + $0x10] sm:$0xff] }
 0x2eb   : > { %v986_v61 = vpop.xlane.xlu0 %985 }
 0x2ec   : > { %v1015_v62 = vadd.f32 %v986_v61, %v967_v57 }
 0x2ed   : > { %v982_v37 = vpop.xlane.xlu1 %981 }
 0x2ee   : > { %1032 = vst.msk [vmem:[#allocation3 + $0x10] sm:$0xff] %vm1029_vm3, %v1015_v62  ;;  %v1013_v36 = vadd.f32 %v982_v37, %v965_v0  ;;  %v963_v62 = vld [vmem:[#allocation3 + $0x70] sm:$0xff] }
 0x2ef   : > { %v979_v37 = vmul.f32 %v2957_v15, %v963_v62  ;;  %v1055_v62 = vld [vmem:[#allocation4 + $0x48] sm:$0xff] }
 0x2f0   : > { %1030 = vst.msk [vmem:[#allocation3] sm:$0xff] %vm1029_vm3, %v1013_v36 }
 0x2f1   : > { %v988_v5 = vpop.xlane.xlu1 %987 }
 0x2f2   : > { %v1016_v26 = vadd.f32 %v988_v5, %v968_v3  ;;  %v961_v3 = vld [vmem:[#allocation3 + $0x60] sm:$0xff] }
 0x2f3   : > { %v984_v42 = vpop.xlane.xlu0 %983 }
 0x2f4   : > { %1033 = vst.msk [vmem:[#allocation3 + $0x18] sm:$0xff] %vm1029_vm3, %v1016_v26  ;;  %v1014_v22 = vadd.f32 %v984_v42, %v966_v4  ;;  %v977_v26 = vmul.f32 %v2932_v49, %v961_v3  ;;  %v978_v4 = vmul.f32 %v2926_v46, %v962_v47  ;;  %v1047_v49 = vld [vmem:[#allocation4 + $0x8] sm:$0xff]  ;;  %v1145_v46 = vmul.f32 %v2967_v60, %v1049_v9  ;;  %v1053_v60 = vld [vmem:[#allocation4 + $0x38] sm:$0xff] }
 0x2f6   : > { %1031 = vst.msk [vmem:[#allocation3 + $0x8] sm:$0xff] %vm1029_vm3, %v1014_v22 }
 0x2f9   : > { %v994_v35 = vpop.xlane.xlu0 %993 }
 0x2fa   : > { %v1019_v27 = vadd.f32 %v994_v35, %v971_v63  ;;  %v1046_v63 = vld [vmem:[#allocation4] sm:$0xff]  ;;  %v1144_v35 = vmul.f32 %v2969_v44, %v1048_v20 }
 0x2fc   : > { %1036 = vst.msk [vmem:[#allocation3 + $0x30] sm:$0xff] %vm1029_vm3, %v1019_v27 }
 0x2fd   : > { %v990_v10 = vpop.xlane.xlu0 %989 }
 0x2fe   : > { %v1017_v41 = vadd.f32 %v990_v10, %v969_v14  ;;  %v1142_v14 = vmul.f32 %v2963_v21, %v1046_v63  ;;  %v1052_v21 = vld [vmem:[#allocation4 + $0x30] sm:$0xff] }
 0x300   : > { %1034 = vst.msk [vmem:[#allocation3 + $0x20] sm:$0xff] %vm1029_vm3, %v1017_v41 }
 0x305   : > { %v996_v40 = vpop.xlane.xlu1 %995 }
 0x306   : > { %v1020_v29 = vadd.f32 %v996_v40, %v972_v28  ;;  %v1143_v40 = vmul.f32 %v2965_v51, %v1047_v49 }
 0x308   : > { %1037 = vst.msk [vmem:[#allocation3 + $0x38] sm:$0xff] %vm1029_vm3, %v1020_v29 }
 0x309   : > { %v992_v12 = vpop.xlane.xlu1 %991 }
 0x30a   : > { %v1018_v1 = vadd.f32 %v992_v12, %v970_v24  ;;  %v1050_v24 = vld [vmem:[#allocation4 + $0x20] sm:$0xff]  ;;  %v1148_v12 = vmul.f32 %v2977_v58, %v1052_v21 }
 0x30b   : > { %v1146_v39 = vmul.f32 %v2973_v45, %v1050_v24  ;;  %v1054_v58 = vld [vmem:[#allocation4 + $0x40] sm:$0xff] }
 0x30c   : > { %1035 = vst.msk [vmem:[#allocation3 + $0x28] sm:$0xff] %vm1029_vm3, %v1018_v1 }
 0x30d   : > { %v1002_v30 = vpop.xlane.xlu0 %1001  ;;  %v1004_v16 = vpop.xlane.xlu1 %1003 }
 0x30e   : > { %v1023_v31 = vadd.f32 %v1002_v30, %v975_v23  ;;  %v1024_v55 = vadd.f32 %v1004_v16, %v976_v6  ;;  %v1051_v23 = vld [vmem:[#allocation4 + $0x28] sm:$0xff]  ;;  %v1149_v6 = vmul.f32 %v2971_v13, %v1053_v60  ;;  %v1056_v16 = vld [vmem:[#allocation4 + $0x50] sm:$0xff]  ;;  %v1150_v13 = vmul.f32 %v2985_v54, %v1054_v58 }
 0x30f   : > { %v1147_v17 = vmul.f32 %v2975_v53, %v1051_v23 }
 0x310   : > { %1040 = vst.msk [vmem:[#allocation3 + $0x50] sm:$0xff] %vm1029_vm3, %v1023_v31  ;;  %1041 = vst.msk [vmem:[#allocation3 + $0x58] sm:$0xff] %vm1029_vm3, %v1024_v55 }
 0x311   : > { %v998_v57 = vpop.xlane.xlu0 %997  ;;  %v1000_v61 = vpop.xlane.xlu1 %999 }
 0x312   : > { %v1021_v0 = vadd.f32 %v998_v57, %v973_v8  ;;  %v1022_v25 = vadd.f32 %v1000_v61, %v974_v56  ;;  %v1152_v8 = vmul.f32 %v2981_v50, %v1056_v16  ;;  %v1057_v56 = vld [vmem:[#allocation4 + $0x58] sm:$0xff] }
 0x313   : > { %v1153_v53 = vmul.f32 %v2979_v34, %v1057_v56 }
 0x314   : > { %1038 = vst.msk [vmem:[#allocation3 + $0x40] sm:$0xff] %vm1029_vm3, %v1021_v0  ;;  %1039 = vst.msk [vmem:[#allocation3 + $0x48] sm:$0xff] %vm1029_vm3, %v1022_v25  ;;  %v1060_v25 = vld [vmem:[#allocation4 + $0x70] sm:$0xff] }
 0x315   : > { %v1010_v36 = vpop.xlane.xlu0 %1009  ;;  %v1012_v2 = vpop.xlane.xlu1 %1011 }
 0x316   : > { %v1027_v5 = vadd.f32 %v1010_v36, %v979_v37  ;;  %v1028_v33 = vadd.f32 %v1012_v2, %v980_v48  ;;  %v1151_v48 = vmul.f32 %v2983_v52, %v1055_v62  ;;  %v1058_v2 = vld [vmem:[#allocation4 + $0x60] sm:$0xff] }
 0x318   : > { %1044 = vst.msk [vmem:[#allocation3 + $0x70] sm:$0xff] %vm1029_vm3, %v1027_v5  ;;  %1045 = vst.msk [vmem:[#allocation3 + $0x78] sm:$0xff] %vm1029_vm3, %v1028_v33  ;;  %v1061_v5 = vld [vmem:[#allocation4 + $0x78] sm:$0xff] }
 0x319   : > { %v1006_v42 = vpop.xlane.xlu0 %1005  ;;  %v1008_v22 = vpop.xlane.xlu1 %1007 }
 0x31a   : > { %v1025_v7 = vadd.f32 %v1006_v42, %v977_v26  ;;  %v1026_v15 = vadd.f32 %v1008_v22, %v978_v4  ;;  %v1154_v26 = vmul.f32 %v2989_v32, %v1058_v2  ;;  %v1059_v42 = vld [vmem:[#allocation4 + $0x68] sm:$0xff] }
 0x31b   : > { %v1155_v20 = vmul.f32 %v2987_v38, %v1059_v42 }
 0x31c   : > { %1042 = vst.msk [vmem:[#allocation3 + $0x60] sm:$0xff] %vm1029_vm3, %v1025_v7  ;;  %1043 = vst.msk [vmem:[#allocation3 + $0x68] sm:$0xff] %vm1029_vm3, %v1026_v15 }
 0x31d   : > { %v1135_v37 = vpop.permute.xlu1 %1134 }
 0x31e   : > { %v1156_v3 = vmul.f32 %v1135_v37, %v1060_v25 }
 0x321   : > { %v1140_v33 = vpop.permute.xlu0 %1139 }
 0x322   : > { %v1157_v52 = vmul.f32 %v1140_v33, %v1061_v5 }
 0x32d   : > { %v2062_v27 = vpop.f32.mrf.mxu1 }
 0x32e   : > { %v1329_v10 = vadd.f32 %v2062_v27, %v1144_v35 }
 0x32f   : > { %v1264_v41 = vpop.f32.mrf.mxu1 }
 0x330   : > { %1345 = vst.msk [vmem:[#allocation4 + $0x10] sm:$0xff] %vm563_vm2, %v1329_v10  ;;  %v1327_v18 = vadd.f32 %v1264_v41, %v1142_v14 }
 0x331   : > { %v2063_v28 = vpop.f32.mrf.mxu1 }
 0x332   : > { %1343 = vst.msk [vmem:[#allocation4] sm:$0xff] %vm563_vm2, %v1327_v18  ;;  %v1330_v59 = vadd.f32 %v2063_v28, %v1145_v46 }
 0x333   : > { %v1267_v29 = vpop.f32.mrf.mxu1 }
 0x334   : > { %1346 = vst.msk [vmem:[#allocation4 + $0x18] sm:$0xff] %vm563_vm2, %v1330_v59  ;;  %v1328_v44 = vadd.f32 %v1267_v29, %v1143_v40 }
 0x336   : > { %1344 = vst.msk [vmem:[#allocation4 + $0x8] sm:$0xff] %vm563_vm2, %v1328_v44 }
 0x33e   : > { %v2066_v11 = vpop.f32.mrf.mxu1 }
 0x33f   : > { %v1333_v1 = vadd.f32 %v2066_v11, %v1148_v12 }
 0x340   : > { %v1280_v51 = vpop.f32.mrf.mxu1 }
 0x341   : > { %1349 = vst.msk [vmem:[#allocation4 + $0x30] sm:$0xff] %vm563_vm2, %v1333_v1  ;;  %v1331_v30 = vadd.f32 %v1280_v51, %v1146_v39 }
 0x342   : > { %v2067_v19 = vpop.f32.mrf.mxu1 }
 0x343   : > { %1347 = vst.msk [vmem:[#allocation4 + $0x20] sm:$0xff] %vm563_vm2, %v1331_v30  ;;  %v1334_v31 = vadd.f32 %v2067_v19, %v1149_v6 }
 0x344   : > { %v1283_v55 = vpop.f32.mrf.mxu1 }
 0x345   : > { %1350 = vst.msk [vmem:[#allocation4 + $0x38] sm:$0xff] %vm563_vm2, %v1334_v31  ;;  %v1332_v45 = vadd.f32 %v1283_v55, %v1147_v17 }
 0x346   : > { %v2070_v57 = vpop.f32.mrf.mxu1 }
 0x347   : > { %1348 = vst.msk [vmem:[#allocation4 + $0x28] sm:$0xff] %vm563_vm2, %v1332_v45  ;;  %v1337_v61 = vadd.f32 %v2070_v57, %v1152_v8 }
 0x348   : > { %v1296_v43 = vpop.f32.mrf.mxu1 }
 0x349   : > { %1353 = vst.msk [vmem:[#allocation4 + $0x50] sm:$0xff] %vm563_vm2, %v1337_v61  ;;  %v1335_v0 = vadd.f32 %v1296_v43, %v1150_v13 }
 0x34a   : > { %v2071_v50 = vpop.f32.mrf.mxu1 }
 0x34b   : > { %1351 = vst.msk [vmem:[#allocation4 + $0x40] sm:$0xff] %vm563_vm2, %v1335_v0  ;;  %v1338_v36 = vadd.f32 %v2071_v50, %v1153_v53 }
 0x34c   : > { %v1299_v54 = vpop.f32.mrf.mxu1 }
 0x34d   : > { %1354 = vst.msk [vmem:[#allocation4 + $0x58] sm:$0xff] %vm563_vm2, %v1338_v36  ;;  %v1336_v47 = vadd.f32 %v1299_v54, %v1151_v48 }
 0x34e   : > { %v2074_v34 = vpop.f32.mrf.mxu1 }
 0x34f   : > { %1352 = vst.msk [vmem:[#allocation4 + $0x48] sm:$0xff] %vm563_vm2, %v1336_v47  ;;  %v1341_v4 = vadd.f32 %v2074_v34, %v1156_v3 }
 0x350   : > { %v1312_v22 = vpop.f32.mrf.mxu1 }
 0x351   : > { %1357 = vst.msk [vmem:[#allocation4 + $0x70] sm:$0xff] %vm563_vm2, %v1341_v4  ;;  %v1339_v7 = vadd.f32 %v1312_v22, %v1154_v26 }
 0x352   : > { %v2075_v15 = vpop.f32.mrf.mxu1 }
 0x353   : > { %1355 = vst.msk [vmem:[#allocation4 + $0x60] sm:$0xff] %vm563_vm2, %v1339_v7  ;;  %v1342_v63 = vadd.f32 %v2075_v15, %v1157_v52  ;;  %1378 = sbr.rel (%p1948_p3) target bundleno = 1232 (0x4d0), region = 52 }
 0x354   : > { %v1315_v35 = vpop.f32.mrf.mxu1 }
 0x355   : > { %1358 = vst.msk [vmem:[#allocation4 + $0x78] sm:$0xff] %vm563_vm2, %v1342_v63  ;;  %v1340_v9 = vadd.f32 %v1315_v35, %v1155_v20 }
 0x357   : > { %1356 = vst.msk [vmem:[#allocation4 + $0x68] sm:$0xff] %vm563_vm2, %v1340_v9 }
 0x358   : > { %v1403_v32 = vld [vmem:[#allocation3 + $0x40] sm:$0xff]  ;;  %v1404_v14 = vld [vmem:[#allocation3 + $0x48] sm:$0xff]  ;;  %v2450_v10 = vmov 0   ;;  %v1398_v49 = vld [vmem:[#allocation3 + $0x18] sm:$0xff] }
 0x359   : > { %v1395_v27 = vld [vmem:[#allocation3] sm:$0xff]  ;;  %2300 = vset.pattern.permute.xlu1 %v2450_v10  ;;  %2299 = vset.pattern.permute.xlu0 %v2450_v10  ;;  %2305 = vrcp.f32 %v1403_v32  ;;  %v1396_v38 = vld [vmem:[#allocation3 + $0x8] sm:$0xff]  ;;  %v1397_v41 = vld [vmem:[#allocation3 + $0x10] sm:$0xff] }
 0x35a   : > { %2307 = vrcp.f32 %v1395_v27  ;;  %v2301_v46 = vld [vmem:[%s3216_s4 + $0x18] sm:$0xff]   ;;  %v1405_v28 = vld [vmem:[#allocation3 + $0x50] sm:$0xff]  ;;  %v1400_v59 = vld [vmem:[#allocation3 + $0x28] sm:$0xff] }
 0x35b   : > { %2309 = vrcp.f32 %v1404_v14  ;;  %v1406_v18 = vld [vmem:[#allocation3 + $0x58] sm:$0xff]  ;;  %2076 = vmatprep.subr.bf16.mxu0 %v2301_v46  ;;  %2100 = vmatprep.subr.bf16.mxu1 %v2301_v46  ;;  %v2302_v40 = vld [vmem:[%s3216_s4 + $0x10] sm:$0xff]   ;;  %v1399_v29 = vld [vmem:[#allocation3 + $0x20] sm:$0xff] }
 0x35c   : > { %2311 = vrcp.f32 %v1396_v38  ;;  %2077 = vmatpush3.bf16.msra.mxu0 %v2301_v46  ;;  %2104 = vmatpush3.bf16.msra.mxu1 %v2301_v46  ;;  %v2303_v21 = vld [vmem:[%s3216_s4 + $0x8] sm:$0xff]   ;;  %v1407_v39 = vld [vmem:[#allocation3 + $0x60] sm:$0xff]  ;;  %v1402_v51 = vld [vmem:[#allocation3 + $0x38] sm:$0xff] }
 0x35d   : > { %2313 = vrcp.f32 %v1398_v49  ;;  %2078 = vmatprep.subr.bf16.mxu0 %v2302_v40  ;;  %2101 = vmatprep.subr.bf16.mxu1 %v2302_v40  ;;  %v1408_v60 = vld [vmem:[#allocation3 + $0x68] sm:$0xff]  ;;  %v2304_v1 = vld [vmem:[%s3216_s4] sm:$0xff]   ;;  %v1401_v30 = vld [vmem:[#allocation3 + $0x30] sm:$0xff] }
 0x35e   : > { %2315 = vrcp.f32 %v1397_v41  ;;  %v1410_v19 = vld [vmem:[#allocation3 + $0x78] sm:$0xff]  ;;  %v1409_v31 = vld [vmem:[#allocation3 + $0x70] sm:$0xff]  ;;  %v1387_v53 = vld [vmem:[#allocation4 + $0x40] sm:$0xff] }
 0x35f   : > { %2317 = vrcp.f32 %v1406_v18  ;;  %v1388_v0 = vld [vmem:[#allocation4 + $0x48] sm:$0xff]  ;;  %v1379_v25 = vld [vmem:[#allocation4] sm:$0xff]  ;;  %v1382_v47 = vld [vmem:[#allocation4 + $0x18] sm:$0xff] }
 0x360   : > { %2319 = vrcp.f32 %v1405_v28  ;;  %2079 = vmatpush3.bf16.msra.mxu0 %v2302_v40  ;;  %2105 = vmatpush3.bf16.msra.mxu1 %v2302_v40  ;;  %v1380_v37 = vld [vmem:[#allocation4 + $0x8] sm:$0xff]  ;;  %v1381_v5 = vld [vmem:[#allocation4 + $0x10] sm:$0xff]  ;;  %v1390_v52 = vld [vmem:[#allocation4 + $0x58] sm:$0xff] }
 0x361   : > { %2321 = vrcp.f32 %v1400_v59  ;;  %2080 = vmatprep.subr.bf16.mxu0 %v2303_v21  ;;  %2102 = vmatprep.subr.bf16.mxu1 %v2303_v21  ;;  %v1389_v7 = vld [vmem:[#allocation4 + $0x50] sm:$0xff]  ;;  %v1384_v32 = vld [vmem:[#allocation4 + $0x28] sm:$0xff]  ;;  %v1383_v27 = vld [vmem:[#allocation4 + $0x20] sm:$0xff] }
 0x362   : > { %2323 = vrcp.f32 %v1399_v29  ;;  %v1392_v46 = vld [vmem:[#allocation4 + $0x68] sm:$0xff]  ;;  %v1391_v18 = vld [vmem:[#allocation4 + $0x60] sm:$0xff] }
 0x363   : > { %2325 = vrcp.f32 %v1408_v60 }
 0x364   : > { %2081 = vmatpush3.bf16.msra.mxu0 %v2303_v21  ;;  %2106 = vmatpush3.bf16.msra.mxu1 %v2303_v21  ;;  %2327 = vrcp.f32 %v1407_v39  ;;  %v1386_v21 = vld [vmem:[#allocation4 + $0x38] sm:$0xff] }
 0x365   : > { %2082 = vmatprep.subr.bf16.mxu0 %v2304_v1  ;;  %2103 = vmatprep.subr.bf16.mxu1 %v2304_v1  ;;  %2329 = vrcp.f32 %v1402_v51  ;;  %v1393_v51 = vld [vmem:[#allocation4 + $0x70] sm:$0xff] }
 0x366   : > { %v2306_v44 = vpop.eup %2305  ;;  %2331 = vrcp.f32 %v1401_v30 }
 0x367   : > { %v2308_v24 = vpop.eup %2307  ;;  %1469 = vperm.xlu1 %2300, %v2306_v44   ;;  %2333 = vrcp.f32 %v1410_v19 }
 0x368   : > { %v2310_v12 = vpop.eup %2309  ;;  %1429 = vperm.xlu0 %2299, %v2308_v24   ;;  %2083 = vmatpush3.bf16.msra.mxu0 %v2304_v1  ;;  %2335 = vrcp.f32 %v1409_v31  ;;  %v1385_v24 = vld [vmem:[#allocation4 + $0x30] sm:$0xff] }
 0x369   : > { %v2312_v11 = vpop.eup %2311  ;;  %2107 = vmatpush3.bf16.msra.mxu1 %v2304_v1 }
 0x36a   : > { %v2314_v23 = vpop.eup %2313 }
 0x36b   : > { %1474 = vperm.xlu1 %2300, %v2310_v12   ;;  %v2316_v6 = vpop.eup %2315 }
 0x36c   : > { %1434 = vperm.xlu0 %2299, %v2312_v11   ;;  %v2318_v16 = vpop.eup %2317 }
 0x36d   : > { %v2320_v17 = vpop.eup %2319 }
 0x36e   : > { %v2322_v58 = vpop.eup %2321 }
 0x36f   : > { %1444 = vperm.xlu1 %2300, %v2314_v23   ;;  %v2324_v55 = vpop.eup %2323  ;;  %v1394_v23 = vld [vmem:[#allocation4 + $0x78] sm:$0xff] }
 0x370   : > { %1439 = vperm.xlu0 %2299, %v2316_v6   ;;  %v2326_v8 = vpop.eup %2325 }
 0x371   : > { %v2328_v45 = vpop.eup %2327 }
 0x372   : > { %v2330_v56 = vpop.eup %2329 }
 0x373   : > { %1484 = vperm.xlu1 %2300, %v2318_v16   ;;  %v2332_v57 = vpop.eup %2331 }
 0x374   : > { %1479 = vperm.xlu0 %2299, %v2320_v17   ;;  %v2334_v13 = vpop.eup %2333 }
 0x375   : > { %v2336_v61 = vpop.eup %2335 }
 0x377   : > { %1454 = vperm.xlu1 %2300, %v2322_v58   ;;  %v3077_v58 = vld [vmem:[%s3217_s5] ss:$0 sm:$0xff] }
 0x378   : > { %1449 = vperm.xlu0 %2299, %v2324_v55  }
 0x37b   : > { %1494 = vperm.xlu1 %2300, %v2326_v8   ;;  %v1693_v8 = vld [vmem:[%s2593_s18 + $0x10] sm:$0xff] }
 0x37c   : > { %1489 = vperm.xlu0 %2299, %v2328_v45  }
 0x37f   : > { %1464 = vperm.xlu1 %2300, %v2330_v56  }
 0x380   : > { %1459 = vperm.xlu0 %2299, %v2332_v57   ;;  %v1691_v57 = vld [vmem:[%s2593_s18] sm:$0xff] }
 0x383   : > { %1504 = vperm.xlu1 %2300, %v2334_v13  }
 0x384   : > { %1499 = vperm.xlu0 %2299, %v2336_v61  }
 0x3e2   : > { %v1470_v62 = vpop.permute.xlu1 %1469 }
 0x3e3   : > { %v1430_v43 = vpop.permute.xlu0 %1429  ;;  %v1515_v48 = vmul.f32 %v1470_v62, %v1387_v53 }
 0x3e4   : > { %v1507_v54 = vmul.f32 %v1430_v43, %v1379_v25  ;;  %v1694_v43 = vld [vmem:[%s2593_s18 + $0x18] sm:$0xff] }
 0x3e6   : > { %v1475_v50 = vpop.permute.xlu1 %1474 }
 0x3e7   : > { %v1516_v36 = vmul.f32 %v1475_v50, %v1388_v0  ;;  %v1435_v2 = vpop.permute.xlu0 %1434  ;;  %v1701_v0 = vld [vmem:[%s2593_s18 + $0x50] sm:$0xff] }
 0x3e8   : > { %v1508_v3 = vmul.f32 %v1435_v2, %v1380_v37 }
 0x3e9   : > { %v1527_v33 = vpack.c.bf16 %v1516_v36, %v1515_v48  ;;  %v1692_v36 = vld [vmem:[%s2593_s18 + $0x8] sm:$0xff] }
 0x3ea   : > { %v1445_v34 = vpop.permute.xlu1 %1444  ;;  %v1523_v26 = vpack.c.bf16 %v1508_v3, %v1507_v54  ;;  %v1699_v54 = vld [vmem:[%s2593_s18 + $0x40] sm:$0xff] }
 0x3eb   : > { %v1510_v4 = vmul.f32 %v1445_v34, %v1382_v47  ;;  %v1440_v42 = vpop.permute.xlu0 %1439  ;;  %2092 = vmatprep.mubr.msk.bf16.mxu1 %vm563_vm2, %v1527_v33 }
 0x3ec   : > { %v1509_v22 = vmul.f32 %v1440_v42, %v1381_v5  ;;  %2084 = vmatprep.mubr.msk.bf16.mxu0 %vm563_vm2, %v1523_v26  ;;  %v1702_v26 = vld [vmem:[%s2593_s18 + $0x58] sm:$0xff] }
 0x3ee   : > { %v1524_v15 = vpack.c.bf16 %v1510_v4, %v1509_v22  ;;  %v1485_v20 = vpop.permute.xlu1 %1484 }
 0x3ef   : > { %v1518_v63 = vmul.f32 %v1485_v20, %v1390_v52  ;;  %v1480_v35 = vpop.permute.xlu0 %1479 }
 0x3f0   : > { %v1517_v9 = vmul.f32 %v1480_v35, %v1389_v7  ;;  %2085 = vmatmul.mubr.msk.bf16.vlgmr.msra.gmra.mxu0 %vm563_vm2, %v1524_v15  ;;  %v1700_v7 = vld [vmem:[%s2593_s18 + $0x48] sm:$0xff] }
 0x3f2   : > { %v1528_v14 = vpack.c.bf16 %v1518_v63, %v1517_v9  ;;  %v1455_v10 = vpop.permute.xlu1 %1454  ;;  %v1697_v9 = vld [vmem:[%s2593_s18 + $0x30] sm:$0xff] }
 0x3f3   : > { %v1512_v38 = vmul.f32 %v1455_v10, %v1384_v32  ;;  %v1450_v49 = vpop.permute.xlu0 %1449 }
 0x3f4   : > { %v1511_v41 = vmul.f32 %v1450_v49, %v1383_v27  ;;  %2093 = vmatmul.mubr.msk.bf16.vlgmr.msra.gmra.mxu1 %vm563_vm2, %v1528_v14  ;;  %v1695_v14 = vld [vmem:[%s2593_s18 + $0x20] sm:$0xff] }
 0x3f6   : > { %v1525_v28 = vpack.c.bf16 %v1512_v38, %v1511_v41  ;;  %v1495_v40 = vpop.permute.xlu1 %1494  ;;  %v1698_v41 = vld [vmem:[%s2593_s18 + $0x38] sm:$0xff] }
 0x3f7   : > { %v1520_v59 = vmul.f32 %v1495_v40, %v1392_v46  ;;  %v1490_v29 = vpop.permute.xlu0 %1489 }
 0x3f8   : > { %v1519_v44 = vmul.f32 %v1490_v29, %v1391_v18  ;;  %2088 = vmatprep.mubr.msk.bf16.mxu0 %vm563_vm2, %v1525_v28  ;;  %v1705_v18 = vld [vmem:[%s2593_s18 + $0x70] sm:$0xff] }
 0x3fa   : > { %v1529_v12 = vpack.c.bf16 %v1520_v59, %v1519_v44  ;;  %v1465_v60 = vpop.permute.xlu1 %1464  ;;  %v1696_v44 = vld [vmem:[%s2593_s18 + $0x28] sm:$0xff] }
 0x3fb   : > { %v1514_v11 = vmul.f32 %v1465_v60, %v1386_v21  ;;  %v1460_v39 = vpop.permute.xlu0 %1459 }
 0x3fc   : > { %v1513_v1 = vmul.f32 %v1460_v39, %v1385_v24  ;;  %2096 = vmatprep.mubr.msk.bf16.mxu1 %vm563_vm2, %v1529_v12  ;;  %v1703_v24 = vld [vmem:[%s2593_s18 + $0x60] sm:$0xff] }
 0x3fe   : > { %v1526_v6 = vpack.c.bf16 %v1514_v11, %v1513_v1  ;;  %v1505_v30 = vpop.permute.xlu1 %1504 }
 0x3ff   : > { %v1522_v16 = vmul.f32 %v1505_v30, %v1394_v23  ;;  %v1500_v19 = vpop.permute.xlu0 %1499  ;;  %v1706_v23 = vld [vmem:[%s2593_s18 + $0x78] sm:$0xff] }
 0x400   : > { %v1521_v17 = vmul.f32 %v1500_v19, %v1393_v51  ;;  %2089 = vmatmul.mubr.msk.bf16.gmra.mxu0 %vm563_vm2, %v1526_v6  ;;  %v1704_v19 = vld [vmem:[%s2593_s18 + $0x68] sm:$0xff] }
 0x402   : > { %v1530_v31 = vpack.c.bf16 %v1522_v16, %v1521_v17 }
 0x404   : > { %2097 = vmatmul.mubr.msk.bf16.gmra.mxu1 %vm563_vm2, %v1530_v31 }
 0x4b0   : > { %v2086_v55 = vpop.f32.mrf.mxu0 }
 0x4b1   : > { %v1637_v45 = vadd.f32 %v2086_v55, %v3077_v58 }
 0x4b2   : > { %v1628_v56 = vpop.f32.mrf.mxu0 }
 0x4b3   : > { %v1709_v13 = vadd.f32 %v1693_v8, %v1637_v45  ;;  %v1629_v61 = vadd.f32 %v3077_v58, %v1628_v56 }
 0x4b4   : > { %v2087_v62 = vpop.f32.mrf.mxu0  ;;  %v2094_v53 = vpop.f32.mrf.mxu1 }
 0x4b5   : > { %1725 = vst.msk [vmem:[%s2605_s29 + $0x10] sm:$0xff] %vm563_vm2, %v1709_v13  ;;  %v1707_v25 = vadd.f32 %v1691_v57, %v1629_v61  ;;  %v1640_v37 = vadd.f32 %v2087_v62, %v3077_v58  ;;  %v1669_v50 = vadd.f32 %v2094_v53, %v3077_v58 }
 0x4b6   : > { %v1631_v48 = vpop.f32.mrf.mxu0  ;;  %v1660_v2 = vpop.f32.mrf.mxu1 }
 0x4b7   : > { %1723 = vst.msk [vmem:[%s2605_s29] sm:$0xff] %vm563_vm2, %v1707_v25  ;;  %v1710_v3 = vadd.f32 %v1694_v43, %v1640_v37  ;;  %v1717_v47 = vadd.f32 %v1701_v0, %v1669_v50  ;;  %v1632_v5 = vadd.f32 %v3077_v58, %v1631_v48  ;;  %v1661_v33 = vadd.f32 %v3077_v58, %v1660_v2 }
 0x4b8   : > { %v2095_v34 = vpop.f32.mrf.mxu1 }
 0x4b9   : > { %1726 = vst.msk [vmem:[%s2605_s29 + $0x18] sm:$0xff] %vm563_vm2, %v1710_v3  ;;  %1733 = vst.msk [vmem:[%s2605_s29 + $0x50] sm:$0xff] %vm563_vm2, %v1717_v47  ;;  %v1708_v4 = vadd.f32 %v1692_v36, %v1632_v5  ;;  %v1715_v42 = vadd.f32 %v1699_v54, %v1661_v33  ;;  %v1672_v22 = vadd.f32 %v2095_v34, %v3077_v58 }
 0x4ba   : > { %v1663_v52 = vpop.f32.mrf.mxu1 }
 0x4bb   : > { %1724 = vst.msk [vmem:[%s2605_s29 + $0x8] sm:$0xff] %vm563_vm2, %v1708_v4  ;;  %1731 = vst.msk [vmem:[%s2605_s29 + $0x40] sm:$0xff] %vm563_vm2, %v1715_v42  ;;  %v1718_v15 = vadd.f32 %v1702_v26, %v1672_v22  ;;  %v1664_v20 = vadd.f32 %v3077_v58, %v1663_v52 }
 0x4bd   : > { %1734 = vst.msk [vmem:[%s2605_s29 + $0x58] sm:$0xff] %vm563_vm2, %v1718_v15  ;;  %v1716_v63 = vadd.f32 %v1700_v7, %v1664_v20 }
 0x4bf   : > { %1732 = vst.msk [vmem:[%s2605_s29 + $0x48] sm:$0xff] %vm563_vm2, %v1716_v63 }
 0x4c0   : > { %v2090_v35 = vpop.f32.mrf.mxu0 }
 0x4c1   : > { %v1653_v32 = vadd.f32 %v2090_v35, %v3077_v58 }
 0x4c2   : > { %v1644_v27 = vpop.f32.mrf.mxu0 }
 0x4c3   : > { %v1713_v10 = vadd.f32 %v1697_v9, %v1653_v32  ;;  %v1645_v38 = vadd.f32 %v3077_v58, %v1644_v27 }
 0x4c4   : > { %v2091_v49 = vpop.f32.mrf.mxu0  ;;  %v2098_v46 = vpop.f32.mrf.mxu1 }
 0x4c5   : > { %1729 = vst.msk [vmem:[%s2605_s29 + $0x30] sm:$0xff] %vm563_vm2, %v1713_v10  ;;  %v1711_v28 = vadd.f32 %v1695_v14, %v1645_v38  ;;  %v1656_v40 = vadd.f32 %v2091_v49, %v3077_v58  ;;  %v1685_v59 = vadd.f32 %v2098_v46, %v3077_v58 }
 0x4c6   : > { %v1647_v29 = vpop.f32.mrf.mxu0  ;;  %v1676_v21 = vpop.f32.mrf.mxu1 }
 0x4c7   : > { %1727 = vst.msk [vmem:[%s2605_s29 + $0x20] sm:$0xff] %vm563_vm2, %v1711_v28  ;;  %v1714_v12 = vadd.f32 %v1698_v41, %v1656_v40  ;;  %v1721_v60 = vadd.f32 %v1705_v18, %v1685_v59  ;;  %v1648_v11 = vadd.f32 %v3077_v58, %v1647_v29  ;;  %v1677_v39 = vadd.f32 %v3077_v58, %v1676_v21 }
 0x4c8   : > { %v2099_v1 = vpop.f32.mrf.mxu1 }
 0x4c9   : > { %1730 = vst.msk [vmem:[%s2605_s29 + $0x38] sm:$0xff] %vm563_vm2, %v1714_v12  ;;  %1737 = vst.msk [vmem:[%s2605_s29 + $0x70] sm:$0xff] %vm563_vm2, %v1721_v60  ;;  %v1712_v51 = vadd.f32 %v1696_v44, %v1648_v11  ;;  %v1719_v6 = vadd.f32 %v1703_v24, %v1677_v39  ;;  %v1688_v30 = vadd.f32 %v2099_v1, %v3077_v58 }
 0x4ca   : > { %v1679_v16 = vpop.f32.mrf.mxu1 }
 0x4cb   : > { %1728 = vst.msk [vmem:[%s2605_s29 + $0x28] sm:$0xff] %vm563_vm2, %v1712_v51  ;;  %1735 = vst.msk [vmem:[%s2605_s29 + $0x60] sm:$0xff] %vm563_vm2, %v1719_v6  ;;  %v1722_v17 = vadd.f32 %v1706_v23, %v1688_v30  ;;  %v1680_v31 = vadd.f32 %v3077_v58, %v1679_v16 }
 0x4cd   : > { %1738 = vst.msk [vmem:[%s2605_s29 + $0x78] sm:$0xff] %vm563_vm2, %v1722_v17  ;;  %v1720_v55 = vadd.f32 %v1704_v19, %v1680_v31 }
 0x4cf   : > { %1736 = vst.msk [vmem:[%s2605_s29 + $0x68] sm:$0xff] %vm563_vm2, %v1720_v55 }
 0x4d0 PF: > { %s1964_s19 = sshll.u32 %s2429_s26, 5  ;;  %s1755_s7 = sshll.u32 %s2605_s29, 4  ;;  %s3146_s7 = int_to_ptr.vmem [resolvable:$true] %s1755_s7 }
 0x4d1   : > { %s1752_s18 = sadd.s32 %s1964_s19, %s2576_s20  ;;  %s3243_s14 = sand.u32 1, %s2413_s22  }
 0x4d2   : > { %s1965_s15 = sshll.u32 %s1752_s18, 7  ;;  %s3155_s17 = scalar_lea.sflag [#allocation6], %s3243_s14 }
 0x4d3   : > { %s3151_s8 = scalar_lea.hbm %s3218_s6, %s1965_s15  ;;  %s2337_s21 = scalar_lea.vmem %s3146_s7, 2048 }
 0x4d4   : > { %p2338_p4 = scmp.ne.s32.totalorder %s3146_s7, %s2337_s21  ;;  %s2451_s26 = smov [#allocation5]  }
 0x4d5   : > { %s2341_s20 = sshll.u32 %s2451_s26, 4  ;;  %s2342_s20 = int_to_ptr.vmem [resolvable:$false] %s2341_s20 }
 0x4d6   : > { %p2339_p5 = pnand %p2338_p4, %p2551_p6  ;;  %s2343_s29 = scalar_lea.vmem %s2342_s20, 4096 }
 0x4d7   : > { %p2344_p9 = scmp.lt.s32.totalorder %s3146_s7, %s2342_s20  ;;  %p2345_p10 = scmp.lt.s32.totalorder %s2343_s29, %s2337_s21 }
 0x4d8   : > { %p2340_p8 = pneg %p2339_p5 }
 0x4d9   : > { %p2346_p11 = por %p2345_p10, %p2344_p9 }
 0x4db   : > { %p2347_p12 = pnand %p2346_p11, %p2340_p8 }
 0x4dd   : > { %2350 = shalt.err (!%p2347_p12)
}
 0x4de   : > { %s2351_s23 = scalar_lea.hbm %s3151_s8, 2048  ;;  %s2355_s28 = scalar_lea.hbm %s3218_s6, 8192 }
 0x4df   : > { %p2352_p13 = scmp.ne.s32.totalorder %s3151_s8, %s2351_s23  ;;  %p2356_p2 = scmp.lt.s32.totalorder %s3151_s8, %s3218_s6 }
 0x4e0   : > { %p2357_p3 = scmp.lt.s32.totalorder %s2355_s28, %s2351_s23 }
 0x4e1   : > { %p2353_p0 = pnand %p2352_p13, %p2551_p6 }
 0x4e2   : > { %p2358_p4 = por %p2357_p3, %p2356_p2 }
 0x4e3   : > { %p2354_p1 = pneg %p2353_p0 }
 0x4e5   : > { %p2359_p5 = pnand %p2358_p4, %p2354_p1 }
 0x4e7   : > { %2362 = shalt.err (!%p2359_p5)
}
 0x4e8   : > { %s2452_s10 = smov 128   ;;  %s2453_s11 = smov 8  }
 0x4e9   : > { %2116 = dma.vmem_to_hbm [thread:$0]  (%p2551_p6), %s3146_s7, 2048, %s3151_s8, %s3155_s17, %s2452_s10, %s2452_s10, %s2453_s11  }
 0x4ea PF: > { %s3244_s13 = sld [smem:[#allocation13_spill]] }
 0x4eb   : > { %s3245_s19 = sld [smem:[#allocation8_spill]] }
 0x4f0   : > { %p2122_p8 = scmp.ge.s32.totalorder %s3244_s13, 2 }
 0x4f1   : > { %s1770_s15 = sand.u32 1, %s3245_s19  }
 0x4f2   : > { %p2119_p9 = pnand %p2122_p8, %p2558_p7  ;;  %s1771_s16 = scalar_lea.sflag [#allocation6], %s1770_s15 }
 0x4f4   : > { %p2120_p10 = pneg %p2119_p9 }
 0x4f6   : > { %2404 = dma.done.wait (%p2120_p10), %s1771_s16, 2048  }
 0x4f7   : > { %2406 = vsyncadd (%p2120_p10), %s1771_s16, 4294965248  ;;  %s19_s30 = sadd.s32 1, %s3244_s13   ;;  %s3247_s25 = sld [smem:[#allocation9_spill]] }
 0x4f8   : > { %p16_p11 = scmp.ge.s32.totalorder %s19_s30, 10   ;;  %s3248_s23 = sld [smem:[#allocation18_spill]] }
 0x4f9   : > { %s3249_s24 = sld [smem:[#allocation10_spill]]  ;;  %s3255_s21 = smov %s2413_s22 }
 0x4fa   : > { %s3250_s12 = sld [smem:[#allocation11_spill]] }
 0x4fb   : > { %s3251_s26 = sld [smem:[#allocation12_spill]] }
 0x4fc   : > { %s3252_s27 = sld [smem:[#allocation14_spill]]  ;;  %18 = sbr.rel (!%p16_p11) target bundleno = 6 (0x6), region = 96 }
 0x4fd   : > { %s3253_s28 = sld [smem:[#allocation15_spill]]  ;;  %s3256_s22 = smov %s3247_s25 }
 0x4fe   : > { %s3254_s29 = sld [smem:[#allocation17_spill]] }
 0x500   : > { %s3257_s25 = smov %s3250_s12 }
 0x501   :  { %1776 = vsyncpa [#allocation6], 1 }
 0x502   :  { %1778 = vsyncpa [#allocation6 + $0x1], 1 }

// kernel: attn_block_pallas.2
= control target key start
LH: loop header
LB: loop body
LE: loop exit
PB: predicated region body
PF: predicated region fallthrough
CT: control target
= control target key end

     0   :  { %s2230_s27 = smov 0   ;;  %s3124_s0 = inlined_call_operand.vmem [shape: f32[2,256,64], index: 0, kind: input, shape index: {}]   ;;  %s3125_s1 = inlined_call_operand.vmem [shape: f32[64,8], index: 1, kind: input, shape index: {}]   ;;  %s3126_s2 = inlined_call_operand.vmem [shape: f32[1,64], index: 2, kind: input, shape index: {}]   ;;  %s3127_s3 = inlined_call_operand.vmem [shape: f32[1,64], index: 3, kind: input, shape index: {}]   ;;  %s3128_s4 = inlined_call_operand.vmem [shape: bf16[64,192], index: 4, kind: input, shape index: {}]   ;;  %s3129_s5 = inlined_call_operand.vmem [shape: f32[1,192], index: 5, kind: input, shape index: {}]   ;;  %s3130_s6 = inlined_call_operand.vmem [shape: bf16[2,256,64], index: 6, kind: output, shape index: {0}]   ;;  %s3131_s7 = inlined_call_operand.vmem [shape: bf16[2,256,64], index: 7, kind: output, shape index: {1}]   ;;  %s3132_s8 = inlined_call_operand.vmem [shape: bf16[2,256,64], index: 8, kind: output, shape index: {2}]  }
   0x1 LB: > { %s1836_s28 = sadd.s32 4294967295, %s2179_s27   ;;  %p1840_p0 = scmp.ge.s32.totalorder %s2179_s27, 1  ;;  %s2179_s27 = sphi %s2230_s27, %s19_s27  }
   0x2   : > { %p267_p1 = scmp.lt.s32.totalorder %s2179_s27, 3 }
   0x4   : > { %p268_p2 = pnand %p1840_p0, %p267_p1 }
   0x5   : > { %p311_p3 = scmp.lt.s32.totalorder (!%p268_p2), %s1836_s28, 1  ;;  %s2184_s15 = smov (!%p268_p2), 64  }
   0x6   : > { %271 = sbr.rel (%p268_p2) target bundleno = 898 (0x382), region = 44 }
   0xb   : > { %v2241_v0 = vld [vmem:[%s3125_s1 + $0x38] sm:$0xff]  ;;  %v2181_v1 = vmov 0.0   ;;  %v2248_v2 = vld [vmem:[%s3125_s1 + $0x30] sm:$0xff]  ;;  %v2255_v3 = vld [vmem:[%s3125_s1 + $0x28] sm:$0xff]  ;;  %s3134_s28 = smov (!%p311_p3, %s1836_s28), 1  ;;  %vm372_vm0 = vcmask 523264  }
   0xc   : > { %2063 = vmatprep.subr.mxu0 %v2181_v1  ;;  %2082 = vmatprep.subr.mxu1 %v2181_v1  ;;  %s1959_s13 = sshll.u32 %s3134_s28, 8  ;;  %v2269_v4 = vld [vmem:[%s3125_s1 + $0x20] sm:$0xff]  ;;  %v2292_v8 = vld [vmem:[%s3125_s1 + $0x18] sm:$0xff]  ;;  %v2313_v15 = vld [vmem:[%s3125_s1 + $0x10] sm:$0xff]  ;;  %vm2182_vm1 = vmmov 0   ;;  %vm697_vm2 = vcmask 64512  }
   0xd   : > { %2064 = vmatpush3.msra.mxu0 %v2241_v0  ;;  %2083 = vmatpush3.msra.mxu1 %v2241_v0  ;;  %s2274_s18 = scalar_lea.vmem %s3124_s0, %s1959_s13  ;;  %v2327_v19 = vld [vmem:[%s3125_s1 + $0x8] sm:$0xff]  ;;  %v2341_v23 = vld [vmem:[%s3125_s1] sm:$0xff]  ;;  %s2811_s9 = sshll.u32 %s3134_s28, 7  ;;  %vm1410_vm3 = vcmask 519168  }
   0xe   : > { %2065 = vmatprep.subr.mxu0 %v2181_v1  ;;  %2084 = vmatprep.subr.mxu1 %v2181_v1  ;;  %v2279_v5 = vld [vmem:[%s2274_s18] sm:$0xff]  ;;  %v2282_v6 = vld [vmem:[%s2274_s18 + $0x8] sm:$0xff]  ;;  %v2285_v7 = vld [vmem:[%s2274_s18 + $0x10] sm:$0xff]  ;;  %s2821_s12 = scalar_lea.vmem %s3130_s6, %s2811_s9  ;;  %s2829_s14 = scalar_lea.vmem %s3132_s8, %s2811_s9 }
   0xf   : > { %2066 = vmatpush3.msra.mxu0 %v2248_v2  ;;  %2085 = vmatpush3.msra.mxu1 %v2248_v2  ;;  %v2295_v9 = vld [vmem:[%s2274_s18 + $0x18] sm:$0xff]  ;;  %v373_v10 = vsel %vm372_vm0, %v2279_v5, 0.0  ;;  %v374_v11 = vsel %vm372_vm0, %v2282_v6, 0.0  ;;  %v376_v12 = vsel %vm372_vm0, %v2285_v7, 0.0  ;;  %v2306_v13 = vld [vmem:[%s2274_s18 + $0x20] sm:$0xff]  ;;  %v2320_v17 = vld [vmem:[%s2274_s18 + $0x28] sm:$0xff]  ;;  %v442_v38 = vmul.f32 %v2279_v5, %v2279_v5 }
  0x10   : > { %2067 = vmatprep.subr.mxu0 %v2181_v1  ;;  %2086 = vmatprep.subr.mxu1 %v2181_v1  ;;  %v375_v14 = vadd.f32 %v374_v11, %v373_v10  ;;  %v378_v16 = vsel %vm372_vm0, %v2295_v9, 0.0  ;;  %v380_v20 = vsel %vm372_vm0, %v2306_v13, 0.0  ;;  %v2334_v21 = vld [vmem:[%s2274_s18 + $0x30] sm:$0xff]  ;;  %v382_v24 = vsel %vm372_vm0, %v2320_v17, 0.0  ;;  %v2349_v25 = vld [vmem:[%s2274_s18 + $0x38] sm:$0xff]  ;;  %v2357_v28 = vld [vmem:[%s2274_s18 + $0x40] sm:$0xff] }
  0x11   : > { %2068 = vmatpush3.msra.mxu0 %v2255_v3  ;;  %2087 = vmatpush3.msra.mxu1 %v2255_v3  ;;  %v384_v27 = vsel %vm372_vm0, %v2334_v21, 0.0  ;;  %v386_v30 = vsel %vm372_vm0, %v2349_v25, 0.0  ;;  %v2366_v31 = vld [vmem:[%s2274_s18 + $0x48] sm:$0xff]  ;;  %v388_v33 = vsel %vm372_vm0, %v2357_v28, 0.0  ;;  %v2373_v34 = vld [vmem:[%s2274_s18 + $0x50] sm:$0xff]  ;;  %v2376_v36 = vld [vmem:[%s2274_s18 + $0x58] sm:$0xff]  ;;  %v443_v39 = vmul.f32 %v2282_v6, %v2282_v6 }
  0x12   : > { %2069 = vmatprep.subr.mxu0 %v2181_v1  ;;  %2088 = vmatprep.subr.mxu1 %v2181_v1  ;;  %v377_v18 = vadd.f32 %v376_v12, %v375_v14  ;;  %v390_v37 = vsel %vm372_vm0, %v2366_v31, 0.0  ;;  %v444_v40 = vmul.f32 %v2285_v7, %v2285_v7  ;;  %v392_v42 = vsel %vm372_vm0, %v2373_v34, 0.0  ;;  %v2391_v44 = vld [vmem:[%s2274_s18 + $0x60] sm:$0xff]  ;;  %v2401_v51 = vld [vmem:[%s2274_s18 + $0x68] sm:$0xff]  ;;  %v2409_v57 = vld [vmem:[%s2274_s18 + $0x70] sm:$0xff] }
  0x13   : > { %2070 = vmatpush3.msra.mxu0 %v2269_v4  ;;  %2089 = vmatpush3.msra.mxu1 %v2269_v4  ;;  %v445_v43 = vmul.f32 %v2295_v9, %v2295_v9  ;;  %v394_v46 = vsel %vm372_vm0, %v2376_v36, 0.0  ;;  %v446_v47 = vmul.f32 %v2306_v13, %v2306_v13  ;;  %v474_v48 = vsel %vm372_vm0, %v442_v38, 0.0  ;;  %v2417_v63 = vld [vmem:[%s2274_s18 + $0x78] sm:$0xff]  ;;  %v2441_v38 = vld [vmem:[%s2274_s18 + $0x90] sm:$0xff] }
  0x14   : > { %2071 = vmatprep.subr.mxu0 %v2181_v1  ;;  %2090 = vmatprep.subr.mxu1 %v2181_v1  ;;  %v379_v22 = vadd.f32 %v378_v16, %v377_v18  ;;  %v475_v49 = vsel %vm372_vm0, %v443_v39, 0.0  ;;  %v477_v50 = vsel %vm372_vm0, %v444_v40, 0.0  ;;  %v396_v54 = vsel %vm372_vm0, %v2391_v44, 0.0  ;;  %v2425_v18 = vld [vmem:[%s2274_s18 + $0x80] sm:$0xff] }
  0x15   : > { %2072 = vmatpush3.msra.mxu0 %v2292_v8  ;;  %2091 = vmatpush3.msra.mxu1 %v2292_v8  ;;  %v476_v53 = vadd.f32 %v475_v49, %v474_v48  ;;  %v447_v55 = vmul.f32 %v2320_v17, %v2320_v17  ;;  %v479_v56 = vsel %vm372_vm0, %v445_v43, 0.0  ;;  %v398_v60 = vsel %vm372_vm0, %v2401_v51, 0.0 }
  0x16   : > { %2073 = vmatprep.subr.mxu0 %v2181_v1  ;;  %2092 = vmatprep.subr.mxu1 %v2181_v1  ;;  %v381_v26 = vadd.f32 %v380_v20, %v379_v22  ;;  %v448_v61 = vmul.f32 %v2334_v21, %v2334_v21  ;;  %v481_v62 = vsel %vm372_vm0, %v446_v47, 0.0  ;;  %v400_v12 = vsel %vm372_vm0, %v2409_v57, 0.0 }
  0x17   : > { %2074 = vmatpush3.msra.mxu0 %v2313_v15  ;;  %2093 = vmatpush3.msra.mxu1 %v2313_v15  ;;  %v478_v59 = vadd.f32 %v477_v50, %v476_v53  ;;  %v449_v14 = vmul.f32 %v2349_v25, %v2349_v25  ;;  %v483_v16 = vsel %vm372_vm0, %v447_v55, 0.0  ;;  %v408_v48 = vsel %vm372_vm0, %v2441_v38, 0.0 }
  0x18   : > { %2075 = vmatprep.subr.mxu0 %v2181_v1  ;;  %2094 = vmatprep.subr.mxu1 %v2181_v1  ;;  %v383_v29 = vadd.f32 %v382_v24, %v381_v26  ;;  %v402_v24 = vsel %vm372_vm0, %v2417_v63, 0.0  ;;  %v450_v26 = vmul.f32 %v2357_v28, %v2357_v28  ;;  %v453_v49 = vmul.f32 %v2376_v36, %v2376_v36 }
  0x19   : > { %2076 = vmatpush3.msra.mxu0 %v2327_v19  ;;  %2079 = vmatprep.mubr.msk.f32.mxu0 %vm2182_vm1, %v2181_v1  ;;  %v480_v11 = vadd.f32 %v479_v56, %v478_v59  ;;  %v454_v56 = vmul.f32 %v2391_v44, %v2391_v44  ;;  %v2465_v59 = vld [vmem:[%s2274_s18 + $0xa8] sm:$0xff] }
  0x1a   : > { %2077 = vmatprep.subr.mxu0 %v2181_v1  ;;  %2095 = vmatpush3.msra.mxu1 %v2327_v19  ;;  %v385_v32 = vadd.f32 %v384_v27, %v383_v29  ;;  %v485_v27 = vsel %vm372_vm0, %v448_v61, 0.0  ;;  %v2433_v29 = vld [vmem:[%s2274_s18 + $0x88] sm:$0xff]  ;;  %v489_v43 = vsel %vm372_vm0, %v450_v26, 0.0  ;;  %v2481_v26 = vld [vmem:[%s2274_s18 + $0xb8] sm:$0xff] }
  0x1b   : > { %2078 = vmatpush3.msra.mxu0 %v2341_v23  ;;  %2096 = vmatprep.subr.mxu1 %v2181_v1  ;;  %v482_v22 = vadd.f32 %v481_v62, %v480_v11  ;;  %v495_v11 = vsel %vm372_vm0, %v453_v49, 0.0 }
  0x1c   : > { %2097 = vmatpush3.msra.mxu1 %v2341_v23  ;;  %2098 = vmatprep.mubr.msk.f32.mxu1 %vm2182_vm1, %v2181_v1  ;;  %v387_v35 = vadd.f32 %v386_v30, %v385_v32 }
  0x1d   : > { %2101 = vmatprep.subr.mxu0 %v2181_v1  ;;  %2120 = vmatprep.subr.mxu1 %v2181_v1  ;;  %v484_v32 = vadd.f32 %v483_v16, %v482_v22  ;;  %v456_v22 = vmul.f32 %v2409_v57, %v2409_v57 }
  0x1e   : > { %v389_v41 = vadd.f32 %v388_v33, %v387_v35  ;;  %v404_v33 = vsel %vm372_vm0, %v2425_v18, 0.0  ;;  %v451_v35 = vmul.f32 %v2366_v31, %v2366_v31 }
  0x1f   : > { %v486_v40 = vadd.f32 %v485_v27, %v484_v32 }
  0x20   : > { %v391_v45 = vadd.f32 %v390_v37, %v389_v41  ;;  %v487_v37 = vsel %vm372_vm0, %v449_v14, 0.0  ;;  %v406_v41 = vsel %vm372_vm0, %v2433_v29, 0.0  ;;  %v491_v50 = vsel %vm372_vm0, %v451_v35, 0.0 }
  0x21   : > { %v488_v47 = vadd.f32 %v487_v37, %v486_v40  ;;  %v2489_v37 = vld [vmem:[%s2274_s18 + $0xc0] sm:$0xff] }
  0x22   : > { %v393_v52 = vadd.f32 %v392_v42, %v391_v45  ;;  %v452_v42 = vmul.f32 %v2373_v34, %v2373_v34  ;;  %v2449_v45 = vld [vmem:[%s2274_s18 + $0x98] sm:$0xff]  ;;  %v420_v49 = vsel %vm372_vm0, %v2489_v37, 0.0 }
  0x23   : > { %v410_v55 = vsel %vm372_vm0, %v2449_v45, 0.0 }
  0x24   : > { %v395_v58 = vadd.f32 %v394_v46, %v393_v52  ;;  %v2457_v52 = vld [vmem:[%s2274_s18 + $0xa0] sm:$0xff] }
  0x25   : > { %v412_v62 = vsel %vm372_vm0, %v2457_v52, 0.0 }
  0x26   : > { %v397_v10 = vadd.f32 %v396_v54, %v395_v58  ;;  %v490_v54 = vadd.f32 %v489_v43, %v488_v47  ;;  %v493_v58 = vsel %vm372_vm0, %v452_v42, 0.0  ;;  %v458_v42 = vmul.f32 %v2425_v18, %v2425_v18 }
  0x27   : > { %v501_v43 = vsel %vm372_vm0, %v456_v22, 0.0  ;;  %v2521_v22 = vld [vmem:[%s2274_s18 + $0xe0] sm:$0xff] }
  0x28   : > { %v399_v20 = vadd.f32 %v398_v60, %v397_v10  ;;  %v492_v61 = vadd.f32 %v491_v50, %v490_v54  ;;  %v455_v10 = vmul.f32 %v2401_v51, %v2401_v51  ;;  %v459_v50 = vmul.f32 %v2433_v29, %v2433_v29  ;;  %v2505_v54 = vld [vmem:[%s2274_s18 + $0xd0] sm:$0xff] }
  0x2a   : > { %v401_v30 = vadd.f32 %v400_v12, %v399_v20  ;;  %v2473_v12 = vld [vmem:[%s2274_s18 + $0xb0] sm:$0xff]  ;;  %v494_v16 = vadd.f32 %v493_v58, %v492_v61  ;;  %v414_v20 = vsel %vm372_vm0, %v2465_v59, 0.0  ;;  %v499_v35 = vsel %vm372_vm0, %v455_v10, 0.0 }
  0x2b   : > { %v416_v32 = vsel %vm372_vm0, %v2473_v12, 0.0  ;;  %v505_v61 = vsel %vm372_vm0, %v458_v42, 0.0  ;;  %v463_v42 = vmul.f32 %v2465_v59, %v2465_v59 }
  0x2c   : > { %v403_v39 = vadd.f32 %v402_v24, %v401_v30  ;;  %v497_v24 = vsel %vm372_vm0, %v454_v56, 0.0  ;;  %v496_v30 = vadd.f32 %v495_v11, %v494_v16  ;;  %v461_v16 = vmul.f32 %v2449_v45, %v2449_v45 }
  0x2e   : > { %v405_v46 = vadd.f32 %v404_v33, %v403_v39  ;;  %v457_v33 = vmul.f32 %v2417_v63, %v2417_v63  ;;  %v498_v40 = vadd.f32 %v497_v24, %v496_v30 }
  0x30   : > { %v407_v53 = vadd.f32 %v406_v41, %v405_v46  ;;  %v418_v41 = vsel %vm372_vm0, %v2481_v26, 0.0  ;;  %v2497_v46 = vld [vmem:[%s2274_s18 + $0xc8] sm:$0xff] }
  0x31   : > { %v422_v58 = vsel %vm372_vm0, %v2497_v46, 0.0 }
  0x32   : > { %v409_v60 = vadd.f32 %v408_v48, %v407_v53  ;;  %v500_v48 = vadd.f32 %v499_v35, %v498_v40  ;;  %v503_v53 = vsel %vm372_vm0, %v457_v33, 0.0  ;;  %v2529_v35 = vld [vmem:[%s2274_s18 + $0xe8] sm:$0xff] }
  0x34   : > { %v411_v14 = vadd.f32 %v410_v55, %v409_v60  ;;  %v502_v56 = vadd.f32 %v501_v43, %v500_v48  ;;  %v460_v60 = vmul.f32 %v2441_v38, %v2441_v38  ;;  %v511_v43 = vsel %vm372_vm0, %v461_v16, 0.0 }
  0x36   : > { %v413_v27 = vadd.f32 %v412_v62, %v411_v14  ;;  %v2513_v62 = vld [vmem:[%s2274_s18 + $0xd8] sm:$0xff]  ;;  %v504_v11 = vadd.f32 %v503_v53, %v502_v56  ;;  %v424_v14 = vsel %vm372_vm0, %v2505_v54, 0.0  ;;  %v509_v33 = vsel %vm372_vm0, %v460_v60, 0.0 }
  0x37   : > { %v426_v30 = vsel %vm372_vm0, %v2513_v62, 0.0  ;;  %v464_v53 = vmul.f32 %v2473_v12, %v2473_v12  ;;  %v2545_v56 = vld [vmem:[%s2274_s18 + $0xf8] sm:$0xff] }
  0x38   : > { %v415_v39 = vadd.f32 %v414_v20, %v413_v27  ;;  %v507_v20 = vsel %vm372_vm0, %v459_v50, 0.0  ;;  %v506_v27 = vadd.f32 %v505_v61, %v504_v11  ;;  %v430_v50 = vsel %vm372_vm0, %v2529_v35, 0.0 }
  0x39   : > { %v515_v11 = vsel %vm372_vm0, %v463_v42, 0.0  ;;  %v468_v42 = vmul.f32 %v2505_v54, %v2505_v54 }
  0x3a   : > { %v417_v47 = vadd.f32 %v416_v32, %v415_v39  ;;  %v462_v32 = vmul.f32 %v2457_v52, %v2457_v52  ;;  %v508_v40 = vadd.f32 %v507_v20, %v506_v27  ;;  %v434_v20 = vsel %vm372_vm0, %v2545_v56, 0.0 }
  0x3b   : > { %v517_v27 = vsel %vm372_vm0, %v464_v53, 0.0 }
  0x3c   : > { %v419_v55 = vadd.f32 %v418_v41, %v417_v47  ;;  %v428_v41 = vsel %vm372_vm0, %v2521_v22, 0.0  ;;  %v2537_v47 = vld [vmem:[%s2274_s18 + $0xf0] sm:$0xff]  ;;  %s3055_s18 = scalar_lea.vmem %s3131_s7, %s2811_s9 }
  0x3d   : > { %v432_v61 = vsel %vm372_vm0, %v2537_v47, 0.0 }
  0x3e   : > { %v421_v10 = vadd.f32 %v420_v49, %v419_v55  ;;  %v510_v49 = vadd.f32 %v509_v33, %v508_v40  ;;  %v513_v55 = vsel %vm372_vm0, %v462_v32, 0.0  ;;  %v467_v33 = vmul.f32 %v2497_v46, %v2497_v46 }
  0x40   : > { %v423_v24 = vadd.f32 %v422_v58, %v421_v10  ;;  %v512_v60 = vadd.f32 %v511_v43, %v510_v49  ;;  %v465_v10 = vmul.f32 %v2481_v26, %v2481_v26  ;;  %v523_v53 = vsel %vm372_vm0, %v467_v33, 0.0 }
  0x42   : > { %v425_v39 = vadd.f32 %v424_v14, %v423_v24  ;;  %v514_v16 = vadd.f32 %v513_v55, %v512_v60  ;;  %v466_v24 = vmul.f32 %v2489_v37, %v2489_v37  ;;  %v470_v60 = vmul.f32 %v2521_v22, %v2521_v22 }
  0x44   : > { %v427_v48 = vadd.f32 %v426_v30, %v425_v39  ;;  %v516_v32 = vadd.f32 %v515_v11, %v514_v16  ;;  %v519_v39 = vsel %vm372_vm0, %v465_v10, 0.0  ;;  %v521_v43 = vsel %vm372_vm0, %v466_v24, 0.0 }
  0x46   : > { %v429_v58 = vadd.f32 %v428_v41, %v427_v48  ;;  %v518_v41 = vadd.f32 %v517_v27, %v516_v32  ;;  %v472_v27 = vmul.f32 %v2537_v47, %v2537_v47 }
  0x48   : > { %v431_v14 = vadd.f32 %v430_v50, %v429_v58  ;;  %v520_v49 = vadd.f32 %v519_v39, %v518_v41  ;;  %v469_v50 = vmul.f32 %v2513_v62, %v2513_v62  ;;  %v473_v39 = vmul.f32 %v2545_v56, %v2545_v56 }
  0x4a   : > { %v433_v30 = vadd.f32 %v432_v61, %v431_v14  ;;  %v522_v58 = vadd.f32 %v521_v43, %v520_v49  ;;  %v525_v61 = vsel %vm372_vm0, %v468_v42, 0.0  ;;  %v471_v14 = vmul.f32 %v2529_v35, %v2529_v35 }
  0x4b   : > { %v527_v16 = vsel %vm372_vm0, %v469_v50, 0.0  ;;  %v533_v43 = vsel %vm372_vm0, %v472_v27, 0.0  ;;  %v535_v49 = vsel %vm372_vm0, %v473_v39, 0.0  ;;  %v2164_v27 = vld [vmem:[%s3128_s4 + $0x24] ss:$8 sps:$4 sm:$0xff]  }
  0x4c   : > { %v435_v40 = vadd.f32 %v434_v20, %v433_v30  ;;  %v524_v11 = vadd.f32 %v523_v53, %v522_v58  ;;  %v529_v30 = vsel %vm372_vm0, %v470_v60, 0.0  ;;  %v2168_v39 = vld [vmem:[%s3128_s4] ss:$8 sps:$4 sm:$0xff]  }
  0x4e   : > { %v436_v48 = vrot.slane %v435_v40, 4  ;;  %v526_v24 = vadd.f32 %v525_v61, %v524_v11 }
  0x50   : > { %v437_v55 = vadd.f32 %v436_v48, %v435_v40  ;;  %v528_v33 = vadd.f32 %v527_v16, %v526_v24  ;;  %v531_v40 = vsel %vm372_vm0, %v471_v14, 0.0 }
  0x52   : > { %v438_v10 = vrot.slane %v437_v55, 2  ;;  %v530_v42 = vadd.f32 %v529_v30, %v528_v33  ;;  %v2162_v30 = vld [vmem:[%s3128_s4 + $0x20] ss:$8 sps:$4 sm:$0xff]   ;;  %v2165_v33 = vld [vmem:[%s3128_s4 + $0x10] ss:$8 sps:$4 sm:$0xff]  }
  0x54   : > { %v439_v20 = vadd.f32 %v438_v10, %v437_v55  ;;  %v532_v48 = vadd.f32 %v531_v40, %v530_v42  ;;  %v2170_v40 = vld [vmem:[%s3128_s4 + $0x4] ss:$8 sps:$4 sm:$0xff]   ;;  %v874_v42 = vlaneseq }
  0x56   : > { %v440_v32 = vrot.slane %v439_v20, 1  ;;  %v534_v50 = vadd.f32 %v533_v43, %v532_v48  ;;  %v2660_v43 = vshrl.u32 %v874_v42, 7  ;;  %v696_v48 = vld [vmem:[%s3126_s2] sm:$0x1] }
  0x58   : > { %v441_v41 = vadd.f32 %v440_v32, %v439_v20  ;;  %v536_v53 = vadd.f32 %v535_v49, %v534_v50  ;;  %v2167_v32 = vld [vmem:[%s3128_s4 + $0x14] ss:$8 sps:$4 sm:$0xff]   ;;  %v2666_v49 = vsub.s32 0, %v2660_v43 }
  0x5a   : > { %2080 = vmatmul.mubr.msk.f32.vlgmr.msra.gmra.mxu0 %vm372_vm0, %v441_v41  ;;  %v537_v55 = vrot.slane %v536_v53, 4  ;;  %v2183_v41 = vmov 0  }
  0x5b   : > { %2102 = vmatpush3.xpose.msk.msra.mxu0 %vm697_vm2, %v2241_v0  ;;  %2117 = vmatprep.mubr.msk.f32.mxu0 %vm2182_vm1, %v2181_v1 }
  0x5c   : > { %2103 = vmatprep.subr.mxu0 %v2181_v1  ;;  %v538_v58 = vadd.f32 %v537_v55, %v536_v53 }
  0x5e   : > { %v539_v60 = vrot.slane %v538_v58, 2 }
  0x5f   : > { %2104 = vmatpush3.xpose.msk.msra.mxu0 %vm697_vm2, %v2248_v2 }
  0x60   : > { %2105 = vmatprep.subr.mxu0 %v2181_v1  ;;  %v540_v61 = vadd.f32 %v539_v60, %v538_v58  ;;  %v796_v58 = vld [vmem:[%s3127_s3] sm:$0x1] }
  0x62   : > { %v541_v10 = vrot.slane %v540_v61, 1 }
  0x63   : > { %2106 = vmatpush3.xpose.msk.msra.mxu0 %vm697_vm2, %v2255_v3 }
  0x64   : > { %2107 = vmatprep.subr.mxu0 %v2181_v1  ;;  %v542_v11 = vadd.f32 %v541_v10, %v540_v61 }
  0x66   : > { %2099 = vmatmul.mubr.msk.f32.vlgmr.msra.gmra.mxu1 %vm372_vm0, %v542_v11 }
  0x67   : > { %2108 = vmatpush3.xpose.msk.msra.mxu0 %vm697_vm2, %v2269_v4  ;;  %2121 = vmatpush3.xpose.msk.msra.mxu1 %vm697_vm2, %v2241_v0  ;;  %v2161_v0 = vld [vmem:[%s3128_s4 + $0x34] ss:$8 sps:$4 sm:$0xff]  }
  0x68   : > { %2109 = vmatprep.subr.mxu0 %v2181_v1  ;;  %2136 = vmatprep.mubr.msk.f32.mxu1 %vm2182_vm1, %v2181_v1 }
  0x69   : > { %2122 = vmatprep.subr.mxu1 %v2181_v1 }
  0x6b   : > { %2110 = vmatpush3.xpose.msk.msra.mxu0 %vm697_vm2, %v2292_v8  ;;  %2123 = vmatpush3.xpose.msk.msra.mxu1 %vm697_vm2, %v2248_v2 }
  0x6c   : > { %2111 = vmatprep.subr.mxu0 %v2181_v1  ;;  %2124 = vmatprep.subr.mxu1 %v2181_v1 }
  0x6f   : > { %2112 = vmatpush3.xpose.msk.msra.mxu0 %vm697_vm2, %v2313_v15  ;;  %2125 = vmatpush3.xpose.msk.msra.mxu1 %vm697_vm2, %v2255_v3 }
  0x70   : > { %2113 = vmatprep.subr.mxu0 %v2181_v1  ;;  %2126 = vmatprep.subr.mxu1 %v2181_v1 }
  0x73   : > { %2114 = vmatpush3.xpose.msk.msra.mxu0 %vm697_vm2, %v2327_v19  ;;  %2127 = vmatpush3.xpose.msk.msra.mxu1 %vm697_vm2, %v2269_v4 }
  0x74   : > { %2115 = vmatprep.subr.mxu0 %v2181_v1  ;;  %2128 = vmatprep.subr.mxu1 %v2181_v1 }
  0x77   : > { %2116 = vmatpush3.xpose.msk.msra.mxu0 %vm697_vm2, %v2341_v23  ;;  %2129 = vmatpush3.xpose.msk.msra.mxu1 %vm697_vm2, %v2292_v8 }
  0x78   : > { %2130 = vmatprep.subr.mxu1 %v2181_v1  ;;  %1081 = vmatprep.subr.bf16.mxu0 %v2161_v0 }
  0x7b   : > { %2131 = vmatpush3.xpose.msk.msra.mxu1 %vm697_vm2, %v2313_v15 }
  0x7c   : > { %2132 = vmatprep.subr.mxu1 %v2181_v1 }
  0x7f   : > { %2133 = vmatpush3.xpose.msk.msra.mxu1 %vm697_vm2, %v2327_v19 }
  0x80   : > { %2134 = vmatprep.subr.mxu1 %v2181_v1  ;;  %v2159_v1 = vld [vmem:[%s3128_s4 + $0x30] ss:$8 sps:$4 sm:$0xff]  }
  0x83   : > { %2135 = vmatpush3.xpose.msk.msra.mxu1 %vm697_vm2, %v2341_v23 }
  0x84   : > { %2139 = vmatprep.subr.bf16.mxu1 %v2161_v0 }
 0x11a   : > { %v612_v2 = vpop.f32.mrf.mxu0 }
 0x11b   : > { %v690_v4 = vmul.f32 0.00048828125, %v612_v2 }
 0x11c   : > { %v2081_v3 = vpop.f32.mrf.mxu0 }
 0x11d   : > { %v692_v8 = vmul.f32 %v690_v4, %v690_v4 }
 0x126   : > { %v685_v15 = vpop.f32.mrf.mxu1 }
 0x127   : > { %v691_v14 = vmul.f32 0.00048828125, %v685_v15 }
 0x128   : > { %v2100_v16 = vpop.f32.mrf.mxu1 }
 0x129   : > { %v693_v20 = vsub.f32 %v691_v14, %v692_v8 }
 0x12b   : > { %v694_v19 = vadd.f32 1e-05, %v693_v20 }
 0x12d   : > { %2171 = vrsqrt.f32 %v694_v19 }
 0x13a   : > { %v2172_v23 = vpop.eup %2171 }
 0x13b   : > { %2118 = vmatmul.mubr.msk.f32.vlgmr.msra.gmra.mxu0 %vm697_vm2, %v2172_v23  ;;  %v797_v24 = vmul.f32 %v2172_v23, %v690_v4 }
 0x13c   : > { %1082 = vmatpush1.bf16.msra.mxu0 %v2159_v1  ;;  %1105 = vmatprep.mubr.bf16.mxu0 %v2183_v41 }
 0x13d   : > { %2137 = vmatmul.mubr.msk.f32.vlgmr.msra.gmra.mxu1 %vm697_vm2, %v797_v24  ;;  %1083 = vmatprep.subr.bf16.mxu0 %v2164_v27 }
 0x13e   : > { %2143 = vmatpush1.bf16.msra.mxu1 %v2159_v1  ;;  %1185 = vmatprep.mubr.bf16.mxu1 %v2183_v41 }
 0x13f   : > { %2140 = vmatprep.subr.bf16.mxu1 %v2164_v27 }
 0x140   : > { %1084 = vmatpush1.bf16.msra.mxu0 %v2162_v30 }
 0x141   : > { %1085 = vmatprep.subr.bf16.mxu0 %v2167_v32 }
 0x142   : > { %2144 = vmatpush1.bf16.msra.mxu1 %v2162_v30 }
 0x143   : > { %2141 = vmatprep.subr.bf16.mxu1 %v2167_v32 }
 0x144   : > { %1086 = vmatpush1.bf16.msra.mxu0 %v2165_v33 }
 0x145   : > { %1087 = vmatprep.subr.bf16.mxu0 %v2170_v40 }
 0x146   : > { %2145 = vmatpush1.bf16.msra.mxu1 %v2165_v33 }
 0x147   : > { %2142 = vmatprep.subr.bf16.mxu1 %v2170_v40 }
 0x148   : > { %1088 = vmatpush1.bf16.msra.mxu0 %v2168_v39 }
 0x14a   : > { %2146 = vmatpush1.bf16.msra.mxu1 %v2168_v39 }
 0x1fb   : > { %v791_v50 = vpop.f32.mrf.mxu0 }
 0x1fc   : > { %v795_v53 = vmul.f32 %v791_v50, %v696_v48 }
 0x1fd   : > { %v2119_v55 = vpop.f32.mrf.mxu0  ;;  %v867_v60 = vpop.f32.mrf.mxu1 }
 0x1fe   : > { %v2672_v61 = vrot.slane %v795_v53, %v2666_v49  ;;  %v871_v10 = vmul.f32 %v867_v60, %v696_v48 }
 0x1ff   : > { %v2138_v11 = vpop.f32.mrf.mxu1 }
 0x200   : > { %v872_v0 = vsub.f32 %v796_v58, %v871_v10  ;;  %v879_v2 = vmul.f32 %v2672_v61, %v2279_v5  ;;  %v880_v4 = vmul.f32 %v2672_v61, %v2282_v6  ;;  %v895_v8 = vmul.f32 %v2672_v61, %v2425_v18 }
 0x201   : > { %v896_v15 = vmul.f32 %v2672_v61, %v2433_v29  ;;  %v881_v23 = vmul.f32 %v2672_v61, %v2285_v7  ;;  %v882_v6 = vmul.f32 %v2672_v61, %v2295_v9  ;;  %v897_v18 = vmul.f32 %v2672_v61, %v2441_v38 }
 0x202   : > { %v2677_v3 = vrot.slane %v872_v0, %v2666_v49  ;;  %v898_v29 = vmul.f32 %v2672_v61, %v2449_v45  ;;  %v883_v38 = vmul.f32 %v2672_v61, %v2306_v13  ;;  %v884_v45 = vmul.f32 %v2672_v61, %v2320_v17 }
 0x203   : > { %v899_v33 = vmul.f32 %v2672_v61, %v2457_v52  ;;  %v900_v39 = vmul.f32 %v2672_v61, %v2465_v59  ;;  %v885_v52 = vmul.f32 %v2672_v61, %v2334_v21  ;;  %v886_v59 = vmul.f32 %v2672_v61, %v2349_v25 }
 0x204   : > { %v917_v14 = vadd.f32 %v2677_v3, %v879_v2  ;;  %v918_v16 = vadd.f32 %v2677_v3, %v880_v4  ;;  %v933_v20 = vadd.f32 %v2677_v3, %v895_v8  ;;  %v934_v5 = vadd.f32 %v2677_v3, %v896_v15 }
 0x205   : > { %v919_v24 = vadd.f32 %v2677_v3, %v881_v23  ;;  %v920_v7 = vadd.f32 %v2677_v3, %v882_v6  ;;  %v935_v27 = vadd.f32 %v2677_v3, %v897_v18  ;;  %v936_v30 = vadd.f32 %v2677_v3, %v898_v29 }
 0x206   : > { %v949_v19 = vpack.c.bf16 %v918_v16, %v917_v14  ;;  %v957_v1 = vpack.c.bf16 %v934_v5, %v933_v20  ;;  %v921_v40 = vadd.f32 %v2677_v3, %v883_v38  ;;  %v922_v13 = vadd.f32 %v2677_v3, %v884_v45 }
 0x207   : > { %v950_v32 = vpack.c.bf16 %v920_v7, %v919_v24  ;;  %v958_v9 = vpack.c.bf16 %v936_v30, %v935_v27  ;;  %v937_v42 = vadd.f32 %v2677_v3, %v899_v33  ;;  %v938_v48 = vadd.f32 %v2677_v3, %v900_v39 }
 0x208   : > { %1877 = vmatmul.mubr.msk.bf16.vlgmr.msra.gmra.mxu0 %vm372_vm0, %v949_v19  ;;  %1885 = vmatmul.mubr.msk.bf16.vlgmr.msra.gmra.mxu1 %vm372_vm0, %v957_v1  ;;  %v951_v50 = vpack.c.bf16 %v922_v13, %v921_v40  ;;  %v901_v53 = vmul.f32 %v2672_v61, %v2473_v12  ;;  %v902_v55 = vmul.f32 %v2672_v61, %v2481_v26 }
 0x209   : > { %1115 = vmatprep.mubr.bf16.mxu0 %v2183_v41  ;;  %1195 = vmatprep.mubr.bf16.mxu1 %v2183_v41  ;;  %v959_v17 = vpack.c.bf16 %v938_v48, %v937_v42  ;;  %v923_v58 = vadd.f32 %v2677_v3, %v885_v52  ;;  %v924_v21 = vadd.f32 %v2677_v3, %v886_v59 }
 0x20a   : > { %v939_v60 = vadd.f32 %v2677_v3, %v901_v53  ;;  %v940_v10 = vadd.f32 %v2677_v3, %v902_v55  ;;  %v887_v12 = vmul.f32 %v2672_v61, %v2357_v28  ;;  %v888_v26 = vmul.f32 %v2672_v61, %v2366_v31 }
 0x20b   : > { %v952_v11 = vpack.c.bf16 %v924_v21, %v923_v58  ;;  %v903_v0 = vmul.f32 %v2672_v61, %v2489_v37  ;;  %v904_v2 = vmul.f32 %v2672_v61, %v2497_v46  ;;  %v889_v37 = vmul.f32 %v2672_v61, %v2373_v34 }
 0x20c   : > { %v960_v25 = vpack.c.bf16 %v940_v10, %v939_v60  ;;  %v925_v4 = vadd.f32 %v2677_v3, %v887_v12  ;;  %v926_v28 = vadd.f32 %v2677_v3, %v888_v26  ;;  %v890_v46 = vmul.f32 %v2672_v61, %v2376_v36 }
 0x20d   : > { %v941_v8 = vadd.f32 %v2677_v3, %v903_v0  ;;  %v942_v15 = vadd.f32 %v2677_v3, %v904_v2  ;;  %v905_v16 = vmul.f32 %v2672_v61, %v2505_v54  ;;  %v906_v20 = vmul.f32 %v2672_v61, %v2513_v62 }
 0x20e   : > { %v953_v14 = vpack.c.bf16 %v926_v28, %v925_v4  ;;  %v927_v5 = vadd.f32 %v2677_v3, %v889_v37  ;;  %v928_v34 = vadd.f32 %v2677_v3, %v890_v46  ;;  %v891_v54 = vmul.f32 %v2672_v61, %v2391_v44 }
 0x20f   : > { %v961_v31 = vpack.c.bf16 %v942_v15, %v941_v8  ;;  %v943_v19 = vadd.f32 %v2677_v3, %v905_v16  ;;  %v944_v1 = vadd.f32 %v2677_v3, %v906_v20  ;;  %v892_v62 = vmul.f32 %v2672_v61, %v2401_v51 }
 0x210   : > { %1878 = vmatmul.mubr.msk.bf16.gmra.mxu0 %vm372_vm0, %v950_v32  ;;  %1886 = vmatmul.mubr.msk.bf16.gmra.mxu1 %vm372_vm0, %v958_v9  ;;  %v954_v23 = vpack.c.bf16 %v928_v34, %v927_v5  ;;  %v907_v6 = vmul.f32 %v2672_v61, %v2521_v22  ;;  %v908_v18 = vmul.f32 %v2672_v61, %v2529_v35 }
 0x211   : > { %1125 = vmatprep.mubr.bf16.mxu0 %v2183_v41  ;;  %1205 = vmatprep.mubr.bf16.mxu1 %v2183_v41  ;;  %v962_v36 = vpack.c.bf16 %v944_v1, %v943_v19  ;;  %v929_v29 = vadd.f32 %v2677_v3, %v891_v54  ;;  %v930_v44 = vadd.f32 %v2677_v3, %v892_v62 }
 0x212   : > { %v945_v24 = vadd.f32 %v2677_v3, %v907_v6  ;;  %v946_v7 = vadd.f32 %v2677_v3, %v908_v18  ;;  %v893_v22 = vmul.f32 %v2672_v61, %v2409_v57  ;;  %v894_v35 = vmul.f32 %v2672_v61, %v2417_v63 }
 0x213   : > { %v955_v27 = vpack.c.bf16 %v930_v44, %v929_v29  ;;  %v909_v30 = vmul.f32 %v2672_v61, %v2537_v47  ;;  %v910_v32 = vmul.f32 %v2672_v61, %v2545_v56  ;;  %v973_v47 = vld [vmem:[%s3129_s5] sm:$0x3]  ;;  %v981_v56 = vsub.s32 1, %v2660_v43 }
 0x214   : > { %v963_v51 = vpack.c.bf16 %v946_v7, %v945_v24  ;;  %v931_v57 = vadd.f32 %v2677_v3, %v893_v22  ;;  %v932_v9 = vadd.f32 %v2677_v3, %v894_v35 }
 0x215   : > { %v947_v38 = vadd.f32 %v2677_v3, %v909_v30  ;;  %v948_v45 = vadd.f32 %v2677_v3, %v910_v32  ;;  %v2813_v61 = vrot.slane %v973_v47, %v981_v56 }
 0x216   : > { %v956_v63 = vpack.c.bf16 %v932_v9, %v931_v57 }
 0x217   : > { %v964_v33 = vpack.c.bf16 %v948_v45, %v947_v38 }
 0x218   : > { %1879 = vmatmul.mubr.msk.bf16.gmra.mxu0 %vm372_vm0, %v951_v50  ;;  %1887 = vmatmul.mubr.msk.bf16.gmra.mxu1 %vm372_vm0, %v959_v17 }
 0x219   : > { %1135 = vmatprep.mubr.bf16.mxu0 %v2183_v41  ;;  %1215 = vmatprep.mubr.bf16.mxu1 %v2183_v41 }
 0x220   : > { %1880 = vmatmul.mubr.msk.bf16.gmra.mxu0 %vm372_vm0, %v952_v11  ;;  %1888 = vmatmul.mubr.msk.bf16.gmra.mxu1 %vm372_vm0, %v960_v25 }
 0x221   : > { %1145 = vmatprep.mubr.bf16.mxu0 %v2183_v41  ;;  %1225 = vmatprep.mubr.bf16.mxu1 %v2183_v41 }
 0x228   : > { %1881 = vmatmul.mubr.msk.bf16.gmra.mxu0 %vm372_vm0, %v953_v14  ;;  %1889 = vmatmul.mubr.msk.bf16.gmra.mxu1 %vm372_vm0, %v961_v31 }
 0x229   : > { %1155 = vmatprep.mubr.bf16.mxu0 %v2183_v41  ;;  %1235 = vmatprep.mubr.bf16.mxu1 %v2183_v41 }
 0x230   : > { %1882 = vmatmul.mubr.msk.bf16.gmra.mxu0 %vm372_vm0, %v954_v23  ;;  %1890 = vmatmul.mubr.msk.bf16.gmra.mxu1 %vm372_vm0, %v962_v36 }
 0x231   : > { %1165 = vmatprep.mubr.bf16.mxu0 %v2183_v41  ;;  %1245 = vmatprep.mubr.bf16.mxu1 %v2183_v41 }
 0x238   : > { %1883 = vmatmul.mubr.msk.bf16.gmra.mxu0 %vm372_vm0, %v955_v27  ;;  %1891 = vmatmul.mubr.msk.bf16.gmra.mxu1 %vm372_vm0, %v963_v51 }
 0x239   : > { %1175 = vmatprep.mubr.bf16.mxu0 %v2183_v41  ;;  %1255 = vmatprep.mubr.bf16.mxu1 %v2183_v41  ;;  %v2808_v41 = vrot.slane %v973_v47, %v2666_v49 }
 0x240   : > { %1884 = vmatmul.mubr.msk.bf16.gmra.mxu0 %vm372_vm0, %v956_v63  ;;  %1892 = vmatmul.mubr.msk.bf16.gmra.mxu1 %vm372_vm0, %v964_v33 }
 0x2c8   : > { %v1107_v3 = vpop.f32.mrf.mxu0  ;;  %v1187_v39 = vpop.f32.mrf.mxu1 }
 0x2c9   : > { %v1108_v40 = vadd.f32 %v1107_v3, %v2808_v41  ;;  %v1188_v13 = vadd.f32 %v1187_v39, %v2808_v41 }
 0x2ca   : > { %v1109_v43 = vpop.f32.mrf.mxu0  ;;  %v1189_v49 = vpop.f32.mrf.mxu1 }
 0x2cb   : > { %v1963_v42 = vpack.c.bf16 %v1108_v40, %v1108_v40  ;;  %v1979_v48 = vpack.c.bf16 %v1188_v13, %v1188_v13  ;;  %v1110_v50 = vadd.f32 %v1109_v43, %v2813_v61  ;;  %v1190_v17 = vadd.f32 %v1189_v49, %v2813_v61 }
 0x2cc   : > { %v1111_v52 = vpop.f32.mrf.mxu0  ;;  %v1191_v59 = vpop.f32.mrf.mxu1 }
 0x2cd   : > { %1411 = vst.msk [vmem:[%s2821_s12] sm:$0xf] %vm1410_vm3, %v1963_v42  ;;  %1427 = vst.msk [vmem:[%s2821_s12 + $0x40] sm:$0xf] %vm1410_vm3, %v1979_v48  ;;  %v1995_v53 = vpack.c.bf16 %v1110_v50, %v1110_v50  ;;  %v2011_v55 = vpack.c.bf16 %v1190_v17, %v1190_v17  ;;  %v1112_v58 = vadd.f32 %v1111_v52, %v2808_v41  ;;  %1443 = vrot.lane.b32.xlu0 %v1963_v42, %s2184_s15 }
 0x2ce   : > { %v1192_v21 = vadd.f32 %v1191_v59, %v2808_v41  ;;  %v1113_v60 = vpop.f32.mrf.mxu0  ;;  %v1193_v10 = vpop.f32.mrf.mxu1 }
 0x2cf   : > { %1683 = vst.msk [vmem:[%s2829_s14] sm:$0xf] %vm1410_vm3, %v1995_v53  ;;  %1699 = vst.msk [vmem:[%s2829_s14 + $0x40] sm:$0xf] %vm1410_vm3, %v2011_v55  ;;  %v1964_v11 = vpack.c.bf16 %v1112_v58, %v1112_v58  ;;  %v1114_v12 = vadd.f32 %v1113_v60, %v2813_v61  ;;  %v1194_v26 = vadd.f32 %v1193_v10, %v2813_v61 }
 0x2d0   : > { %v1980_v25 = vpack.c.bf16 %v1192_v21, %v1192_v21  ;;  %v1117_v0 = vpop.f32.mrf.mxu0  ;;  %v1197_v2 = vpop.f32.mrf.mxu1 }
 0x2d1   : > { %1412 = vst.msk [vmem:[%s2821_s12 + $0x4] sm:$0xf] %vm1410_vm3, %v1964_v11  ;;  %v1996_v4 = vpack.c.bf16 %v1114_v12, %v1114_v12  ;;  %v2012_v28 = vpack.c.bf16 %v1194_v26, %v1194_v26  ;;  %v1118_v8 = vadd.f32 %v1117_v0, %v2808_v41  ;;  %v1198_v15 = vadd.f32 %v1197_v2, %v2808_v41 }
 0x2d2   : > { %1428 = vst.msk [vmem:[%s2821_s12 + $0x44] sm:$0xf] %vm1410_vm3, %v1980_v25  ;;  %1477 = vrot.lane.b32.xlu1 %v1980_v25, %s2184_s15  ;;  %1475 = vrot.lane.b32.xlu0 %v1979_v48, %s2184_s15  ;;  %v1119_v14 = vpop.f32.mrf.mxu0  ;;  %v1199_v31 = vpop.f32.mrf.mxu1 }
 0x2d3   : > { %1684 = vst.msk [vmem:[%s2829_s14 + $0x4] sm:$0xf] %vm1410_vm3, %v1996_v4  ;;  %1700 = vst.msk [vmem:[%s2829_s14 + $0x44] sm:$0xf] %vm1410_vm3, %v2012_v28  ;;  %v1965_v37 = vpack.c.bf16 %v1118_v8, %v1118_v8  ;;  %v1981_v46 = vpack.c.bf16 %v1198_v15, %v1198_v15  ;;  %v1120_v16 = vadd.f32 %v1119_v14, %v2813_v61 }
 0x2d4   : > { %v1200_v20 = vadd.f32 %v1199_v31, %v2813_v61  ;;  %v1121_v5 = vpop.f32.mrf.mxu0  ;;  %v1201_v34 = vpop.f32.mrf.mxu1 }
 0x2d5   : > { %1413 = vst.msk [vmem:[%s2821_s12 + $0x8] sm:$0xf] %vm1410_vm3, %v1965_v37  ;;  %1429 = vst.msk [vmem:[%s2821_s12 + $0x48] sm:$0xf] %vm1410_vm3, %v1981_v46  ;;  %v1997_v19 = vpack.c.bf16 %v1120_v16, %v1120_v16  ;;  %v1122_v23 = vadd.f32 %v1121_v5, %v2808_v41  ;;  %v1202_v36 = vadd.f32 %v1201_v34, %v2808_v41 }
 0x2d6   : > { %v2013_v1 = vpack.c.bf16 %v1200_v20, %v1200_v20  ;;  %1447 = vrot.lane.b32.xlu1 %v1965_v37, %s2184_s15  ;;  %1445 = vrot.lane.b32.xlu0 %v1964_v11, %s2184_s15  ;;  %v1123_v54 = vpop.f32.mrf.mxu0  ;;  %v1203_v62 = vpop.f32.mrf.mxu1 }
 0x2d7   : > { %1685 = vst.msk [vmem:[%s2829_s14 + $0x8] sm:$0xf] %vm1410_vm3, %v1997_v19  ;;  %v1966_v6 = vpack.c.bf16 %v1122_v23, %v1122_v23  ;;  %v1982_v18 = vpack.c.bf16 %v1202_v36, %v1202_v36  ;;  %v1124_v29 = vadd.f32 %v1123_v54, %v2813_v61  ;;  %v1204_v44 = vadd.f32 %v1203_v62, %v2813_v61 }
 0x2d8   : > { %1701 = vst.msk [vmem:[%s2829_s14 + $0x48] sm:$0xf] %vm1410_vm3, %v2013_v1  ;;  %v1127_v24 = vpop.f32.mrf.mxu0  ;;  %v1207_v7 = vpop.f32.mrf.mxu1 }
 0x2d9   : > { %1414 = vst.msk [vmem:[%s2821_s12 + $0xc] sm:$0xf] %vm1410_vm3, %v1966_v6  ;;  %1430 = vst.msk [vmem:[%s2821_s12 + $0x4c] sm:$0xf] %vm1410_vm3, %v1982_v18  ;;  %v1998_v27 = vpack.c.bf16 %v1124_v29, %v1124_v29  ;;  %v2014_v51 = vpack.c.bf16 %v1204_v44, %v1204_v44  ;;  %v1128_v22 = vadd.f32 %v1127_v24, %v2808_v41 }
 0x2da   : > { %v1208_v35 = vadd.f32 %v1207_v7, %v2808_v41  ;;  %1449 = vrot.lane.b32.xlu1 %v1966_v6, %s2184_s15  ;;  %1479 = vrot.lane.b32.xlu0 %v1981_v46, %s2184_s15  ;;  %v1129_v30 = vpop.f32.mrf.mxu0  ;;  %v1209_v32 = vpop.f32.mrf.mxu1 }
 0x2db   : > { %1686 = vst.msk [vmem:[%s2829_s14 + $0xc] sm:$0xf] %vm1410_vm3, %v1998_v27  ;;  %1702 = vst.msk [vmem:[%s2829_s14 + $0x4c] sm:$0xf] %vm1410_vm3, %v2014_v51  ;;  %v1967_v57 = vpack.c.bf16 %v1128_v22, %v1128_v22  ;;  %v1130_v38 = vadd.f32 %v1129_v30, %v2813_v61  ;;  %v1210_v45 = vadd.f32 %v1209_v32, %v2813_v61 }
 0x2dc   : > { %v1983_v9 = vpack.c.bf16 %v1208_v35, %v1208_v35  ;;  %v1131_v63 = vpop.f32.mrf.mxu0  ;;  %v1211_v33 = vpop.f32.mrf.mxu1 }
 0x2dd   : > { %1415 = vst.msk [vmem:[%s2821_s12 + $0x10] sm:$0xf] %vm1410_vm3, %v1967_v57  ;;  %v1999_v47 = vpack.c.bf16 %v1130_v38, %v1130_v38  ;;  %v2015_v56 = vpack.c.bf16 %v1210_v45, %v1210_v45  ;;  %v1132_v3 = vadd.f32 %v1131_v63, %v2808_v41  ;;  %v1212_v39 = vadd.f32 %v1211_v33, %v2808_v41 }
 0x2de   : > { %1431 = vst.msk [vmem:[%s2821_s12 + $0x50] sm:$0xf] %vm1410_vm3, %v1983_v9  ;;  %1481 = vrot.lane.b32.xlu1 %v1982_v18, %s2184_s15  ;;  %1451 = vrot.lane.b32.xlu0 %v1967_v57, %s2184_s15  ;;  %v1133_v40 = vpop.f32.mrf.mxu0  ;;  %v1213_v13 = vpop.f32.mrf.mxu1 }
 0x2df   : > { %1687 = vst.msk [vmem:[%s2829_s14 + $0x10] sm:$0xf] %vm1410_vm3, %v1999_v47  ;;  %1703 = vst.msk [vmem:[%s2829_s14 + $0x50] sm:$0xf] %vm1410_vm3, %v2015_v56  ;;  %v1968_v43 = vpack.c.bf16 %v1132_v3, %v1132_v3  ;;  %v1984_v49 = vpack.c.bf16 %v1212_v39, %v1212_v39  ;;  %v1134_v42 = vadd.f32 %v1133_v40, %v2813_v61 }
 0x2e0   : > { %v1214_v48 = vadd.f32 %v1213_v13, %v2813_v61  ;;  %v1137_v50 = vpop.f32.mrf.mxu0  ;;  %v1217_v17 = vpop.f32.mrf.mxu1 }
 0x2e1   : > { %1416 = vst.msk [vmem:[%s2821_s12 + $0x14] sm:$0xf] %vm1410_vm3, %v1968_v43  ;;  %1432 = vst.msk [vmem:[%s2821_s12 + $0x54] sm:$0xf] %vm1410_vm3, %v1984_v49  ;;  %v2000_v52 = vpack.c.bf16 %v1134_v42, %v1134_v42  ;;  %v1138_v53 = vadd.f32 %v1137_v50, %v2808_v41  ;;  %v1218_v55 = vadd.f32 %v1217_v17, %v2808_v41 }
 0x2e2   : > { %v2016_v59 = vpack.c.bf16 %v1214_v48, %v1214_v48  ;;  %1453 = vrot.lane.b32.xlu1 %v1968_v43, %s2184_s15  ;;  %1483 = vrot.lane.b32.xlu0 %v1983_v9, %s2184_s15  ;;  %v1139_v58 = vpop.f32.mrf.mxu0  ;;  %v1219_v21 = vpop.f32.mrf.mxu1 }
 0x2e3   : > { %1688 = vst.msk [vmem:[%s2829_s14 + $0x14] sm:$0xf] %vm1410_vm3, %v2000_v52  ;;  %v1969_v60 = vpack.c.bf16 %v1138_v53, %v1138_v53  ;;  %v1985_v10 = vpack.c.bf16 %v1218_v55, %v1218_v55  ;;  %v1140_v11 = vadd.f32 %v1139_v58, %v2813_v61  ;;  %v1220_v25 = vadd.f32 %v1219_v21, %v2813_v61 }
 0x2e4   : > { %1704 = vst.msk [vmem:[%s2829_s14 + $0x54] sm:$0xf] %vm1410_vm3, %v2016_v59  ;;  %v1141_v12 = vpop.f32.mrf.mxu0  ;;  %v1221_v26 = vpop.f32.mrf.mxu1 }
 0x2e5   : > { %1417 = vst.msk [vmem:[%s2821_s12 + $0x18] sm:$0xf] %vm1410_vm3, %v1969_v60  ;;  %1433 = vst.msk [vmem:[%s2821_s12 + $0x58] sm:$0xf] %vm1410_vm3, %v1985_v10  ;;  %v2001_v0 = vpack.c.bf16 %v1140_v11, %v1140_v11  ;;  %v2017_v2 = vpack.c.bf16 %v1220_v25, %v1220_v25  ;;  %v1142_v4 = vadd.f32 %v1141_v12, %v2808_v41 }
 0x2e6   : > { %v1222_v28 = vadd.f32 %v1221_v26, %v2808_v41  ;;  %1485 = vrot.lane.b32.xlu1 %v1984_v49, %s2184_s15  ;;  %1455 = vrot.lane.b32.xlu0 %v1969_v60, %s2184_s15  ;;  %v1143_v8 = vpop.f32.mrf.mxu0  ;;  %v1223_v15 = vpop.f32.mrf.mxu1 }
 0x2e7   : > { %1689 = vst.msk [vmem:[%s2829_s14 + $0x18] sm:$0xf] %vm1410_vm3, %v2001_v0  ;;  %1705 = vst.msk [vmem:[%s2829_s14 + $0x58] sm:$0xf] %vm1410_vm3, %v2017_v2  ;;  %v1970_v14 = vpack.c.bf16 %v1142_v4, %v1142_v4  ;;  %v1144_v37 = vadd.f32 %v1143_v8, %v2813_v61  ;;  %v1224_v46 = vadd.f32 %v1223_v15, %v2813_v61 }
 0x2e8   : > { %v1986_v31 = vpack.c.bf16 %v1222_v28, %v1222_v28  ;;  %v1147_v16 = vpop.f32.mrf.mxu0  ;;  %v1227_v20 = vpop.f32.mrf.mxu1 }
 0x2e9   : > { %1418 = vst.msk [vmem:[%s2821_s12 + $0x1c] sm:$0xf] %vm1410_vm3, %v1970_v14  ;;  %v2002_v5 = vpack.c.bf16 %v1144_v37, %v1144_v37  ;;  %v2018_v34 = vpack.c.bf16 %v1224_v46, %v1224_v46  ;;  %v1148_v19 = vadd.f32 %v1147_v16, %v2808_v41  ;;  %v1228_v1 = vadd.f32 %v1227_v20, %v2808_v41 }
 0x2ea   : > { %1434 = vst.msk [vmem:[%s2821_s12 + $0x5c] sm:$0xf] %vm1410_vm3, %v1986_v31  ;;  %1457 = vrot.lane.b32.xlu1 %v1970_v14, %s2184_s15  ;;  %1487 = vrot.lane.b32.xlu0 %v1985_v10, %s2184_s15  ;;  %v1149_v23 = vpop.f32.mrf.mxu0  ;;  %v1229_v36 = vpop.f32.mrf.mxu1 }
 0x2eb   : > { %1690 = vst.msk [vmem:[%s2829_s14 + $0x1c] sm:$0xf] %vm1410_vm3, %v2002_v5  ;;  %1706 = vst.msk [vmem:[%s2829_s14 + $0x5c] sm:$0xf] %vm1410_vm3, %v2018_v34  ;;  %v1971_v54 = vpack.c.bf16 %v1148_v19, %v1148_v19  ;;  %v1987_v62 = vpack.c.bf16 %v1228_v1, %v1228_v1  ;;  %v1150_v6 = vadd.f32 %v1149_v23, %v2813_v61 }
 0x2ec   : > { %v1230_v18 = vadd.f32 %v1229_v36, %v2813_v61  ;;  %v1151_v29 = vpop.f32.mrf.mxu0  ;;  %v1231_v44 = vpop.f32.mrf.mxu1 }
 0x2ed   : > { %1419 = vst.msk [vmem:[%s2821_s12 + $0x20] sm:$0xf] %vm1410_vm3, %v1971_v54  ;;  %1435 = vst.msk [vmem:[%s2821_s12 + $0x60] sm:$0xf] %vm1410_vm3, %v1987_v62  ;;  %v2003_v24 = vpack.c.bf16 %v1150_v6, %v1150_v6  ;;  %v1152_v27 = vadd.f32 %v1151_v29, %v2808_v41  ;;  %v1232_v51 = vadd.f32 %v1231_v44, %v2808_v41 }
 0x2ee   : > { %v2019_v7 = vpack.c.bf16 %v1230_v18, %v1230_v18  ;;  %1489 = vrot.lane.b32.xlu1 %v1986_v31, %s2184_s15  ;;  %1459 = vrot.lane.b32.xlu0 %v1971_v54, %s2184_s15  ;;  %v1153_v22 = vpop.f32.mrf.mxu0  ;;  %v1233_v35 = vpop.f32.mrf.mxu1 }
 0x2ef   : > { %1691 = vst.msk [vmem:[%s2829_s14 + $0x20] sm:$0xf] %vm1410_vm3, %v2003_v24  ;;  %v1972_v30 = vpack.c.bf16 %v1152_v27, %v1152_v27  ;;  %v1988_v32 = vpack.c.bf16 %v1232_v51, %v1232_v51  ;;  %v1154_v57 = vadd.f32 %v1153_v22, %v2813_v61  ;;  %v1234_v9 = vadd.f32 %v1233_v35, %v2813_v61 }
 0x2f0   : > { %1707 = vst.msk [vmem:[%s2829_s14 + $0x60] sm:$0xf] %vm1410_vm3, %v2019_v7  ;;  %v1157_v38 = vpop.f32.mrf.mxu0  ;;  %v1237_v45 = vpop.f32.mrf.mxu1 }
 0x2f1   : > { %1420 = vst.msk [vmem:[%s2821_s12 + $0x24] sm:$0xf] %vm1410_vm3, %v1972_v30  ;;  %1436 = vst.msk [vmem:[%s2821_s12 + $0x64] sm:$0xf] %vm1410_vm3, %v1988_v32  ;;  %v2004_v63 = vpack.c.bf16 %v1154_v57, %v1154_v57  ;;  %v2020_v33 = vpack.c.bf16 %v1234_v9, %v1234_v9  ;;  %v1158_v47 = vadd.f32 %v1157_v38, %v2808_v41 }
 0x2f2   : > { %v1238_v56 = vadd.f32 %v1237_v45, %v2808_v41  ;;  %1461 = vrot.lane.b32.xlu1 %v1972_v30, %s2184_s15  ;;  %1491 = vrot.lane.b32.xlu0 %v1987_v62, %s2184_s15  ;;  %v1159_v3 = vpop.f32.mrf.mxu0  ;;  %v1239_v39 = vpop.f32.mrf.mxu1 }
 0x2f3   : > { %1692 = vst.msk [vmem:[%s2829_s14 + $0x24] sm:$0xf] %vm1410_vm3, %v2004_v63  ;;  %1708 = vst.msk [vmem:[%s2829_s14 + $0x64] sm:$0xf] %vm1410_vm3, %v2020_v33  ;;  %v1973_v40 = vpack.c.bf16 %v1158_v47, %v1158_v47  ;;  %v1160_v43 = vadd.f32 %v1159_v3, %v2813_v61  ;;  %v1240_v49 = vadd.f32 %v1239_v39, %v2813_v61 }
 0x2f4   : > { %v1989_v13 = vpack.c.bf16 %v1238_v56, %v1238_v56  ;;  %v1161_v42 = vpop.f32.mrf.mxu0  ;;  %v1241_v48 = vpop.f32.mrf.mxu1 }
 0x2f5   : > { %1421 = vst.msk [vmem:[%s2821_s12 + $0x28] sm:$0xf] %vm1410_vm3, %v1973_v40  ;;  %v2005_v50 = vpack.c.bf16 %v1160_v43, %v1160_v43  ;;  %v2021_v17 = vpack.c.bf16 %v1240_v49, %v1240_v49  ;;  %v1162_v52 = vadd.f32 %v1161_v42, %v2808_v41  ;;  %v1242_v59 = vadd.f32 %v1241_v48, %v2808_v41 }
 0x2f6   : > { %1437 = vst.msk [vmem:[%s2821_s12 + $0x68] sm:$0xf] %vm1410_vm3, %v1989_v13  ;;  %1493 = vrot.lane.b32.xlu1 %v1988_v32, %s2184_s15  ;;  %1463 = vrot.lane.b32.xlu0 %v1973_v40, %s2184_s15  ;;  %v1163_v53 = vpop.f32.mrf.mxu0  ;;  %v1243_v55 = vpop.f32.mrf.mxu1 }
 0x2f7   : > { %1693 = vst.msk [vmem:[%s2829_s14 + $0x28] sm:$0xf] %vm1410_vm3, %v2005_v50  ;;  %1709 = vst.msk [vmem:[%s2829_s14 + $0x68] sm:$0xf] %vm1410_vm3, %v2021_v17  ;;  %v1974_v58 = vpack.c.bf16 %v1162_v52, %v1162_v52  ;;  %v1990_v21 = vpack.c.bf16 %v1242_v59, %v1242_v59  ;;  %v1164_v60 = vadd.f32 %v1163_v53, %v2813_v61 }
 0x2f8   : > { %v1244_v10 = vadd.f32 %v1243_v55, %v2813_v61  ;;  %v1167_v11 = vpop.f32.mrf.mxu0  ;;  %v1247_v25 = vpop.f32.mrf.mxu1 }
 0x2f9   : > { %1422 = vst.msk [vmem:[%s2821_s12 + $0x2c] sm:$0xf] %vm1410_vm3, %v1974_v58  ;;  %1438 = vst.msk [vmem:[%s2821_s12 + $0x6c] sm:$0xf] %vm1410_vm3, %v1990_v21  ;;  %v2006_v12 = vpack.c.bf16 %v1164_v60, %v1164_v60  ;;  %v1168_v0 = vadd.f32 %v1167_v11, %v2808_v41  ;;  %v1248_v2 = vadd.f32 %v1247_v25, %v2808_v41 }
 0x2fa   : > { %v2022_v26 = vpack.c.bf16 %v1244_v10, %v1244_v10  ;;  %1465 = vrot.lane.b32.xlu1 %v1974_v58, %s2184_s15  ;;  %1495 = vrot.lane.b32.xlu0 %v1989_v13, %s2184_s15  ;;  %v1169_v4 = vpop.f32.mrf.mxu0  ;;  %v1249_v28 = vpop.f32.mrf.mxu1 }
 0x2fb   : > { %1694 = vst.msk [vmem:[%s2829_s14 + $0x2c] sm:$0xf] %vm1410_vm3, %v2006_v12  ;;  %v1975_v8 = vpack.c.bf16 %v1168_v0, %v1168_v0  ;;  %v1991_v15 = vpack.c.bf16 %v1248_v2, %v1248_v2  ;;  %v1170_v14 = vadd.f32 %v1169_v4, %v2813_v61  ;;  %v1250_v31 = vadd.f32 %v1249_v28, %v2813_v61 }
 0x2fc   : > { %1710 = vst.msk [vmem:[%s2829_s14 + $0x6c] sm:$0xf] %vm1410_vm3, %v2022_v26  ;;  %v1171_v37 = vpop.f32.mrf.mxu0  ;;  %v1251_v46 = vpop.f32.mrf.mxu1 }
 0x2fd   : > { %1423 = vst.msk [vmem:[%s2821_s12 + $0x30] sm:$0xf] %vm1410_vm3, %v1975_v8  ;;  %1439 = vst.msk [vmem:[%s2821_s12 + $0x70] sm:$0xf] %vm1410_vm3, %v1991_v15  ;;  %v2007_v16 = vpack.c.bf16 %v1170_v14, %v1170_v14  ;;  %v2023_v20 = vpack.c.bf16 %v1250_v31, %v1250_v31  ;;  %v1172_v5 = vadd.f32 %v1171_v37, %v2808_v41 }
 0x2fe   : > { %v1252_v34 = vadd.f32 %v1251_v46, %v2808_v41  ;;  %1497 = vrot.lane.b32.xlu1 %v1990_v21, %s2184_s15  ;;  %1467 = vrot.lane.b32.xlu0 %v1975_v8, %s2184_s15  ;;  %v1173_v19 = vpop.f32.mrf.mxu0  ;;  %v1253_v1 = vpop.f32.mrf.mxu1 }
 0x2ff   : > { %1695 = vst.msk [vmem:[%s2829_s14 + $0x30] sm:$0xf] %vm1410_vm3, %v2007_v16  ;;  %1711 = vst.msk [vmem:[%s2829_s14 + $0x70] sm:$0xf] %vm1410_vm3, %v2023_v20  ;;  %v1976_v23 = vpack.c.bf16 %v1172_v5, %v1172_v5  ;;  %v1174_v54 = vadd.f32 %v1173_v19, %v2813_v61  ;;  %v1254_v62 = vadd.f32 %v1253_v1, %v2813_v61 }
 0x300   : > { %v1992_v36 = vpack.c.bf16 %v1252_v34, %v1252_v34  ;;  %v1177_v6 = vpop.f32.mrf.mxu0  ;;  %v1257_v18 = vpop.f32.mrf.mxu1 }
 0x301   : > { %1424 = vst.msk [vmem:[%s2821_s12 + $0x34] sm:$0xf] %vm1410_vm3, %v1976_v23  ;;  %v2008_v29 = vpack.c.bf16 %v1174_v54, %v1174_v54  ;;  %v2024_v44 = vpack.c.bf16 %v1254_v62, %v1254_v62  ;;  %v1178_v24 = vadd.f32 %v1177_v6, %v2808_v41  ;;  %v1258_v7 = vadd.f32 %v1257_v18, %v2808_v41 }
 0x302   : > { %1440 = vst.msk [vmem:[%s2821_s12 + $0x74] sm:$0xf] %vm1410_vm3, %v1992_v36  ;;  %1469 = vrot.lane.b32.xlu1 %v1976_v23, %s2184_s15  ;;  %1499 = vrot.lane.b32.xlu0 %v1991_v15, %s2184_s15  ;;  %v1179_v27 = vpop.f32.mrf.mxu0  ;;  %v1259_v51 = vpop.f32.mrf.mxu1 }
 0x303   : > { %1696 = vst.msk [vmem:[%s2829_s14 + $0x34] sm:$0xf] %vm1410_vm3, %v2008_v29  ;;  %1712 = vst.msk [vmem:[%s2829_s14 + $0x74] sm:$0xf] %vm1410_vm3, %v2024_v44  ;;  %v1977_v22 = vpack.c.bf16 %v1178_v24, %v1178_v24  ;;  %v1993_v35 = vpack.c.bf16 %v1258_v7, %v1258_v7  ;;  %v1180_v30 = vadd.f32 %v1179_v27, %v2813_v61 }
 0x304   : > { %v1260_v32 = vadd.f32 %v1259_v51, %v2813_v61  ;;  %v1181_v57 = vpop.f32.mrf.mxu0  ;;  %v1261_v9 = vpop.f32.mrf.mxu1 }
 0x305   : > { %1425 = vst.msk [vmem:[%s2821_s12 + $0x38] sm:$0xf] %vm1410_vm3, %v1977_v22  ;;  %1441 = vst.msk [vmem:[%s2821_s12 + $0x78] sm:$0xf] %vm1410_vm3, %v1993_v35  ;;  %v2009_v38 = vpack.c.bf16 %v1180_v30, %v1180_v30  ;;  %v1182_v63 = vadd.f32 %v1181_v57, %v2808_v41  ;;  %v1262_v33 = vadd.f32 %v1261_v9, %v2808_v41 }
 0x306   : > { %v2025_v45 = vpack.c.bf16 %v1260_v32, %v1260_v32  ;;  %1501 = vrot.lane.b32.xlu1 %v1992_v36, %s2184_s15  ;;  %1471 = vrot.lane.b32.xlu0 %v1977_v22, %s2184_s15  ;;  %v1183_v47 = vpop.f32.mrf.mxu0  ;;  %v1263_v56 = vpop.f32.mrf.mxu1 }
 0x307   : > { %1697 = vst.msk [vmem:[%s2829_s14 + $0x38] sm:$0xf] %vm1410_vm3, %v2009_v38  ;;  %v1978_v3 = vpack.c.bf16 %v1182_v63, %v1182_v63  ;;  %v1994_v39 = vpack.c.bf16 %v1262_v33, %v1262_v33  ;;  %v1184_v40 = vadd.f32 %v1183_v47, %v2813_v61  ;;  %v1264_v13 = vadd.f32 %v1263_v56, %v2813_v61 }
 0x308   : > { %1713 = vst.msk [vmem:[%s2829_s14 + $0x78] sm:$0xf] %vm1410_vm3, %v2025_v45 }
 0x309   : > { %1426 = vst.msk [vmem:[%s2821_s12 + $0x3c] sm:$0xf] %vm1410_vm3, %v1978_v3  ;;  %1442 = vst.msk [vmem:[%s2821_s12 + $0x7c] sm:$0xf] %vm1410_vm3, %v1994_v39  ;;  %v2010_v41 = vpack.c.bf16 %v1184_v40, %v1184_v40  ;;  %v2026_v43 = vpack.c.bf16 %v1264_v13, %v1264_v13 }
 0x30a   : > { %1473 = vrot.lane.b32.xlu1 %v1978_v3, %s2184_s15  ;;  %1503 = vrot.lane.b32.xlu0 %v1993_v35, %s2184_s15 }
 0x30b   : > { %1698 = vst.msk [vmem:[%s2829_s14 + $0x3c] sm:$0xf] %vm1410_vm3, %v2010_v41  ;;  %1714 = vst.msk [vmem:[%s2829_s14 + $0x7c] sm:$0xf] %vm1410_vm3, %v2026_v43 }
 0x30e   : > { %1505 = vrot.lane.b32.xlu1 %v1994_v39, %s2184_s15 }
 0x33f   : > { %v1444_v61 = vpop.permute.xlu0 %1443 }
 0x340   : > { %1539 = vst.msk [vmem:[%s3055_s18] sm:$0xf] %vm1410_vm3, %v1444_v61 }
 0x344   : > { %v1478_v49 = vpop.permute.xlu1 %1477  ;;  %v1476_v42 = vpop.permute.xlu0 %1475 }
 0x345   : > { %1556 = vst.msk [vmem:[%s3055_s18 + $0x44] sm:$0xf] %vm1410_vm3, %v1478_v49  ;;  %1555 = vst.msk [vmem:[%s3055_s18 + $0x40] sm:$0xf] %vm1410_vm3, %v1476_v42 }
 0x348   : > { %v1448_v48 = vpop.permute.xlu1 %1447  ;;  %v1446_v50 = vpop.permute.xlu0 %1445 }
 0x349   : > { %1541 = vst.msk [vmem:[%s3055_s18 + $0x8] sm:$0xf] %vm1410_vm3, %v1448_v48  ;;  %1540 = vst.msk [vmem:[%s3055_s18 + $0x4] sm:$0xf] %vm1410_vm3, %v1446_v50 }
 0x34c   : > { %v1450_v17 = vpop.permute.xlu1 %1449  ;;  %v1480_v52 = vpop.permute.xlu0 %1479 }
 0x34d   : > { %1542 = vst.msk [vmem:[%s3055_s18 + $0xc] sm:$0xf] %vm1410_vm3, %v1450_v17  ;;  %1557 = vst.msk [vmem:[%s3055_s18 + $0x48] sm:$0xf] %vm1410_vm3, %v1480_v52 }
 0x350   : > { %v1482_v59 = vpop.permute.xlu1 %1481  ;;  %v1452_v53 = vpop.permute.xlu0 %1451 }
 0x351   : > { %1558 = vst.msk [vmem:[%s3055_s18 + $0x4c] sm:$0xf] %vm1410_vm3, %v1482_v59  ;;  %1543 = vst.msk [vmem:[%s3055_s18 + $0x10] sm:$0xf] %vm1410_vm3, %v1452_v53 }
 0x354   : > { %v1454_v55 = vpop.permute.xlu1 %1453  ;;  %v1484_v58 = vpop.permute.xlu0 %1483 }
 0x355   : > { %1544 = vst.msk [vmem:[%s3055_s18 + $0x14] sm:$0xf] %vm1410_vm3, %v1454_v55  ;;  %1559 = vst.msk [vmem:[%s3055_s18 + $0x50] sm:$0xf] %vm1410_vm3, %v1484_v58 }
 0x358   : > { %v1486_v21 = vpop.permute.xlu1 %1485  ;;  %v1456_v60 = vpop.permute.xlu0 %1455 }
 0x359   : > { %1560 = vst.msk [vmem:[%s3055_s18 + $0x54] sm:$0xf] %vm1410_vm3, %v1486_v21  ;;  %1545 = vst.msk [vmem:[%s3055_s18 + $0x18] sm:$0xf] %vm1410_vm3, %v1456_v60 }
 0x35c   : > { %v1458_v10 = vpop.permute.xlu1 %1457  ;;  %v1488_v11 = vpop.permute.xlu0 %1487 }
 0x35d   : > { %1546 = vst.msk [vmem:[%s3055_s18 + $0x1c] sm:$0xf] %vm1410_vm3, %v1458_v10  ;;  %1561 = vst.msk [vmem:[%s3055_s18 + $0x58] sm:$0xf] %vm1410_vm3, %v1488_v11 }
 0x360   : > { %v1490_v25 = vpop.permute.xlu1 %1489  ;;  %v1460_v12 = vpop.permute.xlu0 %1459 }
 0x361   : > { %1562 = vst.msk [vmem:[%s3055_s18 + $0x5c] sm:$0xf] %vm1410_vm3, %v1490_v25  ;;  %1547 = vst.msk [vmem:[%s3055_s18 + $0x20] sm:$0xf] %vm1410_vm3, %v1460_v12 }
 0x364   : > { %v1462_v26 = vpop.permute.xlu1 %1461  ;;  %v1492_v0 = vpop.permute.xlu0 %1491 }
 0x365   : > { %1548 = vst.msk [vmem:[%s3055_s18 + $0x24] sm:$0xf] %vm1410_vm3, %v1462_v26  ;;  %1563 = vst.msk [vmem:[%s3055_s18 + $0x60] sm:$0xf] %vm1410_vm3, %v1492_v0 }
 0x368   : > { %v1494_v2 = vpop.permute.xlu1 %1493  ;;  %v1464_v4 = vpop.permute.xlu0 %1463 }
 0x369   : > { %1564 = vst.msk [vmem:[%s3055_s18 + $0x64] sm:$0xf] %vm1410_vm3, %v1494_v2  ;;  %1549 = vst.msk [vmem:[%s3055_s18 + $0x28] sm:$0xf] %vm1410_vm3, %v1464_v4 }
 0x36c   : > { %v1466_v28 = vpop.permute.xlu1 %1465  ;;  %v1496_v8 = vpop.permute.xlu0 %1495 }
 0x36d   : > { %1550 = vst.msk [vmem:[%s3055_s18 + $0x2c] sm:$0xf] %vm1410_vm3, %v1466_v28  ;;  %1565 = vst.msk [vmem:[%s3055_s18 + $0x68] sm:$0xf] %vm1410_vm3, %v1496_v8 }
 0x370   : > { %v1498_v15 = vpop.permute.xlu1 %1497  ;;  %v1468_v14 = vpop.permute.xlu0 %1467 }
 0x371   : > { %1566 = vst.msk [vmem:[%s3055_s18 + $0x6c] sm:$0xf] %vm1410_vm3, %v1498_v15  ;;  %1551 = vst.msk [vmem:[%s3055_s18 + $0x30] sm:$0xf] %vm1410_vm3, %v1468_v14 }
 0x374   : > { %v1470_v31 = vpop.permute.xlu1 %1469  ;;  %v1500_v37 = vpop.permute.xlu0 %1499 }
 0x375   : > { %1552 = vst.msk [vmem:[%s3055_s18 + $0x34] sm:$0xf] %vm1410_vm3, %v1470_v31  ;;  %1567 = vst.msk [vmem:[%s3055_s18 + $0x70] sm:$0xf] %vm1410_vm3, %v1500_v37 }
 0x378   : > { %v1502_v46 = vpop.permute.xlu1 %1501  ;;  %v1472_v16 = vpop.permute.xlu0 %1471 }
 0x379   : > { %1568 = vst.msk [vmem:[%s3055_s18 + $0x74] sm:$0xf] %vm1410_vm3, %v1502_v46  ;;  %1553 = vst.msk [vmem:[%s3055_s18 + $0x38] sm:$0xf] %vm1410_vm3, %v1472_v16 }
 0x37c   : > { %v1474_v20 = vpop.permute.xlu1 %1473  ;;  %v1504_v5 = vpop.permute.xlu0 %1503 }
 0x37d   : > { %1554 = vst.msk [vmem:[%s3055_s18 + $0x3c] sm:$0xf] %vm1410_vm3, %v1474_v20  ;;  %1569 = vst.msk [vmem:[%s3055_s18 + $0x78] sm:$0xf] %vm1410_vm3, %v1504_v5 }
 0x380   : > { %v1506_v34 = vpop.permute.xlu1 %1505 }
 0x381   : > { %1570 = vst.msk [vmem:[%s3055_s18 + $0x7c] sm:$0xf] %vm1410_vm3, %v1506_v34 }
 0x382 PF: > { %s19_s27 = sadd.s32 1, %s2179_s27  }
 0x383   : > { %p16_p4 = scmp.ge.s32.totalorder %s19_s27, 4  }
 0x385   :  { %18 = sbr.rel (!%p16_p4) target bundleno = 1 (0x1), region = 98 }

</bundles_post_ra>
